<compile_context>
chip_gen: v5e
topology: v5e:2x2
jax: 0.10.0
libtpu: 0.0.40
codegen_flags: <defaults>
</compile_context>

<pallas_src>
import functools

import numpy as np

import jax
import jax.numpy as jnp
from jax.experimental import pallas as pl
from jax.experimental.pallas import tpu as pltpu


DPAD = 128        # lane-padded width of the MLP head / kernel output
DEFAULT_NB = 32   # images per grid step (use >=32 for large batches)
_K = 5            # conv kernel size


# ----------------------------------------------------------------------------
# Fused LeNet kernel: everything stays in VMEM, body is matmuls + elementwise.
# ----------------------------------------------------------------------------
def _lenet_kernel(x_ref, m1_ref, b1_ref, sw1_ref, sh1_ref,
                  m2_ref, b2_ref, sw2_ref, sh2_ref,
                  fsel_ref, w1_ref, fb1_ref, w2_ref, fb2_ref, w3_ref, fb3_ref,
                  o_ref):
    f32, bf16 = jnp.float32, jnp.bfloat16

    def bmm(a, b):            # bf16 x bf16 MXU matmul, f32 accumulation
        return jnp.dot(a, b, preferred_element_type=f32)

    def shift_rows_up(a, k):  # out[r] = a[r + k]; wrapped tail rows are garbage
        return a if k == 0 else jnp.roll(a, -k, axis=0)

    def im2col(a):            # lane-concat of the K row-shifted copies
        return jnp.concatenate(
            [shift_rows_up(a, k) for k in range(_K)], axis=1).astype(bf16)

    # conv1 + bias + ReLU: rows=(n,h) lanes=(ow*6+c); one (., 140)x(140, 144)
    # bf16 matmul.  Rows with h >= 24 of each image are invalid and are dropped
    # by the height-pool row selection below.
    a1 = jnp.maximum(bmm(im2col(x_ref[...]), m1_ref[...]) + b1_ref[...], 0.0)

    # 2x2 max-pool #1: width max + lane compaction via even/odd 0/1 selectors,
    # height max via shifted max + one even-row 0/1 selector (row compaction).
    a1b = a1.astype(bf16)
    pw1 = jnp.maximum(bmm(a1b, sw1_ref[0]), bmm(a1b, sw1_ref[1]))    # (nb*28, 72)
    q1 = jnp.maximum(pw1, shift_rows_up(pw1, 1)).astype(bf16)
    p1 = bmm(sh1_ref[...], q1).astype(bf16)                          # (nb*12, 72)

    # conv2 + bias + ReLU: one (., 360)x(360, 128) bf16 matmul.
    a2 = jnp.maximum(bmm(im2col(p1), m2_ref[...]) + b2_ref[...], 0.0)

    # 2x2 max-pool #2.
    a2b = a2.astype(bf16)
    pw2 = jnp.maximum(bmm(a2b, sw2_ref[0]), bmm(a2b, sw2_ref[1]))    # (nb*12, 64)
    q2 = jnp.maximum(pw2, shift_rows_up(pw2, 1)).astype(bf16)
    p2 = bmm(sh2_ref[...], q2).astype(bf16)                          # (nb*4, 64)

    # flatten (PyTorch NCHW order folded into pre-permuted fc1 weights) + head.
    flat = jnp.concatenate(
        [bmm(fsel_ref[h], p2) for h in range(fsel_ref.shape[0])],
        axis=1).astype(bf16)                                         # (nb, 256)
    h1 = jnp.maximum(bmm(flat, w1_ref[...]) + fb1_ref[...], 0.0).astype(bf16)
    h2 = jnp.maximum(bmm(h1, w2_ref[...]) + fb2_ref[...], 0.0).astype(bf16)
    o_ref[...] = (bmm(h2, w3_ref[...]) + fb3_ref[...]).astype(o_ref.dtype)


# ----------------------------------------------------------------------------
# Host-side (one-time) construction of the constant operands
# ----------------------------------------------------------------------------
def _conv_band_stacked(w, width):
    """w: (Cout, Cin, K, K) -> (K*width*Cin, OW*Cout) banded conv matrix.

    Row index = ki*width*Cin + wj*Cin + cin (matches the kernel's lane-concat
    of the K row-shifted slabs); column index = ow*Cout + cout.
    """
    c_out, c_in, k, _ = w.shape
    ow = width - k + 1
    m = np.zeros((k, width * c_in, ow * c_out), np.float32)
    for ki in range(k):
        for kj in range(k):
            for o in range(ow):
                wj = o + kj
                m[ki, wj * c_in:(wj + 1) * c_in,
                  o * c_out:(o + 1) * c_out] = w[:, :, ki, kj].T
    return m.reshape(k * width * c_in, ow * c_out)


def _pool_w_sel(ow, c):
    """(2, ow*c, (ow//2)*c) even/odd width-column 0/1 selectors for 2x2 pool."""
    owp = ow // 2
    s = np.zeros((2, ow * c, owp * c), np.float32)
    for wp in range(owp):
        for cc in range(c):
            s[0, (2 * wp) * c + cc, wp * c + cc] = 1.0
            s[1, (2 * wp + 1) * c + cc, wp * c + cc] = 1.0
    return s


def _even_row_sel(nb, rows_in, rows_out):
    """(nb*rows_out, nb*rows_in) 0/1: output row (n, r) <- input row (n, 2r)."""
    s = np.zeros((nb * rows_out, nb * rows_in), np.float32)
    for n in range(nb):
        for r in range(rows_out):
            s[n * rows_out + r, n * rows_in + 2 * r] = 1.0
    return s


def _flatten_sel(nb, hf):
    """(hf, nb, nb*hf) 0/1 selectors extracting row h of each image's block."""
    f = np.zeros((hf, nb, nb * hf), np.float32)
    for hh in range(hf):
        for n in range(nb):
            f[hh, n, n * hf + hh] = 1.0
    return f


def _pad_row(v, width):
    out = np.zeros((1, width), np.float32)
    out[0, :v.shape[0]] = v
    return out


def prepare_params(params, num_classes, nb=DEFAULT_NB):
    """PyTorch-layout parameters -> kernel constant operands (+ tile size nb)."""
    del num_classes                       # DPAD=128 lane padding covers nc <= 128
    h1, c1, oh1 = 28, 6, 24
    h2, c2, oh2 = 12, 16, 8
    hf, wf, cf = 4, 4, 16

    w1 = np.asarray(params["conv1_w"], np.float32)
    b1 = np.asarray(params["conv1_b"], np.float32)
    w2 = np.asarray(params["conv2_w"], np.float32)
    b2 = np.asarray(params["conv2_b"], np.float32)
    f1w = np.asarray(params["fc1_w"], np.float32)   # (120, 256) NCHW-flat inputs
    f1b = np.asarray(params["fc1_b"], np.float32)
    f2w = np.asarray(params["fc2_w"], np.float32)   # (84, 120)
    f2b = np.asarray(params["fc2_b"], np.float32)
    f3w = np.asarray(params["fc3_w"], np.float32)   # (nc, 84)
    f3b = np.asarray(params["fc3_b"], np.float32)

    # fc1 weights permuted to the kernel's (h, w*CF + c) feature order and
    # stacked along rows in the same order as the kernel's flatten lane-concat.
    f1r = f1w.reshape(f1w.shape[0], cf, hf, wf)                       # (j, c, h, w)
    w1p = np.zeros((hf, wf * cf, DPAD), np.float32)
    w1p[:, :, :f1w.shape[0]] = np.transpose(f1r, (2, 3, 1, 0)).reshape(hf, wf * cf, -1)
    w1cat = w1p.reshape(hf * wf * cf, DPAD)                           # (256, 128)

    w2p = np.zeros((DPAD, DPAD), np.float32)
    w2p[:f2w.shape[1], :f2w.shape[0]] = f2w.T
    w3p = np.zeros((DPAD, DPAD), np.float32)
    w3p[:f3w.shape[1], :f3w.shape[0]] = f3w.T

    # bf16 casts go through jnp (numpy has no bfloat16 dtype).
    bf = lambda a: jnp.asarray(a, dtype=jnp.bfloat16)
    f32 = lambda a: jnp.asarray(a, dtype=jnp.float32)

    consts = (
        bf(_conv_band_stacked(w1, h1)),        # m1   (140, 144)       bf16
        f32(np.tile(b1, oh1)[None, :]),        # b1   (1, 144)         f32
        bf(_pool_w_sel(oh1, c1)),              # sw1  (2, 144, 72)     bf16
        bf(_even_row_sel(nb, h1, h2)),         # sh1  (nb*12, nb*28)   bf16
        bf(_conv_band_stacked(w2, h2)),        # m2   (360, 128)       bf16
        f32(np.tile(b2, oh2)[None, :]),        # b2   (1, 128)         f32
        bf(_pool_w_sel(oh2, c2)),              # sw2  (2, 128, 64)     bf16
        bf(_even_row_sel(nb, h2, hf)),         # sh2  (nb*4, nb*12)    bf16
        bf(_flatten_sel(nb, hf)),              # fsel (4, nb, nb*4)    bf16
        bf(w1cat),                             # w1   (256, 128)       bf16
        f32(_pad_row(f1b, DPAD)),              # fb1  (1, 128)         f32
        bf(w2p),                               # w2   (128, 128)       bf16
        f32(_pad_row(f2b, DPAD)),              # fb2  (1, 128)         f32
        bf(w3p),                               # w3   (128, 128)       bf16
        f32(_pad_row(f3b, DPAD)),              # fb3  (1, 128)         f32
    )
    return {"nb": int(nb), "consts": consts}


# ----------------------------------------------------------------------------
# Wrapper
# ----------------------------------------------------------------------------
def _zero_index_map(*_, ndim):
    return (0,) * ndim


def _const_spec(arr):
    return pl.BlockSpec(arr.shape, functools.partial(_zero_index_map, ndim=arr.ndim))


def net_forward(x_nchw, prep, num_classes):
    """Forward pass of `Net`. x_nchw: (N, 1, 28, 28) float -> (N, num_classes)."""
    nb = prep["nb"]
    consts = prep["consts"]
    n = x_nchw.shape[0]
    n_pad = ((n + nb - 1) // nb) * nb
    x = jnp.reshape(x_nchw.astype(jnp.bfloat16), (n, 28, 28))
    if n_pad != n:
        x = jnp.pad(x, ((0, n_pad - n), (0, 0), (0, 0)))
    x2d = x.reshape(n_pad * 28, 28)                 # rows = (image, y), lanes = x

    out = pl.pallas_call(
        _lenet_kernel,
        out_shape=jax.ShapeDtypeStruct((n_pad, DPAD), jnp.float32),
        grid=(n_pad // nb,),
        in_specs=[pl.BlockSpec((nb * 28, 28), lambda i: (i, 0))]
                 + [_const_spec(c) for c in consts],
        out_specs=pl.BlockSpec((nb, DPAD), lambda i: (i, 0)),
        compiler_params=pltpu.CompilerParams(
            dimension_semantics=("parallel",),
            vmem_limit_bytes=32 * 1024 * 1024,
        ),
    )(x2d, *consts)
    return out[:n, :num_classes]


# ----------------------------------------------------------------------------
# Pure-JAX reference (numerical sanity check) and parameter init
# ----------------------------------------------------------------------------
def net_forward_reference(x_nchw, params):
    x = jnp.transpose(x_nchw, (0, 2, 3, 1))  # NHWC

    def conv(y, w, b):
        n, h, wdt, cin = y.shape
        cout, _, k, _ = w.shape
        oh, ow = h - k + 1, wdt - k + 1
        cols = [y[:, ki:ki + oh, kj:kj + ow, :] for ki in range(k) for kj in range(k)]
        patches = jnp.stack(cols, axis=3).reshape(n, oh, ow, k * k * cin)
        wm = jnp.transpose(w, (2, 3, 1, 0)).reshape(k * k * cin, cout)
        return jnp.einsum("nhwp,pc->nhwc", patches, wm) + b

    def pool(y):
        return jnp.maximum(jnp.maximum(y[:, 0::2, 0::2, :], y[:, 0::2, 1::2, :]),
                           jnp.maximum(y[:, 1::2, 0::2, :], y[:, 1::2, 1::2, :]))

    y = pool(jax.nn.relu(conv(x, params["conv1_w"], params["conv1_b"])))
    y = pool(jax.nn.relu(conv(y, params["conv2_w"], params["conv2_b"])))
    feat = jnp.transpose(y, (0, 3, 1, 2)).reshape(x.shape[0], -1)
    h = jax.nn.relu(feat @ params["fc1_w"].T + params["fc1_b"])
    h = jax.nn.relu(h @ params["fc2_w"].T + params["fc2_b"])
    return h @ params["fc3_w"].T + params["fc3_b"]


def init_params(key, num_classes):
    def u(k, shape, fan_in):
        bound = 1.0 / jnp.sqrt(jnp.float32(fan_in))
        return jax.random.uniform(k, shape, jnp.float32, -bound, bound)

    ks = jax.random.split(key, 10)
    return {
        "conv1_w": u(ks[0], (6, 1, 5, 5), 25),
        "conv1_b": u(ks[1], (6,), 25),
        "conv2_w": u(ks[2], (16, 6, 5, 5), 150),
        "conv2_b": u(ks[3], (16,), 150),
        "fc1_w": u(ks[4], (120, 256), 256),
        "fc1_b": u(ks[5], (120,), 256),
        "fc2_w": u(ks[6], (84, 120), 120),
        "fc2_b": u(ks[7], (84,), 120),
        "fc3_w": u(ks[8], (num_classes, 84), 84),
        "fc3_b": u(ks[9], (84,)[0:1] and (num_classes,), 84),
    }


if __name__ == "__main__":
    num_classes = 10
    batch = 2

    key = jax.random.PRNGKey(0)
    k_x, k_p = jax.random.split(key)
    # Input implied by fc1 = 16*4*4: 28x28 single-channel images (NCHW).
    x = jax.random.normal(k_x, (batch, 1, 28, 28), dtype=jnp.float32)
    params = init_params(k_p, num_classes)

    # Tiny demo batch -> small per-step tile (nb=8).  For large batches use the
    # default nb=32 so per-step pipeline overhead is amortised; on v7x keep the
    # grid >= 2 steps per chip so both TensorCores are used.
    prep = prepare_params(params, num_classes, nb=8)

    fwd = jax.jit(lambda xb: net_forward(xb, prep, num_classes))
    logits = jax.block_until_ready(fwd(x))

    assert logits.shape == (batch, num_classes)
    assert bool(jnp.all(jnp.isfinite(logits)))

    ref = jax.block_until_ready(net_forward_reference(x, params))
    max_err = float(jnp.max(jnp.abs(logits - ref)))
    assert max_err < 5e-2, f"mismatch vs reference: max abs err {max_err}"

    print("KERNEL_OK")
</pallas_src>

<mosaic_0001>
module attributes {stable_mosaic.version = 11 : i64} {
  func.func @_lenet_kernel(%arg0: i32, %arg1: memref<224x28xbf16, #tpu.memory_space<vmem>>, %arg2: memref<140x144xbf16, #tpu.memory_space<vmem>>, %arg3: memref<1x144xf32, #tpu.memory_space<vmem>>, %arg4: memref<2x144x72xbf16, #tpu.memory_space<vmem>>, %arg5: memref<96x224xbf16, #tpu.memory_space<vmem>>, %arg6: memref<360x128xbf16, #tpu.memory_space<vmem>>, %arg7: memref<1x128xf32, #tpu.memory_space<vmem>>, %arg8: memref<2x128x64xbf16, #tpu.memory_space<vmem>>, %arg9: memref<32x96xbf16, #tpu.memory_space<vmem>>, %arg10: memref<4x8x32xbf16, #tpu.memory_space<vmem>>, %arg11: memref<256x128xbf16, #tpu.memory_space<vmem>>, %arg12: memref<1x128xf32, #tpu.memory_space<vmem>>, %arg13: memref<128x128xbf16, #tpu.memory_space<vmem>>, %arg14: memref<1x128xf32, #tpu.memory_space<vmem>>, %arg15: memref<128x128xbf16, #tpu.memory_space<vmem>>, %arg16: memref<1x128xf32, #tpu.memory_space<vmem>>, %arg17: memref<8x128xf32, #tpu.memory_space<vmem>>) attributes {dimension_semantics = [#tpu.dimension_semantics<parallel>], iteration_bounds = array<i64: 1>, scalar_prefetch = 0 : i64, scratch_operands = 0 : i64, tpu.core_type = #tpu.core_type<tc>, window_params = [{transform_indices = @transform_0, window_bounds = array<i64: 224, 28>}, {pipeline_mode = #tpu.pipeline_mode<synchronous>, transform_indices = @transform_1, window_bounds = array<i64: 140, 144>}, {pipeline_mode = #tpu.pipeline_mode<synchronous>, transform_indices = @transform_2, window_bounds = array<i64: 1, 144>}, {pipeline_mode = #tpu.pipeline_mode<synchronous>, transform_indices = @transform_3, window_bounds = array<i64: 2, 144, 72>}, {pipeline_mode = #tpu.pipeline_mode<synchronous>, transform_indices = @transform_4, window_bounds = array<i64: 96, 224>}, {pipeline_mode = #tpu.pipeline_mode<synchronous>, transform_indices = @transform_5, window_bounds = array<i64: 360, 128>}, {pipeline_mode = #tpu.pipeline_mode<synchronous>, transform_indices = @transform_6, window_bounds = array<i64: 1, 128>}, {pipeline_mode = #tpu.pipeline_mode<synchronous>, transform_indices = @transform_7, window_bounds = array<i64: 2, 128, 64>}, {pipeline_mode = #tpu.pipeline_mode<synchronous>, transform_indices = @transform_8, window_bounds = array<i64: 32, 96>}, {pipeline_mode = #tpu.pipeline_mode<synchronous>, transform_indices = @transform_9, window_bounds = array<i64: 4, 8, 32>}, {pipeline_mode = #tpu.pipeline_mode<synchronous>, transform_indices = @transform_10, window_bounds = array<i64: 256, 128>}, {pipeline_mode = #tpu.pipeline_mode<synchronous>, transform_indices = @transform_11, window_bounds = array<i64: 1, 128>}, {pipeline_mode = #tpu.pipeline_mode<synchronous>, transform_indices = @transform_12, window_bounds = array<i64: 128, 128>}, {pipeline_mode = #tpu.pipeline_mode<synchronous>, transform_indices = @transform_13, window_bounds = array<i64: 1, 128>}, {pipeline_mode = #tpu.pipeline_mode<synchronous>, transform_indices = @transform_14, window_bounds = array<i64: 128, 128>}, {pipeline_mode = #tpu.pipeline_mode<synchronous>, transform_indices = @transform_15, window_bounds = array<i64: 1, 128>}, {transform_indices = @transform_16, window_bounds = array<i64: 8, 128>}]} {
    %c0 = arith.constant 0 : index
    %c0_0 = arith.constant 0 : index
    %0 = vector.load %arg1[%c0, %c0_0] : memref<224x28xbf16, #tpu.memory_space<vmem>>, vector<224x28xbf16>
    %1 = vector.extract_strided_slice %0 {offsets = [1, 0], sizes = [223, 28], strides = [1, 1]} : vector<224x28xbf16> to vector<223x28xbf16>
    %2 = vector.extract_strided_slice %0 {offsets = [0, 0], sizes = [1, 28], strides = [1, 1]} : vector<224x28xbf16> to vector<1x28xbf16>
    %3 = tpu.concatenate %1, %2 in 0 : vector<223x28xbf16>, vector<1x28xbf16> -> vector<224x28xbf16>
    %4 = vector.extract_strided_slice %0 {offsets = [2, 0], sizes = [222, 28], strides = [1, 1]} : vector<224x28xbf16> to vector<222x28xbf16>
    %5 = vector.extract_strided_slice %0 {offsets = [0, 0], sizes = [2, 28], strides = [1, 1]} : vector<224x28xbf16> to vector<2x28xbf16>
    %6 = tpu.concatenate %4, %5 in 0 : vector<222x28xbf16>, vector<2x28xbf16> -> vector<224x28xbf16>
    %7 = vector.extract_strided_slice %0 {offsets = [3, 0], sizes = [221, 28], strides = [1, 1]} : vector<224x28xbf16> to vector<221x28xbf16>
    %8 = vector.extract_strided_slice %0 {offsets = [0, 0], sizes = [3, 28], strides = [1, 1]} : vector<224x28xbf16> to vector<3x28xbf16>
    %9 = tpu.concatenate %7, %8 in 0 : vector<221x28xbf16>, vector<3x28xbf16> -> vector<224x28xbf16>
    %10 = vector.extract_strided_slice %0 {offsets = [4, 0], sizes = [220, 28], strides = [1, 1]} : vector<224x28xbf16> to vector<220x28xbf16>
    %11 = vector.extract_strided_slice %0 {offsets = [0, 0], sizes = [4, 28], strides = [1, 1]} : vector<224x28xbf16> to vector<4x28xbf16>
    %12 = tpu.concatenate %10, %11 in 0 : vector<220x28xbf16>, vector<4x28xbf16> -> vector<224x28xbf16>
    %13 = tpu.concatenate %0, %3, %6, %9, %12 in 1 : vector<224x28xbf16>, vector<224x28xbf16>, vector<224x28xbf16>, vector<224x28xbf16>, vector<224x28xbf16> -> vector<224x140xbf16>
    %c0_1 = arith.constant 0 : index
    %c0_2 = arith.constant 0 : index
    %14 = vector.load %arg2[%c0_1, %c0_2] : memref<140x144xbf16, #tpu.memory_space<vmem>>, vector<140x144xbf16>
    %cst = arith.constant dense<0.000000e+00> : vector<224x144xf32>
    %15 = tpu.matmul %13, %14, %cst {dimension_numbers = #tpu.dot_dimension_numbers<[1], [0], [0], [1], [0, 0, 1, 1], [], []>} : vector<224x140xbf16>, vector<140x144xbf16>, vector<224x144xf32> -> vector<224x144xf32>
    %c0_3 = arith.constant 0 : index
    %c0_4 = arith.constant 0 : index
    %16 = vector.load %arg3[%c0_3, %c0_4] : memref<1x144xf32, #tpu.memory_space<vmem>>, vector<1x144xf32>
    %17 = vector.broadcast %16 : vector<1x144xf32> to vector<224x144xf32>
    %18 = arith.addf %15, %17 : vector<224x144xf32>
    %cst_5 = arith.constant 0.000000e+00 : f32
    %19 = vector.broadcast %cst_5 : f32 to vector<224x144xf32>
    %20 = arith.maximumf %18, %19 : vector<224x144xf32>
    %21 = arith.truncf %20 : vector<224x144xf32> to vector<224x144xbf16>
    %c0_6 = arith.constant 0 : index
    %c0_7 = arith.constant 0 : index
    %c0_8 = arith.constant 0 : index
    %22 = vector.load %arg4[%c0_6, %c0_7, %c0_8] : memref<2x144x72xbf16, #tpu.memory_space<vmem>>, vector<1x144x72xbf16>
    %23 = vector.shape_cast %22 : vector<1x144x72xbf16> to vector<144x72xbf16>
    %cst_9 = arith.constant dense<0.000000e+00> : vector<224x72xf32>
    %24 = tpu.matmul %21, %23, %cst_9 {dimension_numbers = #tpu.dot_dimension_numbers<[1], [0], [0], [1], [0, 0, 1, 1], [], []>} : vector<224x144xbf16>, vector<144x72xbf16>, vector<224x72xf32> -> vector<224x72xf32>
    %c1 = arith.constant 1 : index
    %c0_10 = arith.constant 0 : index
    %c0_11 = arith.constant 0 : index
    %25 = vector.load %arg4[%c1, %c0_10, %c0_11] : memref<2x144x72xbf16, #tpu.memory_space<vmem>>, vector<1x144x72xbf16>
    %26 = vector.shape_cast %25 : vector<1x144x72xbf16> to vector<144x72xbf16>
    %cst_12 = arith.constant dense<0.000000e+00> : vector<224x72xf32>
    %27 = tpu.matmul %21, %26, %cst_12 {dimension_numbers = #tpu.dot_dimension_numbers<[1], [0], [0], [1], [0, 0, 1, 1], [], []>} : vector<224x144xbf16>, vector<144x72xbf16>, vector<224x72xf32> -> vector<224x72xf32>
    %28 = arith.maximumf %24, %27 : vector<224x72xf32>
    %29 = vector.extract_strided_slice %28 {offsets = [1, 0], sizes = [223, 72], strides = [1, 1]} : vector<224x72xf32> to vector<223x72xf32>
    %30 = vector.extract_strided_slice %28 {offsets = [0, 0], sizes = [1, 72], strides = [1, 1]} : vector<224x72xf32> to vector<1x72xf32>
    %31 = tpu.concatenate %29, %30 in 0 : vector<223x72xf32>, vector<1x72xf32> -> vector<224x72xf32>
    %32 = arith.maximumf %28, %31 : vector<224x72xf32>
    %33 = arith.truncf %32 : vector<224x72xf32> to vector<224x72xbf16>
    %c0_13 = arith.constant 0 : index
    %c0_14 = arith.constant 0 : index
    %34 = vector.load %arg5[%c0_13, %c0_14] : memref<96x224xbf16, #tpu.memory_space<vmem>>, vector<96x224xbf16>
    %cst_15 = arith.constant dense<0.000000e+00> : vector<96x72xf32>
    %35 = tpu.matmul %34, %33, %cst_15 {dimension_numbers = #tpu.dot_dimension_numbers<[1], [0], [0], [1], [0, 0, 1, 1], [], []>} : vector<96x224xbf16>, vector<224x72xbf16>, vector<96x72xf32> -> vector<96x72xf32>
    %36 = arith.truncf %35 : vector<96x72xf32> to vector<96x72xbf16>
    %37 = vector.extract_strided_slice %36 {offsets = [1, 0], sizes = [95, 72], strides = [1, 1]} : vector<96x72xbf16> to vector<95x72xbf16>
    %38 = vector.extract_strided_slice %36 {offsets = [0, 0], sizes = [1, 72], strides = [1, 1]} : vector<96x72xbf16> to vector<1x72xbf16>
    %39 = tpu.concatenate %37, %38 in 0 : vector<95x72xbf16>, vector<1x72xbf16> -> vector<96x72xbf16>
    %40 = vector.extract_strided_slice %36 {offsets = [2, 0], sizes = [94, 72], strides = [1, 1]} : vector<96x72xbf16> to vector<94x72xbf16>
    %41 = vector.extract_strided_slice %36 {offsets = [0, 0], sizes = [2, 72], strides = [1, 1]} : vector<96x72xbf16> to vector<2x72xbf16>
    %42 = tpu.concatenate %40, %41 in 0 : vector<94x72xbf16>, vector<2x72xbf16> -> vector<96x72xbf16>
    %43 = vector.extract_strided_slice %36 {offsets = [3, 0], sizes = [93, 72], strides = [1, 1]} : vector<96x72xbf16> to vector<93x72xbf16>
    %44 = vector.extract_strided_slice %36 {offsets = [0, 0], sizes = [3, 72], strides = [1, 1]} : vector<96x72xbf16> to vector<3x72xbf16>
    %45 = tpu.concatenate %43, %44 in 0 : vector<93x72xbf16>, vector<3x72xbf16> -> vector<96x72xbf16>
    %46 = vector.extract_strided_slice %36 {offsets = [4, 0], sizes = [92, 72], strides = [1, 1]} : vector<96x72xbf16> to vector<92x72xbf16>
    %47 = vector.extract_strided_slice %36 {offsets = [0, 0], sizes = [4, 72], strides = [1, 1]} : vector<96x72xbf16> to vector<4x72xbf16>
    %48 = tpu.concatenate %46, %47 in 0 : vector<92x72xbf16>, vector<4x72xbf16> -> vector<96x72xbf16>
    %49 = tpu.concatenate %36, %39, %42, %45, %48 in 1 : vector<96x72xbf16>, vector<96x72xbf16>, vector<96x72xbf16>, vector<96x72xbf16>, vector<96x72xbf16> -> vector<96x360xbf16>
    %c0_16 = arith.constant 0 : index
    %c0_17 = arith.constant 0 : index
    %50 = vector.load %arg6[%c0_16, %c0_17] : memref<360x128xbf16, #tpu.memory_space<vmem>>, vector<360x128xbf16>
    %cst_18 = arith.constant dense<0.000000e+00> : vector<96x128xf32>
    %51 = tpu.matmul %49, %50, %cst_18 {dimension_numbers = #tpu.dot_dimension_numbers<[1], [0], [0], [1], [0, 0, 1, 1], [], []>} : vector<96x360xbf16>, vector<360x128xbf16>, vector<96x128xf32> -> vector<96x128xf32>
    %c0_19 = arith.constant 0 : index
    %c0_20 = arith.constant 0 : index
    %52 = vector.load %arg7[%c0_19, %c0_20] : memref<1x128xf32, #tpu.memory_space<vmem>>, vector<1x128xf32>
    %53 = vector.broadcast %52 : vector<1x128xf32> to vector<96x128xf32>
    %54 = arith.addf %51, %53 : vector<96x128xf32>
    %cst_21 = arith.constant 0.000000e+00 : f32
    %55 = vector.broadcast %cst_21 : f32 to vector<96x128xf32>
    %56 = arith.maximumf %54, %55 : vector<96x128xf32>
    %57 = arith.truncf %56 : vector<96x128xf32> to vector<96x128xbf16>
    %c0_22 = arith.constant 0 : index
    %c0_23 = arith.constant 0 : index
    %c0_24 = arith.constant 0 : index
    %58 = vector.load %arg8[%c0_22, %c0_23, %c0_24] : memref<2x128x64xbf16, #tpu.memory_space<vmem>>, vector<1x128x64xbf16>
    %59 = vector.shape_cast %58 : vector<1x128x64xbf16> to vector<128x64xbf16>
    %cst_25 = arith.constant dense<0.000000e+00> : vector<96x64xf32>
    %60 = tpu.matmul %57, %59, %cst_25 {dimension_numbers = #tpu.dot_dimension_numbers<[1], [0], [0], [1], [0, 0, 1, 1], [], []>} : vector<96x128xbf16>, vector<128x64xbf16>, vector<96x64xf32> -> vector<96x64xf32>
    %c1_26 = arith.constant 1 : index
    %c0_27 = arith.constant 0 : index
    %c0_28 = arith.constant 0 : index
    %61 = vector.load %arg8[%c1_26, %c0_27, %c0_28] : memref<2x128x64xbf16, #tpu.memory_space<vmem>>, vector<1x128x64xbf16>
    %62 = vector.shape_cast %61 : vector<1x128x64xbf16> to vector<128x64xbf16>
    %cst_29 = arith.constant dense<0.000000e+00> : vector<96x64xf32>
    %63 = tpu.matmul %57, %62, %cst_29 {dimension_numbers = #tpu.dot_dimension_numbers<[1], [0], [0], [1], [0, 0, 1, 1], [], []>} : vector<96x128xbf16>, vector<128x64xbf16>, vector<96x64xf32> -> vector<96x64xf32>
    %64 = arith.maximumf %60, %63 : vector<96x64xf32>
    %65 = vector.extract_strided_slice %64 {offsets = [1, 0], sizes = [95, 64], strides = [1, 1]} : vector<96x64xf32> to vector<95x64xf32>
    %66 = vector.extract_strided_slice %64 {offsets = [0, 0], sizes = [1, 64], strides = [1, 1]} : vector<96x64xf32> to vector<1x64xf32>
    %67 = tpu.concatenate %65, %66 in 0 : vector<95x64xf32>, vector<1x64xf32> -> vector<96x64xf32>
    %68 = arith.maximumf %64, %67 : vector<96x64xf32>
    %69 = arith.truncf %68 : vector<96x64xf32> to vector<96x64xbf16>
    %c0_30 = arith.constant 0 : index
    %c0_31 = arith.constant 0 : index
    %70 = vector.load %arg9[%c0_30, %c0_31] : memref<32x96xbf16, #tpu.memory_space<vmem>>, vector<32x96xbf16>
    %cst_32 = arith.constant dense<0.000000e+00> : vector<32x64xf32>
    %71 = tpu.matmul %70, %69, %cst_32 {dimension_numbers = #tpu.dot_dimension_numbers<[1], [0], [0], [1], [0, 0, 1, 1], [], []>} : vector<32x96xbf16>, vector<96x64xbf16>, vector<32x64xf32> -> vector<32x64xf32>
    %72 = arith.truncf %71 : vector<32x64xf32> to vector<32x64xbf16>
    %c0_33 = arith.constant 0 : index
    %c0_34 = arith.constant 0 : index
    %c0_35 = arith.constant 0 : index
    %73 = vector.load %arg10[%c0_33, %c0_34, %c0_35] : memref<4x8x32xbf16, #tpu.memory_space<vmem>>, vector<1x8x32xbf16>
    %74 = vector.shape_cast %73 : vector<1x8x32xbf16> to vector<8x32xbf16>
    %cst_36 = arith.constant dense<0.000000e+00> : vector<8x64xf32>
    %75 = tpu.matmul %74, %72, %cst_36 {dimension_numbers = #tpu.dot_dimension_numbers<[1], [0], [0], [1], [0, 0, 1, 1], [], []>} : vector<8x32xbf16>, vector<32x64xbf16>, vector<8x64xf32> -> vector<8x64xf32>
    %c1_37 = arith.constant 1 : index
    %c0_38 = arith.constant 0 : index
    %c0_39 = arith.constant 0 : index
    %76 = vector.load %arg10[%c1_37, %c0_38, %c0_39] : memref<4x8x32xbf16, #tpu.memory_space<vmem>>, vector<1x8x32xbf16>
    %77 = vector.shape_cast %76 : vector<1x8x32xbf16> to vector<8x32xbf16>
    %cst_40 = arith.constant dense<0.000000e+00> : vector<8x64xf32>
    %78 = tpu.matmul %77, %72, %cst_40 {dimension_numbers = #tpu.dot_dimension_numbers<[1], [0], [0], [1], [0, 0, 1, 1], [], []>} : vector<8x32xbf16>, vector<32x64xbf16>, vector<8x64xf32> -> vector<8x64xf32>
    %c2 = arith.constant 2 : index
    %c0_41 = arith.constant 0 : index
    %c0_42 = arith.constant 0 : index
    %79 = vector.load %arg10[%c2, %c0_41, %c0_42] : memref<4x8x32xbf16, #tpu.memory_space<vmem>>, vector<1x8x32xbf16>
    %80 = vector.shape_cast %79 : vector<1x8x32xbf16> to vector<8x32xbf16>
    %cst_43 = arith.constant dense<0.000000e+00> : vector<8x64xf32>
    %81 = tpu.matmul %80, %72, %cst_43 {dimension_numbers = #tpu.dot_dimension_numbers<[1], [0], [0], [1], [0, 0, 1, 1], [], []>} : vector<8x32xbf16>, vector<32x64xbf16>, vector<8x64xf32> -> vector<8x64xf32>
    %c3 = arith.constant 3 : index
    %c0_44 = arith.constant 0 : index
    %c0_45 = arith.constant 0 : index
    %82 = vector.load %arg10[%c3, %c0_44, %c0_45] : memref<4x8x32xbf16, #tpu.memory_space<vmem>>, vector<1x8x32xbf16>
    %83 = vector.shape_cast %82 : vector<1x8x32xbf16> to vector<8x32xbf16>
    %cst_46 = arith.constant dense<0.000000e+00> : vector<8x64xf32>
    %84 = tpu.matmul %83, %72, %cst_46 {dimension_numbers = #tpu.dot_dimension_numbers<[1], [0], [0], [1], [0, 0, 1, 1], [], []>} : vector<8x32xbf16>, vector<32x64xbf16>, vector<8x64xf32> -> vector<8x64xf32>
    %85 = tpu.concatenate %75, %78, %81, %84 in 1 : vector<8x64xf32>, vector<8x64xf32>, vector<8x64xf32>, vector<8x64xf32> -> vector<8x256xf32>
    %86 = arith.truncf %85 : vector<8x256xf32> to vector<8x256xbf16>
    %c0_47 = arith.constant 0 : index
    %c0_48 = arith.constant 0 : index
    %87 = vector.load %arg11[%c0_47, %c0_48] : memref<256x128xbf16, #tpu.memory_space<vmem>>, vector<256x128xbf16>
    %cst_49 = arith.constant dense<0.000000e+00> : vector<8x128xf32>
    %88 = tpu.matmul %86, %87, %cst_49 {dimension_numbers = #tpu.dot_dimension_numbers<[1], [0], [0], [1], [0, 0, 1, 1], [], []>} : vector<8x256xbf16>, vector<256x128xbf16>, vector<8x128xf32> -> vector<8x128xf32>
    %c0_50 = arith.constant 0 : index
    %c0_51 = arith.constant 0 : index
    %89 = vector.load %arg12[%c0_50, %c0_51] : memref<1x128xf32, #tpu.memory_space<vmem>>, vector<1x128xf32>
    %90 = vector.broadcast %89 : vector<1x128xf32> to vector<8x128xf32>
    %91 = arith.addf %88, %90 : vector<8x128xf32>
    %cst_52 = arith.constant 0.000000e+00 : f32
    %92 = vector.broadcast %cst_52 : f32 to vector<8x128xf32>
    %93 = arith.maximumf %91, %92 : vector<8x128xf32>
    %94 = arith.truncf %93 : vector<8x128xf32> to vector<8x128xbf16>
    %c0_53 = arith.constant 0 : index
    %c0_54 = arith.constant 0 : index
    %95 = vector.load %arg13[%c0_53, %c0_54] : memref<128x128xbf16, #tpu.memory_space<vmem>>, vector<128x128xbf16>
    %cst_55 = arith.constant dense<0.000000e+00> : vector<8x128xf32>
    %96 = tpu.matmul %94, %95, %cst_55 {dimension_numbers = #tpu.dot_dimension_numbers<[1], [0], [0], [1], [0, 0, 1, 1], [], []>} : vector<8x128xbf16>, vector<128x128xbf16>, vector<8x128xf32> -> vector<8x128xf32>
    %c0_56 = arith.constant 0 : index
    %c0_57 = arith.constant 0 : index
    %97 = vector.load %arg14[%c0_56, %c0_57] : memref<1x128xf32, #tpu.memory_space<vmem>>, vector<1x128xf32>
    %98 = vector.broadcast %97 : vector<1x128xf32> to vector<8x128xf32>
    %99 = arith.addf %96, %98 : vector<8x128xf32>
    %cst_58 = arith.constant 0.000000e+00 : f32
    %100 = vector.broadcast %cst_58 : f32 to vector<8x128xf32>
    %101 = arith.maximumf %99, %100 : vector<8x128xf32>
    %102 = arith.truncf %101 : vector<8x128xf32> to vector<8x128xbf16>
    %c0_59 = arith.constant 0 : index
    %c0_60 = arith.constant 0 : index
    %103 = vector.load %arg15[%c0_59, %c0_60] : memref<128x128xbf16, #tpu.memory_space<vmem>>, vector<128x128xbf16>
    %cst_61 = arith.constant dense<0.000000e+00> : vector<8x128xf32>
    %104 = tpu.matmul %102, %103, %cst_61 {dimension_numbers = #tpu.dot_dimension_numbers<[1], [0], [0], [1], [0, 0, 1, 1], [], []>} : vector<8x128xbf16>, vector<128x128xbf16>, vector<8x128xf32> -> vector<8x128xf32>
    %c0_62 = arith.constant 0 : index
    %c0_63 = arith.constant 0 : index
    %105 = vector.load %arg16[%c0_62, %c0_63] : memref<1x128xf32, #tpu.memory_space<vmem>>, vector<1x128xf32>
    %106 = vector.broadcast %105 : vector<1x128xf32> to vector<8x128xf32>
    %107 = arith.addf %104, %106 : vector<8x128xf32>
    %c0_64 = arith.constant 0 : index
    %c0_65 = arith.constant 0 : index
    %108 = vector.load %arg17[%c0_64, %c0_65] : memref<8x128xf32, #tpu.memory_space<vmem>>, vector<8x128xf32>
    tpu.vector_store %arg17[%c0_64, %c0_65], %107 {strides = array<i32>} : memref<8x128xf32, #tpu.memory_space<vmem>>, vector<8x128xf32>,
    return
  }
  func.func @transform_0(%arg0: i32) -> (i32, i32) {
    %c0_i32 = arith.constant 0 : i32
    %c0_i32_0 = arith.constant 0 : i32
    return %arg0, %c0_i32 : i32, i32
  }
  func.func @transform_1(%arg0: i32) -> (i32, i32) {
    %c0_i32 = arith.constant 0 : i32
    %c0_i32_0 = arith.constant 0 : i32
    %c0_i32_1 = arith.constant 0 : i32
    return %c0_i32, %c0_i32_0 : i32, i32
  }
  func.func @transform_2(%arg0: i32) -> (i32, i32) {
    %c0_i32 = arith.constant 0 : i32
    %c0_i32_0 = arith.constant 0 : i32
    %c0_i32_1 = arith.constant 0 : i32
    return %c0_i32, %c0_i32_0 : i32, i32
  }
  func.func @transform_3(%arg0: i32) -> (i32, i32, i32) {
    %c0_i32 = arith.constant 0 : i32
    %c0_i32_0 = arith.constant 0 : i32
    %c0_i32_1 = arith.constant 0 : i32
    %c0_i32_2 = arith.constant 0 : i32
    return %c0_i32, %c0_i32_0, %c0_i32_1 : i32, i32, i32
  }
  func.func @transform_4(%arg0: i32) -> (i32, i32) {
    %c0_i32 = arith.constant 0 : i32
    %c0_i32_0 = arith.constant 0 : i32
    %c0_i32_1 = arith.constant 0 : i32
    return %c0_i32, %c0_i32_0 : i32, i32
  }
  func.func @transform_5(%arg0: i32) -> (i32, i32) {
    %c0_i32 = arith.constant 0 : i32
    %c0_i32_0 = arith.constant 0 : i32
    %c0_i32_1 = arith.constant 0 : i32
    return %c0_i32, %c0_i32_0 : i32, i32
  }
  func.func @transform_6(%arg0: i32) -> (i32, i32) {
    %c0_i32 = arith.constant 0 : i32
    %c0_i32_0 = arith.constant 0 : i32
    %c0_i32_1 = arith.constant 0 : i32
    return %c0_i32, %c0_i32_0 : i32, i32
  }
  func.func @transform_7(%arg0: i32) -> (i32, i32, i32) {
    %c0_i32 = arith.constant 0 : i32
    %c0_i32_0 = arith.constant 0 : i32
    %c0_i32_1 = arith.constant 0 : i32
    %c0_i32_2 = arith.constant 0 : i32
    return %c0_i32, %c0_i32_0, %c0_i32_1 : i32, i32, i32
  }
  func.func @transform_8(%arg0: i32) -> (i32, i32) {
    %c0_i32 = arith.constant 0 : i32
    %c0_i32_0 = arith.constant 0 : i32
    %c0_i32_1 = arith.constant 0 : i32
    return %c0_i32, %c0_i32_0 : i32, i32
  }
  func.func @transform_9(%arg0: i32) -> (i32, i32, i32) {
    %c0_i32 = arith.constant 0 : i32
    %c0_i32_0 = arith.constant 0 : i32
    %c0_i32_1 = arith.constant 0 : i32
    %c0_i32_2 = arith.constant 0 : i32
    return %c0_i32, %c0_i32_0, %c0_i32_1 : i32, i32, i32
  }
  func.func @transform_10(%arg0: i32) -> (i32, i32) {
    %c0_i32 = arith.constant 0 : i32
    %c0_i32_0 = arith.constant 0 : i32
    %c0_i32_1 = arith.constant 0 : i32
    return %c0_i32, %c0_i32_0 : i32, i32
  }
  func.func @transform_11(%arg0: i32) -> (i32, i32) {
    %c0_i32 = arith.constant 0 : i32
    %c0_i32_0 = arith.constant 0 : i32
    %c0_i32_1 = arith.constant 0 : i32
    return %c0_i32, %c0_i32_0 : i32, i32
  }
  func.func @transform_12(%arg0: i32) -> (i32, i32) {
    %c0_i32 = arith.constant 0 : i32
    %c0_i32_0 = arith.constant 0 : i32
    %c0_i32_1 = arith.constant 0 : i32
    return %c0_i32, %c0_i32_0 : i32, i32
  }
  func.func @transform_13(%arg0: i32) -> (i32, i32) {
    %c0_i32 = arith.constant 0 : i32
    %c0_i32_0 = arith.constant 0 : i32
    %c0_i32_1 = arith.constant 0 : i32
    return %c0_i32, %c0_i32_0 : i32, i32
  }
  func.func @transform_14(%arg0: i32) -> (i32, i32) {
    %c0_i32 = arith.constant 0 : i32
    %c0_i32_0 = arith.constant 0 : i32
    %c0_i32_1 = arith.constant 0 : i32
    return %c0_i32, %c0_i32_0 : i32, i32
  }
  func.func @transform_15(%arg0: i32) -> (i32, i32) {
    %c0_i32 = arith.constant 0 : i32
    %c0_i32_0 = arith.constant 0 : i32
    %c0_i32_1 = arith.constant 0 : i32
    return %c0_i32, %c0_i32_0 : i32, i32
  }
  func.func @transform_16(%arg0: i32) -> (i32, i32) {
    %c0_i32 = arith.constant 0 : i32
    %c0_i32_0 = arith.constant 0 : i32
    return %arg0, %c0_i32 : i32, i32
  }
}

</mosaic_0001>

<bundles_post_ra>
// kernel: _lambda_.1
= control target key start
LH: loop header
LB: loop body
LE: loop exit
PB: predicated region body
PF: predicated region fallthrough
CT: control target
= control target key end

     0   :  { %s5809_s0 = inlined_call_operand.vmem [shape: bf16[224,28], index: 0, kind: input, shape index: {}]   ;;  %s5810_s1 = inlined_call_operand.vmem [shape: bf16[140,144], index: 1, kind: input, shape index: {}]   ;;  %s5811_s2 = inlined_call_operand.vmem [shape: f32[1,144], index: 2, kind: input, shape index: {}]   ;;  %s5812_s3 = inlined_call_operand.vmem [shape: bf16[2,144,72], index: 3, kind: input, shape index: {}]   ;;  %s5813_s4 = inlined_call_operand.hbm [shape: bf16[96,224], index: 4, kind: input, shape index: {}]   ;;  %s5814_s5 = inlined_call_operand.vmem [shape: bf16[360,128], index: 5, kind: input, shape index: {}]   ;;  %s5815_s6 = inlined_call_operand.hbm [shape: f32[1,128], index: 6, kind: input, shape index: {}]   ;;  %s5816_s7 = inlined_call_operand.hbm [shape: bf16[2,128,64], index: 7, kind: input, shape index: {}]   ;;  %s5817_s8 = inlined_call_operand.hbm [shape: bf16[32,96], index: 8, kind: input, shape index: {}]   ;;  %s5818_s9 = inlined_call_operand.hbm [shape: bf16[4,8,32], index: 9, kind: input, shape index: {}]   ;;  %s5819_s10 = inlined_call_operand.vmem [shape: bf16[256,128], index: 10, kind: input, shape index: {}]   ;;  %s5820_s11 = inlined_call_operand.hbm [shape: f32[1,128], index: 11, kind: input, shape index: {}]   ;;  %s5821_s12 = inlined_call_operand.hbm [shape: bf16[128,128], index: 12, kind: input, shape index: {}]   ;;  %s5822_s13 = inlined_call_operand.hbm [shape: f32[1,128], index: 13, kind: input, shape index: {}]   ;;  %s5823_s14 = inlined_call_operand.vmem [shape: bf16[128,128], index: 14, kind: input, shape index: {}]   ;;  %s5824_s15 = inlined_call_operand.vmem [shape: f32[1,128], index: 15, kind: input, shape index: {}]   ;;  %s5825_s16 = inlined_call_operand.vmem [shape: f32[8,128], index: 16, kind: output, shape index: {}]  }
   0x1   :  { %5827 = sst [smem:[#allocation20_spill]] %s5809_s0 }
   0x2   :  { %21 = vsyncpa [#allocation3], 0 }
   0x3   :  { %22 = vsyncpa [#allocation5], 0 }
   0x4   :  { %23 = vsyncpa [#allocation8], 0 }
   0x5   :  { %24 = vsyncpa [#allocation11], 0  ;;  %s54_s23 = sshll.u32 %s5815_s6, 4  ;;  %s55_s23 = int_to_ptr.hbm [resolvable:$true] %s54_s23 }
   0x6   :  { %25 = vsyncpa [#allocation14], 0  ;;  %s4508_s24 = smov [#allocation4]   ;;  %s77_s28 = sshll.u32 %s5817_s8, 4  ;;  %s78_s28 = int_to_ptr.hbm [resolvable:$true] %s77_s28 }
   0x7   :  { %s56_s25 = sshll.u32 %s4508_s24, 4  ;;  %s4509_s29 = smov [#allocation7]   ;;  %s57_s25 = int_to_ptr.vmem [resolvable:$true] %s56_s25 }
   0x8   :  { %59 = dma.hbm_to_vmem [thread:$0]  %s55_s23, 16, %s57_s25, [#allocation5]  }
   0x9   :  { %s79_s30 = sshll.u32 %s4509_s29, 4  ;;  %s106_s18 = sshll.u32 %s5820_s11, 4  ;;  %s80_s30 = int_to_ptr.vmem [resolvable:$true] %s79_s30  ;;  %s107_s18 = int_to_ptr.hbm [resolvable:$true] %s106_s18 }
   0xa   :  { %s4510_s6 = smov 64   ;;  %s4511_s19 = smov 4  }
   0xb   :  { %85 = dma.hbm_to_vmem [thread:$0]  %s78_s28, 256, %s80_s30, [#allocation8], %s4510_s6, %s4510_s6, %s4511_s19  }
   0xc   :  { %s38_s22 = sshll.u32 %s5813_s4, 4  ;;  %s4512_s8 = smov [#allocation10]   ;;  %s39_s22 = int_to_ptr.hbm [resolvable:$true] %s38_s22 }
   0xd   :  { %s108_s23 = sshll.u32 %s4512_s8, 4  ;;  %s4513_s24 = smov [#allocation2]   ;;  %s109_s23 = int_to_ptr.vmem [resolvable:$true] %s108_s23 }
   0xe   :  { %111 = dma.hbm_to_vmem [thread:$0]  %s107_s18, 16, %s109_s23, [#allocation11]  }
   0xf   :  { %s40_s25 = sshll.u32 %s4513_s24, 4  ;;  %s4514_s11 = smov 128   ;;  %s41_s25 = int_to_ptr.vmem [resolvable:$true] %s40_s25 }
  0x10   :  { %s4515_s26 = smov 8   ;;  %s64_s0 = sshll.u32 %s5816_s7, 4  ;;  %s65_s0 = int_to_ptr.hbm [resolvable:$true] %s64_s0 }
  0x11   :  { %46 = dma.hbm_to_vmem [thread:$0]  %s39_s22, 1536, %s41_s25, [#allocation3], %s4514_s11, %s4514_s11, %s4515_s26  }
  0x12   :  { %s4516_s28 = smov [#allocation6]   ;;  %s90_s20 = sshll.u32 %s5818_s9, 4  ;;  %s91_s20 = int_to_ptr.hbm [resolvable:$true] %s90_s20 }
  0x13   :  { %s66_s30 = sshll.u32 %s4516_s28, 4  ;;  %s4517_s18 = smov [#allocation9]   ;;  %s67_s30 = int_to_ptr.vmem [resolvable:$true] %s66_s30 }
  0x14   :  { %72 = dma.hbm_to_vmem [thread:$0]  %s65_s0, 2048, %s67_s30, [#allocation5], %s4510_s6, %s4510_s6, %s4511_s19  }
  0x15   :  { %s92_s21 = sshll.u32 %s4517_s18, 4  ;;  %s116_s23 = sshll.u32 %s5821_s12, 4  ;;  %s93_s21 = int_to_ptr.vmem [resolvable:$true] %s92_s21  ;;  %s117_s23 = int_to_ptr.hbm [resolvable:$true] %s116_s23 }
  0x16   :  { %98 = dma.hbm_to_vmem [thread:$0]  %s91_s20, 256, %s93_s21, [#allocation8], %s4510_s6, %s4510_s6, %s4511_s19  }
  0x17   :  { %s130_s9 = sshll.u32 %s5822_s13, 4  ;;  %s4518_s25 = smov [#allocation12]   ;;  %s131_s9 = int_to_ptr.hbm [resolvable:$true] %s130_s9 }
  0x18   :  { %s118_s11 = sshll.u32 %s4518_s25, 4  ;;  %s4519_s26 = smov [#allocation13]   ;;  %s119_s11 = int_to_ptr.vmem [resolvable:$true] %s118_s11 }
  0x19   :  { %124 = dma.hbm_to_vmem [thread:$0]  %s117_s23, 1024, %s119_s11, [#allocation11], %s4510_s6, %s4510_s6, %s4511_s19  }
  0x1a   :  { %s132_s12 = sshll.u32 %s4519_s26, 4  ;;  %s133_s12 = int_to_ptr.vmem [resolvable:$true] %s132_s12 }
  0x1b   :  { %135 = dma.hbm_to_vmem [thread:$0]  %s131_s9, 16, %s133_s12, [#allocation14]  }
  0x1c   :  { %4498 = dma.done.wait [#allocation3], 1536  }
  0x1d   :  { %4499 = vsyncadd [#allocation3], 4294965760 }
  0x1e   :  { %4500 = dma.done.wait [#allocation5], 2064  }
  0x1f   :  { %4501 = vsyncadd [#allocation5], 4294965232 }
  0x20   :  { %4502 = dma.done.wait [#allocation8], 512  }
  0x21   :  { %4503 = vsyncadd [#allocation8], 4294966784 }
  0x22   :  { %4504 = dma.done.wait [#allocation11], 1040  }
  0x23   :  { %4505 = vsyncadd [#allocation11], 4294966256 }
  0x24   :  { %4506 = dma.done.wait [#allocation14], 16  }
  0x25   :  { %4507 = vsyncadd [#allocation14], 4294967280  ;;  %s5828_s29 = sld [smem:[#allocation20_spill]]  ;;  %vm271_vm0 = vsmask.f32 7424  ;;  %s4520_s4 = smov 28  }
  0x26   :  { %vm426_vm1 = vsmask.f32 6400  ;;  %s4521_s17 = smov 84   ;;  %vm393_vm2 = vcmask 1046528   ;;  %vm491_vm3 = vcmask 1045504   ;;  %s4522_s21 = smov 56  }
  0x27   :  { %s4523_s22 = smov 112   ;;  %vm640_vm4 = vcmask 228352   ;;  %vm669_vm5 = vcmask 457728   ;;  %vm882_vm6 = vcmask 97280   ;;  %vm698_vm7 = vcmask 687104   ;;  %vm5063_vm11 = vmand %vm393_vm2, %vm426_vm1  ;;  %s4525_s30 = smov 72  }
  0x28   :  { %vm727_vm8 = vcmask 916480   ;;  %vm390_vm9 = vcmask 1047552   ;;  %vm1389_vm12 = vcmask 130048   ;;  %vm2070_vm13 = vcmask 785408   ;;  %s4526_s20 = smov 88  }
  0x29   :  { %vm5051_vm10 = vmand %vm390_vm9, %vm271_vm0  ;;  %vm2637_vm14 = vcmask 1043456   ;;  %vm2377_vm15 = vcmask 588800  }
  0x2b   :  { %v4652_v0 = vld [vmem:[%s5828_s29] sm:$0xff]   ;;  %v4657_v1 = vld [vmem:[%s5828_s29 + $0x8] sm:$0xff]  ;;  %v4664_v4 = vld [vmem:[%s5828_s29 + $0x10] sm:$0xff] }
  0x2c   :  { %v273_v2 = vshrl.u32 %v4652_v0, 16  ;;  %v275_v3 = vshll.u32 %v4652_v0, 16  ;;  %v280_v5 = vshll.u32 %v4657_v1, 16  ;;  %v284_v6 = vshrl.u32 %v4657_v1, 16  ;;  %v4686_v32 = vld [vmem:[%s5828_s29 + $0x18] sm:$0xff]  ;;  %v4704_v46 = vld [vmem:[%s5828_s29 + $0x20] sm:$0xff] }
  0x2d   :  { %v288_v15 = vshll.u32 %v4664_v4, 16  ;;  %v394_v21 = vrot.slane %v4652_v0, 1  ;;  %v395_v22 = vrot.slane %v4657_v1, 1  ;;  %v292_v23 = vshrl.u32 %v4664_v4, 16  ;;  %v4720_v59 = vld [vmem:[%s5828_s29 + $0x28] sm:$0xff] }
  0x2e   :  { %v277_v7 = vrot.slane %v275_v3, 1  ;;  %v427_v8 = vrot.slane %v273_v2, 1  ;;  %v428_v9 = vrot.slane %v275_v3, 2  ;;  %v282_v10 = vrot.slane %v280_v5, 1 }
  0x2f   :  { %v430_v11 = vrot.slane %v284_v6, 1  ;;  %v431_v12 = vrot.slane %v280_v5, 2  ;;  %v290_v19 = vrot.slane %v288_v15, 1  ;;  %v492_v25 = vrot.slane %v4652_v0, 2 }
  0x30   :  { %v278_v13 = vor.u32 %v277_v7, %v273_v2  ;;  %v429_v14 = vor.u32 %v428_v9, %v427_v8  ;;  %v286_v17 = vor.u32 %v284_v6, %v282_v10  ;;  %v493_v26 = vrot.slane %v4657_v1, 2  ;;  %v3631_v6 = vld [vmem:[%s5810_s1 + $0x70] sm:$0xf]  ;;  %v4173_v7 = vld [vmem:[%s5810_s1 + $0x74] sm:$0xf0] }
  0x31   :  { %v432_v16 = vor.u32 %v431_v12, %v430_v11  ;;  %v396_v27 = vsel %vm393_vm2, %v394_v21, %v395_v22  ;;  %v434_v28 = vrot.slane %v292_v23, 1  ;;  %v435_v29 = vrot.slane %v288_v15, 2  ;;  %v4172_v8 = vld [vmem:[%s5810_s1 + $0x74] sm:$0xf]  ;;  %v3623_v11 = vld [vmem:[%s5810_s1 + $0x60] sm:$0xf] }
  0x32   :  { %v283_v18 = vsel %vm271_vm0, %v278_v13, %v282_v10  ;;  %v291_v24 = vsel %vm271_vm0, %v286_v17, %v290_v19  ;;  %v397_v30 = vrot.slane %v4664_v4, 1  ;;  %v494_v31 = vsel %vm491_vm3, %v492_v25, %v493_v26  ;;  %v3633_v10 = vld [vmem:[%s5810_s1 + $0x78] sm:$0xf0]  ;;  %v4171_v12 = vld [vmem:[%s5810_s1 + $0x64] sm:$0xf0]  ;;  %v4761_v25 = vld [vmem:[%s5828_s29 + $0x30] sm:$0xff] }
  0x33   :  { %525 = vrot.lane.b32.xlu0 %v283_v18, %s4520_s4  ;;  %v433_v20 = vsel %vm426_vm1, %v429_v14, %v432_v16  ;;  %527 = vrot.lane.b32.xlu2 %v291_v24, %s4520_s4  ;;  %v436_v34 = vor.u32 %v435_v29, %v434_v28  ;;  %v495_v35 = vrot.slane %v4664_v4, 2  ;;  %v296_v36 = vshll.u32 %v4686_v32, 16  ;;  %v3625_v17 = vld [vmem:[%s5810_s1 + $0x68] sm:$0xf0]  ;;  %v3615_v28 = vld [vmem:[%s5810_s1 + $0x50] sm:$0xf] }
  0x34   :  { %583 = vrot.lane.b32.xlu1 %v433_v20, %s4521_s17  ;;  %v398_v33 = vsel %vm393_vm2, %v395_v22, %v397_v30  ;;  %v300_v37 = vshrl.u32 %v4686_v32, 16  ;;  %v294_v38 = vor.u32 %v292_v23, %v290_v19  ;;  %v399_v45 = vrot.slane %v4686_v32, 1  ;;  %v4169_v29 = vld [vmem:[%s5810_s1 + $0x54] sm:$0xf0] }
  0x35   :  { %v437_v39 = vsel %vm426_vm1, %v432_v16, %v436_v34  ;;  %v298_v40 = vrot.slane %v296_v36, 1  ;;  %v496_v41 = vsel %vm491_vm3, %v493_v26, %v495_v35  ;;  %v439_v43 = vrot.slane %v296_v36, 2  ;;  %v4170_v16 = vld [vmem:[%s5810_s1 + $0x64] sm:$0xf]  ;;  %v4167_v36 = vld [vmem:[%s5810_s1 + $0x44] sm:$0xf0] }
  0x36   :  { %v438_v42 = vrot.slane %v300_v37, 1  ;;  %v400_v48 = vsel %vm393_vm2, %v397_v30, %v399_v45  ;;  %v304_v49 = vshll.u32 %v4704_v46, 16  ;;  %v497_v50 = vrot.slane %v4686_v32, 2  ;;  %v4168_v30 = vld [vmem:[%s5810_s1 + $0x54] sm:$0xf] }
  0x37   :  { %v299_v44 = vsel %vm271_vm0, %v294_v38, %v298_v40  ;;  %v308_v53 = vshrl.u32 %v4704_v46, 16  ;;  %v302_v54 = vor.u32 %v300_v37, %v298_v40  ;;  %v401_v58 = vrot.slane %v4704_v46, 1  ;;  %v4166_v40 = vld [vmem:[%s5810_s1 + $0x44] sm:$0xf] }
  0x38   :  { %v440_v47 = vor.u32 %v439_v43, %v438_v42  ;;  %v498_v52 = vsel %vm491_vm3, %v495_v35, %v497_v50  ;;  %v306_v55 = vrot.slane %v304_v49, 1  ;;  %v443_v57 = vrot.slane %v304_v49, 2  ;;  %v3607_v35 = vld [vmem:[%s5810_s1 + $0x40] sm:$0xf] }
  0x39   :  { %v442_v56 = vrot.slane %v308_v53, 1  ;;  %v402_v62 = vsel %vm393_vm2, %v399_v45, %v401_v58  ;;  %v312_v63 = vshll.u32 %v4720_v59, 16  ;;  %v499_v2 = vrot.slane %v4704_v46, 2  ;;  %v3599_v45 = vld [vmem:[%s5810_s1 + $0x30] sm:$0xf] }
  0x3a   :  { %v441_v51 = vsel %vm426_vm1, %v436_v34, %v440_v47  ;;  %v307_v60 = vsel %vm271_vm0, %v302_v54, %v306_v55  ;;  %v316_v3 = vshrl.u32 %v4720_v59, 16  ;;  %v3632_v9 = vor.u32 %v4173_v7, %v3631_v6  ;;  %v3617_v34 = vld [vmem:[%s5810_s1 + $0x58] sm:$0xf0] }
  0x3b   :  { %554 = vrot.lane.b32.xlu0 %v396_v27, %s4522_s21  ;;  %556 = vrot.lane.b32.xlu2 %v398_v33, %s4522_s21  ;;  %v444_v61 = vor.u32 %v443_v57, %v442_v56  ;;  %v310_v13 = vor.u32 %v308_v53, %v306_v55  ;;  %v314_v14 = vrot.slane %v312_v63, 1  ;;  %v3636_v15 = vor.u32 %v4172_v8, %v3633_v10 }
  0x3c   :  { %612 = vrot.lane.b32.xlu1 %v494_v31, %s4523_s22  ;;  %917 = vmatpush.bf16.msra.mxu0 %v3632_v9  ;;  %v3624_v18 = vor.u32 %v4171_v12, %v3623_v11  ;;  %v3628_v19 = vor.u32 %v4170_v16, %v3625_v17  ;;  %v500_v20 = vsel %vm491_vm3, %v497_v50, %v499_v2  ;;  %v446_v21 = vrot.slane %v316_v3, 1  ;;  %v4164_v50 = vld [vmem:[%s5810_s1 + $0x34] sm:$0xf]  ;;  %v4833_v9 = vld [vmem:[%s5828_s29 + $0x40] sm:$0xff] }
  0x3d   :  { %v445_v5 = vsel %vm426_vm1, %v440_v47, %v444_v61  ;;  %1075 = vmatpush.bf16.msra.mxu2 %v3636_v15  ;;  %v447_v22 = vrot.slane %v312_v63, 2  ;;  %v403_v23 = vrot.slane %v4720_v59, 1  ;;  %v315_v24 = vsel %vm271_vm0, %v310_v13, %v314_v14  ;;  %v4165_v47 = vld [vmem:[%s5810_s1 + $0x34] sm:$0xf0] }
  0x3e   :  { %v501_v26 = vrot.slane %v4720_v59, 2  ;;  %v3616_v33 = vor.u32 %v4169_v29, %v3615_v28  ;;  %v320_v37 = vshll.u32 %v4761_v25, 16  ;;  %v324_v38 = vshrl.u32 %v4761_v25, 16  ;;  %v3593_v29 = vld [vmem:[%s5810_s1 + $0x28] sm:$0xf0] }
  0x3f   :  { %v404_v27 = vsel %vm393_vm2, %v401_v58, %v403_v23  ;;  %v448_v31 = vor.u32 %v447_v22, %v446_v21  ;;  %v318_v42 = vor.u32 %v316_v3, %v314_v14  ;;  %v3608_v43 = vor.u32 %v4167_v36, %v3607_v35  ;;  %v3583_v36 = vld [vmem:[%s5810_s1 + $0x10] sm:$0xf] }
  0x40   :  { %918 = vmatpush.bf16.msra.mxu0 %v3624_v18  ;;  %v322_v49 = vrot.slane %v320_v37, 1  ;;  %v450_v53 = vrot.slane %v324_v38, 1  ;;  %v451_v54 = vrot.slane %v320_v37, 2  ;;  %v3600_v56 = vor.u32 %v4165_v47, %v3599_v45  ;;  %v4161_v37 = vld [vmem:[%s5810_s1 + $0x14] sm:$0xf0] }
  0x41   :  { %1076 = vmatpush.bf16.msra.mxu2 %v3628_v19  ;;  %v405_v58 = vrot.slane %v4761_v25, 1  ;;  %v336_v13 = vshll.u32 %v4833_v9, 16  ;;  %v340_v19 = vshrl.u32 %v4833_v9, 16  ;;  %v4174_v47 = vld [vmem:[%s5810_s1 + $0x84] sm:$0xf] }
  0x42   :  { %v323_v55 = vsel %vm271_vm0, %v318_v42, %v322_v49  ;;  %v326_v6 = vor.u32 %v324_v38, %v322_v49  ;;  %v4160_v38 = vld [vmem:[%s5810_s1 + $0x14] sm:$0xf]  ;;  %v3639_v42 = vld [vmem:[%s5810_s1 + $0x80] sm:$0xf] }
  0x43   :  { %585 = vrot.lane.b32.xlu0 %v437_v39, %s4521_s17  ;;  %529 = vrot.lane.b32.xlu2 %v299_v44, %s4520_s4  ;;  %v3620_v39 = vor.u32 %v4168_v30, %v3617_v34  ;;  %v4844_v16 = vrot.slane %v336_v13, 1  ;;  %v458_v22 = vrot.slane %v340_v19, 1  ;;  %v507_v34 = vrot.slane %v4833_v9, 2 }
  0x44   :  { %614 = vrot.lane.b32.xlu1 %v496_v41, %s4523_s22  ;;  %v3609_v41 = vld [vmem:[%s5810_s1 + $0x48] sm:$0xf0]  ;;  %919 = vmatpush.bf16.msra.mxu0 %v3616_v33 }
  0x45   :  { %1077 = vmatpush.bf16.msra.mxu2 %v3620_v39  ;;  %v3612_v44 = vor.u32 %v4166_v40, %v3609_v41  ;;  %v3584_v40 = vor.u32 %v4161_v37, %v3583_v36  ;;  %v3585_v41 = vld [vmem:[%s5810_s1 + $0x18] sm:$0xf0] }
  0x48   :  { %920 = vmatpush.bf16.msra.mxu0 %v3608_v43  ;;  %v4175_v43 = vld [vmem:[%s5810_s1 + $0x84] sm:$0x30] }
  0x49   :  { %1078 = vmatpush.bf16.msra.mxu2 %v3612_v44  ;;  %v3588_v44 = vor.u32 %v4160_v38, %v3585_v41  ;;  %v3640_v45 = vor.u32 %v4175_v43, %v3639_v42 }
  0x4b   :  { %558 = vrot.lane.b32.xlu0 %v400_v48, %s4522_s21  ;;  %616 = vrot.lane.b32.xlu2 %v498_v52, %s4523_s22  ;;  %v449_v48 = vsel %vm426_vm1, %v444_v61, %v448_v31  ;;  %v502_v52 = vsel %vm491_vm3, %v499_v2, %v501_v26  ;;  %v4817_v61 = vor.u32 %v451_v54, %v450_v53  ;;  %v503_v2 = vrot.slane %v4761_v25, 2  ;;  %v4159_v53 = vld [vmem:[%s5810_s1 + $0x4] sm:$0xf0] }
  0x4c   :  { %587 = vrot.lane.b32.xlu1 %v441_v51, %s4521_s17  ;;  %v3601_v51 = vld [vmem:[%s5810_s1 + $0x38] sm:$0xf0]  ;;  %921 = vmatpush.bf16.msra.mxu0 %v3600_v56  ;;  %v3577_v56 = vld [vmem:[%s5810_s1 + $0x8] sm:$0xf0] }
  0x4d   :  { %v3604_v57 = vor.u32 %v4164_v50, %v3601_v51  ;;  %v453_v3 = vsel %vm426_vm1, %v448_v31, %v4817_v61  ;;  %v912_v50 = vsel %vm491_vm3, %v3640_v45, 0 }
  0x4e   :  { %1003 = vmatpush.bf16.msra.mxu1 %v912_v50 }
  0x4f   :  { %1079 = vmatpush.bf16.msra.mxu2 %v3604_v57 }
  0x53   :  { %531 = vrot.lane.b32.xlu0 %v307_v60, %s4520_s4  ;;  %589 = vrot.lane.b32.xlu2 %v445_v5, %s4521_s17  ;;  %v4815_v60 = vld [vmem:[%s5828_s29 + $0x38] sm:$0xff]  ;;  %v504_v5 = vsel %vm491_vm3, %v501_v26, %v503_v2  ;;  %v4163_v26 = vld [vmem:[%s5810_s1 + $0x24] sm:$0xf0] }
  0x54   :  { %560 = vrot.lane.b32.xlu1 %v402_v62, %s4522_s21  ;;  %v406_v62 = vsel %vm393_vm2, %v403_v23, %v405_v58  ;;  %v328_v63 = vshll.u32 %v4815_v60, 16  ;;  %v407_v8 = vrot.slane %v4815_v60, 1  ;;  %v332_v12 = vshrl.u32 %v4815_v60, 16 }
  0x55   :  { %v505_v14 = vrot.slane %v4815_v60, 2  ;;  %v459_v23 = vrot.slane %v336_v13, 2  ;;  %v4934_v13 = vld [vmem:[%s5828_s29 + $0x50] sm:$0xff] }
  0x56   :  { %v330_v7 = vrot.slane %v328_v63, 1  ;;  %v408_v11 = vsel %vm393_vm2, %v405_v58, %v407_v8  ;;  %v455_v21 = vrot.slane %v328_v63, 2 }
  0x57   :  { %v506_v17 = vsel %vm491_vm3, %v503_v2, %v505_v14  ;;  %v460_v31 = vor.u32 %v459_v23, %v458_v22  ;;  %v508_v39 = vsel %vm491_vm3, %v505_v14, %v507_v34  ;;  %v511_v23 = vrot.slane %v4934_v13, 2 }
  0x58   :  { %v331_v10 = vsel %vm271_vm0, %v326_v6, %v330_v7  ;;  %v334_v15 = vor.u32 %v332_v12, %v330_v7 }
  0x5a   :  { %v339_v18 = vsel %vm271_vm0, %v334_v15, %v4844_v16  ;;  %v352_v15 = vshll.u32 %v4934_v13, 16 }
  0x5b   :  { %618 = vrot.lane.b32.xlu0 %v500_v20, %s4523_s22  ;;  %562 = vrot.lane.b32.xlu2 %v404_v27, %s4522_s21  ;;  %v454_v20 = vrot.slane %v332_v12, 1  ;;  %v4162_v27 = vld [vmem:[%s5810_s1 + $0x24] sm:$0xf] }
  0x5c   :  { %533 = vrot.lane.b32.xlu1 %v315_v24, %s4520_s4  ;;  %v3591_v24 = vld [vmem:[%s5810_s1 + $0x20] sm:$0xf]  ;;  %v3596_v33 = vor.u32 %v4162_v27, %v3593_v29  ;;  %v467_v45 = vrot.slane %v352_v15, 2 }
  0x5d   :  { %v3592_v28 = vor.u32 %v4163_v26, %v3591_v24  ;;  %v456_v30 = vor.u32 %v455_v21, %v454_v20  ;;  %v342_v21 = vor.u32 %v340_v19, %v4844_v16  ;;  %v4948_v24 = vld [vmem:[%s5828_s29 + $0x58] sm:$0xff]  ;;  %v356_v26 = vshrl.u32 %v4934_v13, 16 }
  0x5e   :  { %1080 = vmatpush.bf16.msra.mxu2 %v3596_v33  ;;  %v360_v16 = vshll.u32 %v4948_v24, 16  ;;  %v364_v43 = vshrl.u32 %v4948_v24, 16 }
  0x5f   :  { %922 = vmatpush.bf16.msra.mxu0 %v3592_v28  ;;  %v461_v35 = vsel %vm426_vm1, %v456_v30, %v460_v31  ;;  %v457_v58 = vsel %vm426_vm1, %v4817_v61, %v456_v30 }
  0x60   :  { %v4959_v33 = vrot.slane %v360_v16, 1 }
  0x62   :  { %1081 = vmatpush.bf16.msra.mxu2 %v3588_v44  ;;  %v466_v44 = vrot.slane %v356_v26, 1 }
  0x63   :  { %591 = vrot.lane.b32.xlu0 %v449_v48, %s4521_s17  ;;  %535 = vrot.lane.b32.xlu2 %v323_v55, %s4520_s4  ;;  %v3641_v48 = vld [vmem:[%s5810_s1 + $0x88] sm:$0x30]  ;;  %v4158_v55 = vld [vmem:[%s5810_s1 + $0x4] sm:$0xf] }
  0x64   :  { %620 = vrot.lane.b32.xlu1 %v502_v52, %s4523_s22  ;;  %v3644_v49 = vor.u32 %v4174_v47, %v3641_v48  ;;  %923 = vmatpush.bf16.msra.mxu0 %v3584_v40  ;;  %v3575_v52 = vld [vmem:[%s5810_s1] sm:$0xf]  ;;  %v3580_v57 = vor.u32 %v4158_v55, %v3577_v56  ;;  %v471_v47 = vrot.slane %v360_v16, 2  ;;  %v513_v48 = vrot.slane %v4948_v24, 2  ;;  %s4527_s1 = smov 32  }
  0x65   :  { %v3576_v54 = vor.u32 %v4159_v53, %v3575_v52  ;;  %v468_v50 = vor.u32 %v467_v45, %v466_v44 }
  0x66   :  { %v915_v51 = vsel %vm491_vm3, %v3644_v49, 0  ;;  %1082 = vmatpush.bf16.msra.mxu2 %v3580_v57  ;;  %v470_v49 = vrot.slane %v364_v43, 1 }
  0x67   :  { %1161 = vmatpush.bf16.msra.mxu3 %v915_v51  ;;  %v514_v51 = vsel %vm491_vm3, %v511_v23, %v513_v48 }
  0x68   :  { %924 = vmatpush.bf16.msra.mxu0 %v3576_v54  ;;  %v472_v52 = vor.u32 %v471_v47, %v470_v49 }
  0x6a   :  { %v473_v54 = vsel %vm426_vm1, %v468_v50, %v472_v52 }
  0x6b   :  { %564 = vrot.lane.b32.xlu0 %v406_v62, %s4522_s21  ;;  %622 = vrot.lane.b32.xlu2 %v504_v5, %s4523_s22  ;;  %v4916_v62 = vld [vmem:[%s5828_s29 + $0x48] sm:$0xff] }
  0x6c   :  { %593 = vrot.lane.b32.xlu1 %v453_v3, %s4521_s17  ;;  %v344_v63 = vshll.u32 %v4916_v62, 16  ;;  %v348_v2 = vshrl.u32 %v4916_v62, 16  ;;  %v409_v3 = vrot.slane %v4833_v9, 1  ;;  %v411_v5 = vrot.slane %v4916_v62, 1 }
  0x6d   :  { %v509_v22 = vrot.slane %v4916_v62, 2 }
  0x6e   :  { %v462_v6 = vrot.slane %v348_v2, 1  ;;  %v463_v7 = vrot.slane %v344_v63, 2  ;;  %v412_v61 = vsel %vm393_vm2, %v409_v3, %v411_v5  ;;  %v410_v12 = vsel %vm393_vm2, %v407_v8, %v409_v3  ;;  %v4993_v3 = vld [vmem:[%s5828_s29 + $0x60] sm:$0xff] }
  0x6f   :  { %v346_v14 = vrot.slane %v344_v63, 1  ;;  %v413_v8 = vrot.slane %v4934_v13, 1  ;;  %v512_v29 = vsel %vm491_vm3, %v509_v22, %v511_v23 }
  0x71   :  { %v414_v27 = vsel %vm393_vm2, %v411_v5, %v413_v8  ;;  %v347_v28 = vsel %vm271_vm0, %v342_v21, %v346_v14  ;;  %v368_v5 = vshll.u32 %v4993_v3, 16 }
  0x73   :  { %537 = vrot.lane.b32.xlu0 %v331_v10, %s4520_s4  ;;  %595 = vrot.lane.b32.xlu2 %v457_v58, %s4521_s17  ;;  %v464_v10 = vor.u32 %v463_v7, %v462_v6  ;;  %v372_v6 = vshrl.u32 %v4993_v3, 16  ;;  %v415_v7 = vrot.slane %v4948_v24, 1 }
  0x74   :  { %566 = vrot.lane.b32.xlu1 %v408_v11, %s4522_s21 }
  0x75   :  { %v465_v11 = vsel %vm426_vm1, %v460_v31, %v464_v10  ;;  %v469_v53 = vsel %vm426_vm1, %v464_v10, %v468_v50  ;;  %v5005_v10 = vld [vmem:[%s5828_s29 + $0x68] sm:$0xff] }
  0x76   :  { %v380_v49 = vshrl.u32 %v5005_v10, 16 }
  0x7b   :  { %624 = vrot.lane.b32.xlu0 %v506_v17, %s4523_s22  ;;  %568 = vrot.lane.b32.xlu2 %v410_v12, %s4522_s21  ;;  %v350_v17 = vor.u32 %v348_v2, %v346_v14  ;;  %v475_v12 = vrot.slane %v368_v5, 2  ;;  %v370_v14 = vrot.slane %v368_v5, 1 }
  0x7c   :  { %539 = vrot.lane.b32.xlu1 %v339_v18, %s4520_s4  ;;  %v354_v18 = vrot.slane %v352_v15, 1 }
  0x7e   :  { %v355_v20 = vsel %vm271_vm0, %v350_v17, %v354_v18  ;;  %v358_v30 = vor.u32 %v356_v26, %v354_v18  ;;  %v416_v18 = vsel %vm393_vm2, %v413_v8, %v415_v7 }
  0x80   :  { %v363_v36 = vsel %vm271_vm0, %v358_v30, %v4959_v33 }
  0x83   :  { %597 = vrot.lane.b32.xlu0 %v461_v35, %s4521_s17  ;;  %541 = vrot.lane.b32.xlu2 %v347_v28, %s4520_s4  ;;  %v510_v35 = vsel %vm491_vm3, %v507_v34, %v509_v22  ;;  %v374_v22 = vor.u32 %v372_v6, %v370_v14 }
  0x84   :  { %626 = vrot.lane.b32.xlu1 %v508_v39, %s4523_s22 }
  0x8b   :  { %570 = vrot.lane.b32.xlu0 %v412_v61, %s4522_s21  ;;  %628 = vrot.lane.b32.xlu2 %v510_v35, %s4523_s22  ;;  %v417_v61 = vrot.slane %v4993_v3, 1  ;;  %v366_v35 = vor.u32 %v364_v43, %v4959_v33 }
  0x8c   :  { %599 = vrot.lane.b32.xlu1 %v465_v11, %s4521_s17  ;;  %v474_v11 = vrot.slane %v372_v6, 1 }
  0x8d   :  { %v528_v39 = vpop.permute.xlu2 %527  ;;  %v418_v17 = vsel %vm393_vm2, %v415_v7, %v417_v61 }
  0x8e   :  { %v644_v55 = vsel %vm640_vm4, %v4657_v1, %v528_v39  ;;  %v5013_v21 = vor.u32 %v475_v12, %v474_v11 }
  0x90   :  { %v477_v26 = vsel %vm426_vm1, %v472_v52, %v5013_v21 }
  0x93   :  { %543 = vrot.lane.b32.xlu0 %v355_v20, %s4520_s4  ;;  %601 = vrot.lane.b32.xlu2 %v469_v53, %s4521_s17  ;;  %v376_v20 = vshll.u32 %v5005_v10, 16 }
  0x94   :  { %572 = vrot.lane.b32.xlu1 %v414_v27, %s4522_s21 }
  0x95   :  { %v557_v56 = vpop.permute.xlu2 %556  ;;  %v378_v23 = vrot.slane %v376_v20, 1 }
  0x96   :  { %v673_v57 = vsel %vm669_vm5, %v644_v55, %v557_v56  ;;  %v478_v56 = vrot.slane %v380_v49, 1 }
  0x97   :  { %v379_v8 = vsel %vm271_vm0, %v374_v22, %v378_v23 }
  0x9b   :  { %630 = vrot.lane.b32.xlu0 %v512_v29, %s4523_s22  ;;  %574 = vrot.lane.b32.xlu2 %v416_v18, %s4522_s21 }
  0x9c   :  { %545 = vrot.lane.b32.xlu1 %v363_v36, %s4520_s4  ;;  %v515_v36 = vrot.slane %v4993_v3, 2 }
  0x9d   :  { %v530_v15 = vpop.permute.xlu2 %529 }
  0x9e   :  { %v646_v27 = vsel %vm640_vm4, %v4664_v4, %v530_v15  ;;  %v419_v4 = vrot.slane %v5005_v10, 1  ;;  %v516_v43 = vsel %vm491_vm3, %v513_v48, %v515_v36 }
  0xa0   :  { %v420_v39 = vsel %vm393_vm2, %v417_v61, %v419_v4 }
  0xa3   :  { %603 = vrot.lane.b32.xlu0 %v473_v54, %s4521_s17 }
  0xa4   :  { %632 = vrot.lane.b32.xlu1 %v514_v51, %s4523_s22 }
  0xa5   :  { %v526_v19 = vpop.permute.xlu0 %525  ;;  %v617_v30 = vpop.permute.xlu2 %616 }
  0xa6   :  { %v584_v31 = vpop.permute.xlu1 %583  ;;  %v642_v37 = vsel %vm640_vm4, %v4652_v0, %v526_v19 }
  0xab   :  { %576 = vrot.lane.b32.xlu0 %v418_v17, %s4522_s21 }
  0xac   :  { %605 = vrot.lane.b32.xlu1 %v477_v26, %s4521_s17 }
  0xad   :  { %v555_v38 = vpop.permute.xlu0 %554  ;;  %v590_v47 = vpop.permute.xlu2 %589 }
  0xae   :  { %v671_v40 = vsel %vm669_vm5, %v642_v37, %v555_v38  ;;  %v613_v34 = vpop.permute.xlu1 %612  ;;  %v517_v37 = vrot.slane %v5005_v10, 2 }
  0xaf   :  { %3645 = vmatmul.msk.bf16.vlgmr.msra.gmra.mxu1 %vm882_vm6, %v613_v34  ;;  %3659 = vmatmul.msk.bf16.vlgmr.msra.gmra.mxu3 %vm882_vm6, %v613_v34  ;;  %v700_v41 = vsel %vm698_vm7, %v671_v40, %v584_v31  ;;  %v371_v40 = vsel %vm271_vm0, %v366_v35, %v370_v14 }
  0xb0   :  { %v729_v42 = vsel %vm727_vm8, %v700_v41, %v613_v34  ;;  %v518_v34 = vsel %vm491_vm3, %v515_v36, %v517_v37  ;;  %547 = vrot.lane.b32.xlu2 %v371_v40, %s4520_s4 }
  0xb1   :  { %925 = vmatmul.bf16.vlgmr.msra.gmra.mxu0 %v729_v42  ;;  %1083 = vmatmul.bf16.vlgmr.msra.gmra.mxu2 %v729_v42  ;;  %v4280_v42 = vunpack.c.l.b16 %v4652_v0 }
  0xb3   :  { %549 = vrot.lane.b32.xlu0 %v379_v8, %s4520_s4  ;;  %v384_v44 = vpack.c.b16 %v4280_v42, %v4280_v42 }
  0xb4   :  { %578 = vrot.lane.b32.xlu1 %v420_v39, %s4522_s21 }
  0xb5   :  { %v586_v58 = vpop.permute.xlu0 %585  ;;  %v386_v50 = vshll.u32 %v384_v44, 16  ;;  %v483_v55 = vshrl.u32 %v384_v44, 16  ;;  %v563_v15 = vpop.permute.xlu2 %562 }
  0xb6   :  { %v702_v63 = vsel %vm698_vm7, %v673_v57, %v586_v58  ;;  %v615_v2 = vpop.permute.xlu1 %614  ;;  %v479_v57 = vrot.slane %v376_v20, 2 }
  0xb7   :  { %v732_v1 = vsel %vm727_vm8, %v702_v63, %v615_v2  ;;  %v388_v53 = vrot.slane %v386_v50, 1  ;;  %v486_v58 = vrot.slane %v386_v50, 2  ;;  %v519_v63 = vrot.slane %v384_v44, 2 }
  0xb8   :  { %634 = vrot.lane.b32.xlu2 %v516_v43, %s4523_s22  ;;  %v480_v5 = vor.u32 %v479_v57, %v478_v56 }
  0xb9   :  { %v523_v61 = vsel %vm491_vm3, %v517_v37, %v519_v63 }
  0xba   :  { %v481_v11 = vsel %vm426_vm1, %v5013_v21, %v480_v5 }
  0xbb   :  { %636 = vrot.lane.b32.xlu0 %v518_v34, %s4523_s22 }
  0xbd   :  { %v559_v28 = vpop.permute.xlu0 %558 }
  0xbe   :  { %v675_v16 = vsel %vm669_vm5, %v646_v27, %v559_v28  ;;  %v588_v19 = vpop.permute.xlu1 %587 }
  0xbf   :  { %3646 = vmatmul.msk.bf16.gmra.mxu1 %vm882_vm6, %v615_v2  ;;  %3660 = vmatmul.msk.bf16.gmra.mxu3 %vm882_vm6, %v615_v2  ;;  %v704_v29 = vsel %vm698_vm7, %v675_v16, %v588_v19  ;;  %v485_v2 = vrot.slane %v483_v55, 1 }
  0xc0   :  { %v735_v31 = vsel %vm727_vm8, %v704_v29, %v617_v30  ;;  %607 = vrot.lane.b32.xlu2 %v481_v11, %s4521_s17 }
  0xc1   :  { %930 = vmatmul.bf16.gmra.mxu0 %v732_v1  ;;  %1088 = vmatmul.bf16.gmra.mxu2 %v732_v1  ;;  %v487_v7 = vor.u32 %v486_v58, %v485_v2 }
  0xc3   :  { %v490_v12 = vsel %vm5063_vm11, %v480_v5, %v487_v7 }
  0xc4   :  { %609 = vrot.lane.b32.xlu0 %v490_v12, %s4521_s17 }
  0xc5   :  { %v532_v38 = vpop.permute.xlu0 %531 }
  0xc6   :  { %v648_v33 = vsel %vm640_vm4, %v4686_v32, %v532_v38  ;;  %v561_v41 = vpop.permute.xlu1 %560  ;;  %v382_v32 = vor.u32 %v380_v49, %v378_v23  ;;  %v536_v23 = vpop.permute.xlu2 %535  ;;  %v788_v49 = vld [vmem:[%s5811_s2] sm:$0x3] }
  0xc7   :  { %v677_v45 = vsel %vm669_vm5, %v648_v33, %v561_v41  ;;  %v652_v27 = vsel %vm640_vm4, %v4720_v59, %v536_v23  ;;  %v5120_v57 = vperm.slane %v788_v49, 1 }
  0xc8   :  { %v706_v51 = vsel %vm698_vm7, %v677_v45, %v590_v47  ;;  %v392_v48 = vsel %vm5051_vm10, %v382_v32, %v388_v53 }
  0xc9   :  { %551 = vrot.lane.b32.xlu1 %v392_v48, %s4520_s4 }
  0xcd   :  { %v619_v52 = vpop.permute.xlu0 %618 }
  0xce   :  { %v738_v54 = vsel %vm727_vm8, %v706_v51, %v619_v52  ;;  %v534_v1 = vpop.permute.xlu1 %533  ;;  %v623_v29 = vpop.permute.xlu2 %622 }
  0xcf   :  { %3647 = vmatmul.msk.bf16.gmra.mxu1 %vm882_vm6, %v617_v30  ;;  %3661 = vmatmul.msk.bf16.gmra.mxu3 %vm882_vm6, %v617_v30  ;;  %v650_v14 = vsel %vm640_vm4, %v4704_v46, %v534_v1  ;;  %v421_v46 = vrot.slane %v384_v44, 1 }
  0xd0   :  { %v679_v17 = vsel %vm669_vm5, %v650_v14, %v563_v15 }
  0xd1   :  { %935 = vmatmul.bf16.gmra.mxu0 %v735_v31  ;;  %1093 = vmatmul.bf16.gmra.mxu2 %v735_v31  ;;  %v425_v26 = vsel %vm393_vm2, %v419_v4, %v421_v46 }
  0xd2   :  { %638 = vrot.lane.b32.xlu1 %v523_v61, %s4523_s22  ;;  %580 = vrot.lane.b32.xlu2 %v425_v26, %s4522_s21 }
  0xd5   :  { %v592_v18 = vpop.permute.xlu0 %591 }
  0xd6   :  { %v708_v20 = vsel %vm698_vm7, %v679_v17, %v592_v18  ;;  %v621_v22 = vpop.permute.xlu1 %620  ;;  %v596_v36 = vpop.permute.xlu2 %595 }
  0xd7   :  { %v741_v21 = vsel %vm727_vm8, %v708_v20, %v621_v22 }
  0xdd   :  { %v565_v28 = vpop.permute.xlu0 %564 }
  0xde   :  { %v681_v8 = vsel %vm669_vm5, %v652_v27, %v565_v28  ;;  %v594_v16 = vpop.permute.xlu1 %593 }
  0xdf   :  { %3648 = vmatmul.msk.bf16.gmra.mxu1 %vm882_vm6, %v619_v52  ;;  %3662 = vmatmul.msk.bf16.gmra.mxu3 %vm882_vm6, %v619_v52  ;;  %v710_v19 = vsel %vm698_vm7, %v681_v8, %v594_v16  ;;  %v5113_v52 = vperm.slane %v788_v49, 0 }
  0xe0   :  { %v744_v30 = vsel %vm727_vm8, %v710_v19, %v623_v29 }
  0xe1   :  { %940 = vmatmul.bf16.gmra.mxu0 %v738_v54  ;;  %1098 = vmatmul.bf16.gmra.mxu2 %v738_v54 }
  0xe5   :  { %v538_v31 = vpop.permute.xlu0 %537 }
  0xe6   :  { %v654_v4 = vsel %vm640_vm4, %v4761_v25, %v538_v31  ;;  %v567_v59 = vpop.permute.xlu1 %566  ;;  %v569_v25 = vpop.permute.xlu2 %568 }
  0xe7   :  { %v683_v35 = vsel %vm669_vm5, %v654_v4, %v567_v59 }
  0xe8   :  { %v712_v37 = vsel %vm698_vm7, %v683_v35, %v596_v36 }
  0xed   :  { %v625_v38 = vpop.permute.xlu0 %624 }
  0xee   :  { %v747_v39 = vsel %vm727_vm8, %v712_v37, %v625_v38  ;;  %v540_v40 = vpop.permute.xlu1 %539  ;;  %v542_v45 = vpop.permute.xlu2 %541 }
  0xef   :  { %3649 = vmatmul.msk.bf16.gmra.mxu1 %vm882_vm6, %v621_v22  ;;  %3663 = vmatmul.msk.bf16.gmra.mxu3 %vm882_vm6, %v621_v22  ;;  %v656_v34 = vsel %vm640_vm4, %v4815_v60, %v540_v40  ;;  %v658_v47 = vsel %vm640_vm4, %v4833_v9, %v542_v45 }
  0xf0   :  { %v685_v33 = vsel %vm669_vm5, %v656_v34, %v569_v25 }
  0xf1   :  { %945 = vmatmul.bf16.gmra.mxu0 %v741_v21  ;;  %1103 = vmatmul.bf16.gmra.mxu2 %v741_v21 }
  0xf5   :  { %v598_v41 = vpop.permute.xlu0 %597 }
  0xf6   :  { %v714_v42 = vsel %vm698_vm7, %v685_v33, %v598_v41  ;;  %v627_v43 = vpop.permute.xlu1 %626  ;;  %v629_v48 = vpop.permute.xlu2 %628 }
  0xf7   :  { %v750_v44 = vsel %vm727_vm8, %v714_v42, %v627_v43 }
  0xfd   :  { %v571_v60 = vpop.permute.xlu0 %570 }
  0xfe   :  { %v687_v50 = vsel %vm669_vm5, %v658_v47, %v571_v60  ;;  %v600_v51 = vpop.permute.xlu1 %599  ;;  %v602_v18 = vpop.permute.xlu2 %601 }
  0xff   :  { %3650 = vmatmul.msk.bf16.gmra.mxu1 %vm882_vm6, %v623_v29  ;;  %3664 = vmatmul.msk.bf16.gmra.mxu3 %vm882_vm6, %v623_v29  ;;  %v716_v53 = vsel %vm698_vm7, %v687_v50, %v600_v51 }
 0x100   :  { %v753_v9 = vsel %vm727_vm8, %v716_v53, %v629_v48 }
 0x101   :  { %950 = vmatmul.bf16.gmra.mxu0 %v744_v30  ;;  %1108 = vmatmul.bf16.gmra.mxu2 %v744_v30 }
 0x105   :  { %v544_v63 = vpop.permute.xlu0 %543 }
 0x106   :  { %v660_v61 = vsel %vm640_vm4, %v4916_v62, %v544_v63  ;;  %v573_v14 = vpop.permute.xlu1 %572  ;;  %v575_v41 = vpop.permute.xlu2 %574 }
 0x107   :  { %v689_v17 = vsel %vm669_vm5, %v660_v61, %v573_v14 }
 0x108   :  { %v718_v27 = vsel %vm698_vm7, %v689_v17, %v602_v18 }
 0x10d   :  { %v631_v28 = vpop.permute.xlu0 %630 }
 0x10e   :  { %v756_v29 = vsel %vm727_vm8, %v718_v27, %v631_v28  ;;  %v546_v36 = vpop.permute.xlu1 %545  ;;  %v4190_v27 = vld [vmem:[%s5812_s3 + $0x70] sm:$0xff] }
 0x10f   :  { %3651 = vmatmul.msk.bf16.gmra.mxu1 %vm882_vm6, %v625_v38  ;;  %3665 = vmatmul.msk.bf16.gmra.mxu3 %vm882_vm6, %v625_v38  ;;  %v662_v34 = vsel %vm640_vm4, %v4934_v13, %v546_v36  ;;  %v4189_v36 = vld [vmem:[%s5812_s3 + $0x68] sm:$0xff] }
 0x111   :  { %955 = vmatmul.bf16.gmra.mxu0 %v747_v39  ;;  %1113 = vmatmul.bf16.gmra.mxu2 %v747_v39 }
 0x11f   :  { %3652 = vmatmul.msk.bf16.gmra.mxu1 %vm882_vm6, %v627_v43  ;;  %3666 = vmatmul.msk.bf16.gmra.mxu3 %vm882_vm6, %v627_v43  ;;  %v691_v43 = vsel %vm669_vm5, %v662_v34, %v575_v41 }
 0x121   :  { %960 = vmatmul.bf16.gmra.mxu0 %v750_v44  ;;  %1118 = vmatmul.bf16.gmra.mxu2 %v750_v44  ;;  %v604_v44 = vpop.permute.xlu0 %603 }
 0x122   :  { %v720_v51 = vsel %vm698_vm7, %v691_v43, %v604_v44  ;;  %v4188_v43 = vld [vmem:[%s5812_s3 + $0x60] sm:$0xff] }
 0x12c   :  { %v1005_v32 = vpop.f32.mrf.mxu1 }
 0x12e   :  { %v926_v54 = vpop.f32.mrf.mxu0 }
 0x12f   :  { %v927_v55 = vadd.f32 %v926_v54, %v5113_v52  ;;  %3653 = vmatmul.msk.bf16.gmra.mxu1 %vm882_vm6, %v629_v48  ;;  %3667 = vmatmul.msk.bf16.gmra.mxu3 %vm882_vm6, %v629_v48  ;;  %v4183_v54 = vld [vmem:[%s5812_s3 + $0x38] sm:$0xff] }
 0x130   :  { %1432 = vmatpush.bf16.msrb.mxu1 %v4183_v54 }
 0x131   :  { %v1006_v56 = vadd.f32 %v1005_v32, %v927_v55  ;;  %965 = vmatmul.bf16.gmra.mxu0 %v753_v9  ;;  %1123 = vmatmul.bf16.gmra.mxu2 %v753_v9  ;;  %v633_v32 = vpop.permute.xlu1 %632 }
 0x132   :  { %v1163_v58 = vpop.f32.mrf.mxu3 }
 0x133   :  { %v1233_v22 = vmax.f32 %v1006_v56, 0.0  ;;  %v759_v56 = vsel %vm727_vm8, %v720_v51, %v633_v32 }
 0x134   :  { %v1084_v2 = vpop.f32.mrf.mxu2  ;;  %v1007_v1 = vpop.f32.mrf.mxu1 }
 0x135   :  { %v1085_v5 = vadd.f32 %v1084_v2, %v5120_v57 }
 0x136   :  { %v928_v7 = vpop.f32.mrf.mxu0 }
 0x137   :  { %v1164_v11 = vadd.f32 %v1163_v58, %v1085_v5  ;;  %v929_v12 = vadd.f32 %v928_v7, %v5113_v52  ;;  %v4192_v58 = vld [vmem:[%s5812_s3 + $0x80] sm:$0xff]  ;;  %v4182_v7 = vld [vmem:[%s5812_s3 + $0x30] sm:$0xff] }
 0x138   :  { %1663 = vmatpush.bf16.msrb.mxu0 %v4192_v58  ;;  %1433 = vmatpush.bf16.msrb.mxu1 %v4182_v7 }
 0x139   :  { %v1008_v15 = vadd.f32 %v1007_v1, %v929_v12  ;;  %v1234_v30 = vmax.f32 %v1164_v11, 0.0  ;;  %v548_v11 = vpop.permute.xlu2 %547 }
 0x13a   :  { %v1165_v20 = vpop.f32.mrf.mxu3 }
 0x13b   :  { %v1235_v21 = vmax.f32 %v1008_v15, 0.0  ;;  %v4191_v15 = vld [vmem:[%s5812_s3 + $0x78] sm:$0xff] }
 0x13c   :  { %v1086_v46 = vpop.f32.mrf.mxu2  ;;  %v1010_v23 = vpop.f32.mrf.mxu1  ;;  %1664 = vmatpush.bf16.msrb.mxu0 %v4191_v15 }
 0x13d   :  { %v5127_v26 = vpack.c.bf16 %v1235_v21, %v1233_v22  ;;  %v1087_v62 = vadd.f32 %v1086_v46, %v5120_v57  ;;  %v664_v22 = vsel %vm640_vm4, %v4948_v24, %v548_v11 }
 0x13e   :  { %v931_v8 = vpop.f32.mrf.mxu0 }
 0x13f   :  { %v1166_v16 = vadd.f32 %v1165_v20, %v1087_v62  ;;  %v932_v19 = vadd.f32 %v931_v8, %v5113_v52  ;;  %3654 = vmatmul.msk.bf16.gmra.mxu1 %vm882_vm6, %v631_v28  ;;  %3668 = vmatmul.msk.bf16.gmra.mxu3 %vm882_vm6, %v631_v28  ;;  %v4181_v20 = vld [vmem:[%s5812_s3 + $0x28] sm:$0xff]  ;;  %v606_v8 = vpop.permute.xlu1 %605 }
 0x140   :  { %1434 = vmatpush.bf16.msrb.mxu1 %v4181_v20  ;;  %1665 = vmatpush.bf16.msrb.mxu0 %v4190_v27  ;;  %v4185_v20 = vld [vmem:[%s5812_s3 + $0x48] sm:$0xff] }
 0x141   :  { %v1236_v31 = vmax.f32 %v1166_v16, 0.0  ;;  %v1011_v4 = vadd.f32 %v1010_v23, %v932_v19  ;;  %970 = vmatmul.bf16.gmra.mxu0 %v756_v29  ;;  %1128 = vmatmul.bf16.gmra.mxu2 %v756_v29  ;;  %v577_v23 = vpop.permute.xlu0 %576  ;;  %v4180_v19 = vld [vmem:[%s5812_s3 + $0x20] sm:$0xff] }
 0x142   :  { %v1168_v59 = vpop.f32.mrf.mxu3  ;;  %v693_v62 = vsel %vm669_vm5, %v664_v22, %v577_v23 }
 0x143   :  { %v5135_v35 = vpack.c.bf16 %v1236_v31, %v1234_v30  ;;  %v1237_v47 = vmax.f32 %v1011_v4, 0.0  ;;  %v4184_v30 = vld [vmem:[%s5812_s3 + $0x40] sm:$0xff]  ;;  %v4193_v31 = vld [vmem:[%s5812_s3 + $0x88] sm:$0xff] }
 0x144   :  { %v1089_v37 = vpop.f32.mrf.mxu2  ;;  %v1012_v38 = vpop.f32.mrf.mxu1  ;;  %1435 = vmatpush.bf16.msrb.mxu1 %v4180_v19  ;;  %1518 = vmatpush.bf16.msrb.mxu3 %v4184_v30 }
 0x145   :  { %v1090_v39 = vadd.f32 %v1089_v37, %v5120_v57  ;;  %v722_v37 = vsel %vm698_vm7, %v693_v62, %v606_v8  ;;  %1749 = vmatpush.bf16.msrb.mxu2 %v4193_v31  ;;  %1666 = vmatpush.bf16.msrb.mxu0 %v4189_v36 }
 0x146   :  { %v933_v40 = vpop.f32.mrf.mxu0 }
 0x147   :  { %v1169_v25 = vadd.f32 %v1168_v59, %v1090_v39  ;;  %v934_v33 = vadd.f32 %v933_v40, %v5113_v52 }
 0x149   :  { %v1013_v42 = vadd.f32 %v1012_v38, %v934_v33  ;;  %v1238_v63 = vmax.f32 %v1169_v25, 0.0  ;;  %v635_v38 = vpop.permute.xlu2 %634  ;;  %v4179_v25 = vld [vmem:[%s5812_s3 + $0x18] sm:$0xff]  ;;  %1667 = vmatpush.bf16.msrb.mxu0 %v4188_v43  ;;  %v550_v51 = vpop.permute.xlu0 %549 }
 0x14a   :  { %v1170_v45 = vpop.f32.mrf.mxu3  ;;  %1436 = vmatpush.bf16.msrb.mxu1 %v4179_v25 }
 0x14b   :  { %v1239_v60 = vmax.f32 %v1013_v42, 0.0  ;;  %v762_v42 = vsel %vm727_vm8, %v722_v37, %v635_v38 }
 0x14c   :  { %v1091_v49 = vpop.f32.mrf.mxu2  ;;  %v1015_v50 = vpop.f32.mrf.mxu1 }
 0x14d   :  { %v1092_v53 = vadd.f32 %v1091_v49, %v5120_v57  ;;  %v5144_v48 = vpack.c.bf16 %v1239_v60, %v1237_v47  ;;  %v4178_v49 = vld [vmem:[%s5812_s3 + $0x10] sm:$0xff] }
 0x14e   :  { %v936_v13 = vpop.f32.mrf.mxu0  ;;  %1437 = vmatpush.bf16.msrb.mxu1 %v4178_v49 }
 0x14f   :  { %v1171_v55 = vadd.f32 %v1170_v45, %v1092_v53  ;;  %v937_v9 = vadd.f32 %v936_v13, %v5113_v52  ;;  %3655 = vmatmul.msk.bf16.gmra.mxu1 %vm882_vm6, %v633_v32  ;;  %3669 = vmatmul.msk.bf16.gmra.mxu3 %vm882_vm6, %v633_v32  ;;  %v4187_v13 = vld [vmem:[%s5812_s3 + $0x58] sm:$0xff] }
 0x150   :  { %1668 = vmatpush.bf16.msrb.mxu0 %v4187_v13 }
 0x151   :  { %v1240_v2 = vmax.f32 %v1171_v55, 0.0  ;;  %v1016_v1 = vadd.f32 %v1015_v50, %v937_v9  ;;  %975 = vmatmul.bf16.gmra.mxu0 %v759_v56  ;;  %1133 = vmatmul.bf16.gmra.mxu2 %v759_v56  ;;  %v4177_v9 = vld [vmem:[%s5812_s3 + $0x8] sm:$0xff]  ;;  %v666_v56 = vsel %vm640_vm4, %v4993_v3, %v550_v51  ;;  %v608_v11 = vpop.permute.xlu2 %607 }
 0x152   :  { %v1173_v5 = vpop.f32.mrf.mxu3  ;;  %1438 = vmatpush.bf16.msrb.mxu1 %v4177_v9 }
 0x153   :  { %v5159_v61 = vpack.c.bf16 %v1240_v2, %v1238_v63  ;;  %v1241_v24 = vmax.f32 %v1016_v1, 0.0  ;;  %v579_v2 = vpop.permute.xlu1 %578  ;;  %v4186_v1 = vld [vmem:[%s5812_s3 + $0x50] sm:$0xff] }
 0x154   :  { %v1094_v12 = vpop.f32.mrf.mxu2  ;;  %v1017_v14 = vpop.f32.mrf.mxu1  ;;  %v695_v7 = vsel %vm669_vm5, %v666_v56, %v579_v2  ;;  %1669 = vmatpush.bf16.msrb.mxu0 %v4186_v1 }
 0x155   :  { %v1095_v17 = vadd.f32 %v1094_v12, %v5120_v57  ;;  %v724_v22 = vsel %vm698_vm7, %v695_v7, %v608_v11 }
 0x156   :  { %v938_v18 = vpop.f32.mrf.mxu0 }
 0x157   :  { %v1174_v21 = vadd.f32 %v1173_v5, %v1095_v17  ;;  %v939_v46 = vadd.f32 %v938_v18, %v5113_v52 }
 0x158   :  { %1670 = vmatpush.bf16.msrb.mxu0 %v4185_v20 }
 0x159   :  { %v1018_v28 = vadd.f32 %v1017_v14, %v939_v46  ;;  %v1242_v44 = vmax.f32 %v1174_v21, 0.0  ;;  %v4176_v14 = vld [vmem:[%s5812_s3] sm:$0xff]  ;;  %v637_v21 = vpop.permute.xlu0 %636  ;;  %v581_v25 = vpop.permute.xlu2 %580  ;;  %s4524_s3 = smov 16  }
 0x15a   :  { %v1175_v16 = vpop.f32.mrf.mxu3  ;;  %1439 = vmatpush.bf16.msrb.mxu1 %v4176_v14  ;;  %v765_v8 = vsel %vm727_vm8, %v724_v22, %v637_v21 }
 0x15b   :  { %v1243_v29 = vmax.f32 %v1018_v28, 0.0  ;;  %v552_v31 = vpop.permute.xlu1 %551 }
 0x15c   :  { %v1096_v4 = vpop.f32.mrf.mxu2  ;;  %v1020_v59 = vpop.f32.mrf.mxu1 }
 0x15d   :  { %v1097_v39 = vadd.f32 %v1096_v4, %v5120_v57  ;;  %v5189_v40 = vpack.c.bf16 %v1243_v29, %v1241_v24 }
 0x15e   :  { %v941_v34 = vpop.f32.mrf.mxu0 }
 0x15f   :  { %v1176_v33 = vadd.f32 %v1175_v16, %v1097_v39  ;;  %v942_v41 = vadd.f32 %v941_v34, %v5113_v52  ;;  %3656 = vmatmul.msk.bf16.gmra.mxu1 %vm882_vm6, %v635_v38  ;;  %3670 = vmatmul.msk.bf16.gmra.mxu3 %vm882_vm6, %v635_v38  ;;  %v668_v38 = vsel %vm640_vm4, %v5005_v10, %v552_v31 }
 0x161   :  { %v1244_v45 = vmax.f32 %v1176_v33, 0.0  ;;  %v1021_v47 = vadd.f32 %v1020_v59, %v942_v41  ;;  %980 = vmatmul.bf16.gmra.mxu0 %v762_v42  ;;  %1138 = vmatmul.bf16.gmra.mxu2 %v762_v42  ;;  %v697_v41 = vsel %vm669_vm5, %v668_v38, %v581_v25  ;;  %v610_v42 = vpop.permute.xlu0 %609 }
 0x162   :  { %v1178_v60 = vpop.f32.mrf.mxu3  ;;  %v726_v49 = vsel %vm698_vm7, %v697_v41, %v610_v42 }
 0x163   :  { %v5204_v50 = vpack.c.bf16 %v1244_v45, %v1242_v44  ;;  %v1245_v3 = vmax.f32 %v1021_v47, 0.0  ;;  %v639_v51 = vpop.permute.xlu1 %638 }
 0x164   :  { %v1099_v32 = vpop.f32.mrf.mxu2  ;;  %v1022_v53 = vpop.f32.mrf.mxu1 }
 0x165   :  { %v1100_v54 = vadd.f32 %v1099_v32, %v5120_v57 }
 0x166   :  { %v943_v55 = vpop.f32.mrf.mxu0 }
 0x167   :  { %v1179_v58 = vadd.f32 %v1178_v60, %v1100_v54  ;;  %v944_v63 = vadd.f32 %v943_v55, %v5113_v52  ;;  %v768_v55 = vsel %vm727_vm8, %v726_v49, %v639_v51 }
 0x169   :  { %v1023_v5 = vadd.f32 %v1022_v53, %v944_v63  ;;  %v1246_v16 = vmax.f32 %v1179_v58, 0.0 }
 0x16a   :  { %v1180_v12 = vpop.f32.mrf.mxu3 }
 0x16b   :  { %v1247_v15 = vmax.f32 %v1023_v5, 0.0 }
 0x16c   :  { %v1101_v17 = vpop.f32.mrf.mxu2  ;;  %v1025_v18 = vpop.f32.mrf.mxu1 }
 0x16d   :  { %v1102_v46 = vadd.f32 %v1101_v17, %v5120_v57  ;;  %v5228_v23 = vpack.c.bf16 %v1247_v15, %v1245_v3 }
 0x16e   :  { %v946_v27 = vpop.f32.mrf.mxu0 }
 0x16f   :  { %v1181_v28 = vadd.f32 %v1180_v12, %v1102_v46  ;;  %v947_v62 = vadd.f32 %v946_v27, %v5113_v52  ;;  %3657 = vmatmul.msk.bf16.gmra.mxu1 %vm882_vm6, %v637_v21  ;;  %3671 = vmatmul.msk.bf16.gmra.mxu3 %vm882_vm6, %v637_v21 }
 0x171   :  { %v1248_v19 = vmax.f32 %v1181_v28, 0.0  ;;  %v1026_v24 = vadd.f32 %v1025_v18, %v947_v62  ;;  %985 = vmatmul.bf16.gmra.mxu0 %v765_v8  ;;  %1143 = vmatmul.bf16.gmra.mxu2 %v765_v8 }
 0x172   :  { %v1183_v29 = vpop.f32.mrf.mxu3 }
 0x173   :  { %v5234_v30 = vpack.c.bf16 %v1248_v19, %v1246_v16  ;;  %v1249_v44 = vmax.f32 %v1026_v24, 0.0 }
 0x174   :  { %v1104_v4 = vpop.f32.mrf.mxu2  ;;  %v1027_v59 = vpop.f32.mrf.mxu1 }
 0x175   :  { %v1105_v36 = vadd.f32 %v1104_v4, %v5120_v57 }
 0x176   :  { %v948_v37 = vpop.f32.mrf.mxu0 }
 0x177   :  { %v1184_v39 = vadd.f32 %v1183_v29, %v1105_v36  ;;  %v949_v34 = vadd.f32 %v948_v37, %v5113_v52 }
 0x179   :  { %v1028_v33 = vadd.f32 %v1027_v59, %v949_v34  ;;  %v1250_v9 = vmax.f32 %v1184_v39, 0.0 }
 0x17a   :  { %v1185_v43 = vpop.f32.mrf.mxu3 }
 0x17b   :  { %v1251_v45 = vmax.f32 %v1028_v33, 0.0 }
 0x17c   :  { %v1106_v47 = vpop.f32.mrf.mxu2  ;;  %v1030_v60 = vpop.f32.mrf.mxu1 }
 0x17d   :  { %v1107_v32 = vadd.f32 %v1106_v47, %v5120_v57  ;;  %v5243_v53 = vpack.c.bf16 %v1251_v45, %v1249_v44 }
 0x17e   :  { %v951_v10 = vpop.f32.mrf.mxu0 }
 0x17f   :  { %v1186_v13 = vadd.f32 %v1185_v43, %v1107_v32  ;;  %v952_v54 = vadd.f32 %v951_v10, %v5113_v52  ;;  %3658 = vmatmul.msk.bf16.gmra.mxu1 %vm882_vm6, %v639_v51  ;;  %3672 = vmatmul.msk.bf16.gmra.mxu3 %vm882_vm6, %v639_v51 }
 0x181   :  { %v1252_v56 = vmax.f32 %v1186_v13, 0.0  ;;  %v1031_v58 = vadd.f32 %v1030_v60, %v952_v54  ;;  %990 = vmatmul.bf16.gmra.mxu0 %v768_v55  ;;  %1148 = vmatmul.bf16.gmra.mxu2 %v768_v55 }
 0x182   :  { %v1188_v63 = vpop.f32.mrf.mxu3 }
 0x183   :  { %v5249_v2 = vpack.c.bf16 %v1252_v56, %v1250_v9  ;;  %v1253_v17 = vmax.f32 %v1031_v58, 0.0 }
 0x184   :  { %v1109_v1 = vpop.f32.mrf.mxu2  ;;  %v1032_v5 = vpop.f32.mrf.mxu1 }
 0x185   :  { %v1110_v7 = vadd.f32 %v1109_v1, %v5120_v57 }
 0x186   :  { %v953_v11 = vpop.f32.mrf.mxu0 }
 0x187   :  { %v1189_v12 = vadd.f32 %v1188_v63, %v1110_v7  ;;  %v954_v14 = vadd.f32 %v953_v11, %v5113_v52 }
 0x189   :  { %v1033_v3 = vadd.f32 %v1032_v5, %v954_v14  ;;  %v1254_v8 = vmax.f32 %v1189_v12, 0.0 }
 0x18a   :  { %v1190_v15 = vpop.f32.mrf.mxu3 }
 0x18b   :  { %v1255_v18 = vmax.f32 %v1033_v3, 0.0 }
 0x18c   :  { %v1111_v20 = vpop.f32.mrf.mxu2  ;;  %v1035_v22 = vpop.f32.mrf.mxu1 }
 0x18d   :  { %v1112_v21 = vadd.f32 %v1111_v20, %v5120_v57  ;;  %v5254_v46 = vpack.c.bf16 %v1255_v18, %v1253_v17 }
 0x18e   :  { %v956_v27 = vpop.f32.mrf.mxu0 }
 0x18f   :  { %v1191_v28 = vadd.f32 %v1190_v15, %v1112_v21  ;;  %v957_v62 = vadd.f32 %v956_v27, %v5113_v52  ;;  %1440 = vmatmul.bf16.vlgmr.msrb.gmra.mxu1 %v5127_v26  ;;  %3709 = vmatmul.msk.bf16.vlgmr.msrb.gmra.mxu3 %vm1389_vm12, %v5135_v35 }
 0x191   :  { %v1256_v16 = vmax.f32 %v1191_v28, 0.0  ;;  %v1036_v19 = vadd.f32 %v1035_v22, %v957_v62  ;;  %1671 = vmatmul.bf16.vlgmr.msrb.gmra.mxu0 %v5127_v26  ;;  %3777 = vmatmul.msk.bf16.vlgmr.msrb.gmra.mxu2 %vm1389_vm12, %v5135_v35 }
 0x192   :  { %v1193_v24 = vpop.f32.mrf.mxu3 }
 0x193   :  { %v5263_v29 = vpack.c.bf16 %v1256_v16, %v1254_v8  ;;  %v1257_v25 = vmax.f32 %v1036_v19, 0.0 }
 0x194   :  { %v1114_v31 = vpop.f32.mrf.mxu2  ;;  %v1037_v4 = vpop.f32.mrf.mxu1 }
 0x195   :  { %v1115_v59 = vadd.f32 %v1114_v31, %v5120_v57 }
 0x196   :  { %v958_v36 = vpop.f32.mrf.mxu0 }
 0x197   :  { %v1194_v37 = vadd.f32 %v1193_v24, %v1115_v59  ;;  %v959_v38 = vadd.f32 %v958_v36, %v5113_v52 }
 0x199   :  { %v1038_v39 = vadd.f32 %v1037_v4, %v959_v38  ;;  %v1258_v47 = vmax.f32 %v1194_v37, 0.0 }
 0x19a   :  { %v1195_v34 = vpop.f32.mrf.mxu3 }
 0x19b   :  { %v1259_v33 = vmax.f32 %v1038_v39, 0.0 }
 0x19c   :  { %v1116_v41 = vpop.f32.mrf.mxu2  ;;  %v1040_v26 = vpop.f32.mrf.mxu1 }
 0x19d   :  { %v1117_v42 = vadd.f32 %v1116_v41, %v5120_v57  ;;  %v5268_v35 = vpack.c.bf16 %v1259_v33, %v1257_v25 }
 0x19e   :  { %v961_v43 = vpop.f32.mrf.mxu0 }
 0x19f   :  { %v1196_v44 = vadd.f32 %v1195_v34, %v1117_v42  ;;  %v962_v45 = vadd.f32 %v961_v43, %v5113_v52  ;;  %1445 = vmatmul.bf16.gmra.mxu1 %v5144_v48  ;;  %3710 = vmatmul.msk.bf16.gmra.mxu3 %vm1389_vm12, %v5159_v61 }
 0x1a1   :  { %v1260_v60 = vmax.f32 %v1196_v44, 0.0  ;;  %v1041_v49 = vadd.f32 %v1040_v26, %v962_v45  ;;  %1676 = vmatmul.bf16.gmra.mxu0 %v5144_v48  ;;  %3778 = vmatmul.msk.bf16.gmra.mxu2 %vm1389_vm12, %v5159_v61 }
 0x1a2   :  { %v1198_v51 = vpop.f32.mrf.mxu3 }
 0x1a3   :  { %v5277_v32 = vpack.c.bf16 %v1260_v60, %v1258_v47  ;;  %v1261_v1 = vmax.f32 %v1041_v49, 0.0 }
 0x1a4   :  { %v1119_v10 = vpop.f32.mrf.mxu2  ;;  %v1042_v13 = vpop.f32.mrf.mxu1 }
 0x1a5   :  { %v1120_v54 = vadd.f32 %v1119_v10, %v5120_v57 }
 0x1a6   :  { %v963_v55 = vpop.f32.mrf.mxu0 }
 0x1a7   :  { %v1199_v9 = vadd.f32 %v1198_v51, %v1120_v54  ;;  %v964_v56 = vadd.f32 %v963_v55, %v5113_v52 }
 0x1a9   :  { %v1043_v58 = vadd.f32 %v1042_v13, %v964_v56  ;;  %v1262_v15 = vmax.f32 %v1199_v9, 0.0 }
 0x1aa   :  { %v1200_v63 = vpop.f32.mrf.mxu3 }
 0x1ab   :  { %v1263_v5 = vmax.f32 %v1043_v58, 0.0 }
 0x1ac   :  { %v1121_v7 = vpop.f32.mrf.mxu2  ;;  %v1045_v48 = vpop.f32.mrf.mxu1 }
 0x1ad   :  { %v1122_v11 = vadd.f32 %v1121_v7, %v5120_v57  ;;  %v5282_v61 = vpack.c.bf16 %v1263_v5, %v1261_v1 }
 0x1ae   :  { %v966_v12 = vpop.f32.mrf.mxu0 }
 0x1af   :  { %v1201_v14 = vadd.f32 %v1200_v63, %v1122_v11  ;;  %v967_v3 = vadd.f32 %v966_v12, %v5113_v52  ;;  %1450 = vmatmul.bf16.gmra.mxu1 %v5189_v40  ;;  %3711 = vmatmul.msk.bf16.gmra.mxu3 %vm1389_vm12, %v5204_v50 }
 0x1b1   :  { %v1264_v17 = vmax.f32 %v1201_v14, 0.0  ;;  %v1046_v18 = vadd.f32 %v1045_v48, %v967_v3  ;;  %1681 = vmatmul.bf16.gmra.mxu0 %v5189_v40  ;;  %3779 = vmatmul.msk.bf16.gmra.mxu2 %vm1389_vm12, %v5204_v50 }
 0x1b2   :  { %v1203_v20 = vpop.f32.mrf.mxu3 }
 0x1b3   :  { %v5291_v22 = vpack.c.bf16 %v1264_v17, %v1262_v15  ;;  %v1265_v31 = vmax.f32 %v1046_v18, 0.0 }
 0x1b4   :  { %v1124_v21 = vpop.f32.mrf.mxu2  ;;  %v1047_v27 = vpop.f32.mrf.mxu1 }
 0x1b5   :  { %v1125_v28 = vadd.f32 %v1124_v21, %v5120_v57 }
 0x1b6   :  { %v968_v62 = vpop.f32.mrf.mxu0 }
 0x1b7   :  { %v1204_v8 = vadd.f32 %v1203_v20, %v1125_v28  ;;  %v969_v16 = vadd.f32 %v968_v62, %v5113_v52 }
 0x1b9   :  { %v1048_v19 = vadd.f32 %v1047_v27, %v969_v16  ;;  %v1266_v34 = vmax.f32 %v1204_v8, 0.0 }
 0x1ba   :  { %v1205_v24 = vpop.f32.mrf.mxu3 }
 0x1bb   :  { %v1267_v4 = vmax.f32 %v1048_v19, 0.0 }
 0x1bc   :  { %v1126_v59 = vpop.f32.mrf.mxu2  ;;  %v1050_v40 = vpop.f32.mrf.mxu1 }
 0x1bd   :  { %v1127_v36 = vadd.f32 %v1126_v59, %v5120_v57  ;;  %v5296_v50 = vpack.c.bf16 %v1267_v4, %v1265_v31 }
 0x1be   :  { %v971_v37 = vpop.f32.mrf.mxu0 }
 0x1bf   :  { %v1206_v38 = vadd.f32 %v1205_v24, %v1127_v36  ;;  %v972_v39 = vadd.f32 %v971_v37, %v5113_v52  ;;  %1455 = vmatmul.bf16.gmra.mxu1 %v5228_v23  ;;  %3712 = vmatmul.msk.bf16.gmra.mxu3 %vm1389_vm12, %v5234_v30 }
 0x1c1   :  { %v1268_v25 = vmax.f32 %v1206_v38, 0.0  ;;  %v1051_v33 = vadd.f32 %v1050_v40, %v972_v39  ;;  %1686 = vmatmul.bf16.gmra.mxu0 %v5228_v23  ;;  %3780 = vmatmul.msk.bf16.gmra.mxu2 %vm1389_vm12, %v5234_v30 }
 0x1c2   :  { %v1208_v41 = vpop.f32.mrf.mxu3 }
 0x1c3   :  { %v5305_v26 = vpack.c.bf16 %v1268_v25, %v1266_v34  ;;  %v1269_v10 = vmax.f32 %v1051_v33, 0.0 }
 0x1c4   :  { %v1129_v42 = vpop.f32.mrf.mxu2  ;;  %v1052_v43 = vpop.f32.mrf.mxu1 }
 0x1c5   :  { %v1130_v44 = vadd.f32 %v1129_v42, %v5120_v57 }
 0x1c6   :  { %v973_v45 = vpop.f32.mrf.mxu0 }
 0x1c7   :  { %v1209_v47 = vadd.f32 %v1208_v41, %v1130_v44  ;;  %v974_v60 = vadd.f32 %v973_v45, %v5113_v52 }
 0x1c9   :  { %v1053_v49 = vadd.f32 %v1052_v43, %v974_v60  ;;  %v1270_v63 = vmax.f32 %v1209_v47, 0.0 }
 0x1ca   :  { %v1210_v51 = vpop.f32.mrf.mxu3 }
 0x1cb   :  { %v1271_v13 = vmax.f32 %v1053_v49, 0.0 }
 0x1cc   :  { %v1131_v54 = vpop.f32.mrf.mxu2  ;;  %v1055_v23 = vpop.f32.mrf.mxu1 }
 0x1cd   :  { %v1132_v55 = vadd.f32 %v1131_v54, %v5120_v57  ;;  %v5310_v30 = vpack.c.bf16 %v1271_v13, %v1269_v10 }
 0x1ce   :  { %v976_v9 = vpop.f32.mrf.mxu0 }
 0x1cf   :  { %v1211_v56 = vadd.f32 %v1210_v51, %v1132_v55  ;;  %v977_v58 = vadd.f32 %v976_v9, %v5113_v52  ;;  %1460 = vmatmul.bf16.gmra.mxu1 %v5243_v53  ;;  %3713 = vmatmul.msk.bf16.gmra.mxu3 %vm1389_vm12, %v5249_v2 }
 0x1d1   :  { %v1272_v1 = vmax.f32 %v1211_v56, 0.0  ;;  %v1056_v5 = vadd.f32 %v1055_v23, %v977_v58  ;;  %1691 = vmatmul.bf16.gmra.mxu0 %v5243_v53  ;;  %3781 = vmatmul.msk.bf16.gmra.mxu2 %vm1389_vm12, %v5249_v2 }
 0x1d2   :  { %v1213_v7 = vpop.f32.mrf.mxu3 }
 0x1d3   :  { %v5319_v48 = vpack.c.bf16 %v1272_v1, %v1270_v63  ;;  %v1273_v21 = vmax.f32 %v1056_v5, 0.0 }
 0x1d4   :  { %v1134_v11 = vpop.f32.mrf.mxu2  ;;  %v1057_v12 = vpop.f32.mrf.mxu1 }
 0x1d5   :  { %v1135_v14 = vadd.f32 %v1134_v11, %v5120_v57 }
 0x1d6   :  { %v978_v3 = vpop.f32.mrf.mxu0 }
 0x1d7   :  { %v1214_v15 = vadd.f32 %v1213_v7, %v1135_v14  ;;  %v979_v17 = vadd.f32 %v978_v3, %v5113_v52 }
 0x1d9   :  { %v1058_v18 = vadd.f32 %v1057_v12, %v979_v17  ;;  %v1274_v24 = vmax.f32 %v1214_v15, 0.0 }
 0x1da   :  { %v1215_v20 = vpop.f32.mrf.mxu3 }
 0x1db   :  { %v1275_v27 = vmax.f32 %v1058_v18, 0.0 }
 0x1dc   :  { %v1136_v28 = vpop.f32.mrf.mxu2  ;;  %v1060_v53 = vpop.f32.mrf.mxu1 }
 0x1dd   :  { %v1137_v62 = vadd.f32 %v1136_v28, %v5120_v57  ;;  %v5324_v2 = vpack.c.bf16 %v1275_v27, %v1273_v21 }
 0x1de   :  { %v981_v8 = vpop.f32.mrf.mxu0 }
 0x1df   :  { %v1216_v16 = vadd.f32 %v1215_v20, %v1137_v62  ;;  %v982_v19 = vadd.f32 %v981_v8, %v5113_v52  ;;  %1465 = vmatmul.bf16.gmra.mxu1 %v5254_v46  ;;  %3714 = vmatmul.msk.bf16.gmra.mxu3 %vm1389_vm12, %v5263_v29 }
 0x1e1   :  { %v1276_v31 = vmax.f32 %v1216_v16, 0.0  ;;  %v1061_v4 = vadd.f32 %v1060_v53, %v982_v19  ;;  %1696 = vmatmul.bf16.gmra.mxu0 %v5254_v46  ;;  %3782 = vmatmul.msk.bf16.gmra.mxu2 %vm1389_vm12, %v5263_v29 }
 0x1e2   :  { %v1218_v59 = vpop.f32.mrf.mxu3 }
 0x1e3   :  { %v5333_v40 = vpack.c.bf16 %v1276_v31, %v1274_v24  ;;  %v1277_v42 = vmax.f32 %v1061_v4, 0.0 }
 0x1e4   :  { %v1139_v36 = vpop.f32.mrf.mxu2  ;;  %v1062_v37 = vpop.f32.mrf.mxu1 }
 0x1e5   :  { %v1140_v38 = vadd.f32 %v1139_v36, %v5120_v57 }
 0x1e6   :  { %v983_v39 = vpop.f32.mrf.mxu0 }
 0x1e7   :  { %v1219_v34 = vadd.f32 %v1218_v59, %v1140_v38  ;;  %v984_v25 = vadd.f32 %v983_v39, %v5113_v52 }
 0x1e9   :  { %v1063_v33 = vadd.f32 %v1062_v37, %v984_v25  ;;  %v1278_v51 = vmax.f32 %v1219_v34, 0.0 }
 0x1ea   :  { %v1220_v41 = vpop.f32.mrf.mxu3 }
 0x1eb   :  { %v1279_v43 = vmax.f32 %v1063_v33, 0.0 }
 0x1ec   :  { %v1141_v44 = vpop.f32.mrf.mxu2  ;;  %v1065_v46 = vpop.f32.mrf.mxu1 }
 0x1ed   :  { %v1142_v45 = vadd.f32 %v1141_v44, %v5120_v57  ;;  %v5338_v29 = vpack.c.bf16 %v1279_v43, %v1277_v42 }
 0x1ee   :  { %v986_v47 = vpop.f32.mrf.mxu0 }
 0x1ef   :  { %v1221_v60 = vadd.f32 %v1220_v41, %v1142_v45  ;;  %v987_v49 = vadd.f32 %v986_v47, %v5113_v52  ;;  %1470 = vmatmul.bf16.gmra.mxu1 %v5268_v35  ;;  %3715 = vmatmul.msk.bf16.gmra.mxu3 %vm1389_vm12, %v5277_v32 }
 0x1f1   :  { %v1280_v10 = vmax.f32 %v1221_v60, 0.0  ;;  %v1066_v13 = vadd.f32 %v1065_v46, %v987_v49  ;;  %1701 = vmatmul.bf16.gmra.mxu0 %v5268_v35  ;;  %3783 = vmatmul.msk.bf16.gmra.mxu2 %vm1389_vm12, %v5277_v32 }
 0x1f2   :  { %v1223_v54 = vpop.f32.mrf.mxu3 }
 0x1f3   :  { %v5347_v23 = vpack.c.bf16 %v1280_v10, %v1278_v51  ;;  %v1281_v11 = vmax.f32 %v1066_v13, 0.0 }
 0x1f4   :  { %v1144_v55 = vpop.f32.mrf.mxu2  ;;  %v1067_v9 = vpop.f32.mrf.mxu1 }
 0x1f5   :  { %v1145_v56 = vadd.f32 %v1144_v55, %v5120_v57 }
 0x1f6   :  { %v988_v58 = vpop.f32.mrf.mxu0 }
 0x1f7   :  { %v1224_v63 = vadd.f32 %v1223_v54, %v1145_v56  ;;  %v989_v1 = vadd.f32 %v988_v58, %v5113_v52 }
 0x1f9   :  { %v1068_v5 = vadd.f32 %v1067_v9, %v989_v1  ;;  %v1282_v20 = vmax.f32 %v1224_v63, 0.0 }
 0x1fa   :  { %v1225_v7 = vpop.f32.mrf.mxu3 }
 0x1fb   :  { %v1283_v12 = vmax.f32 %v1068_v5, 0.0 }
 0x1fc   :  { %v1146_v14 = vpop.f32.mrf.mxu2  ;;  %v1070_v35 = vpop.f32.mrf.mxu1 }
 0x1fd   :  { %v1147_v3 = vadd.f32 %v1146_v14, %v5120_v57  ;;  %v5352_v32 = vpack.c.bf16 %v1283_v12, %v1281_v11 }
 0x1fe   :  { %v991_v15 = vpop.f32.mrf.mxu0 }
 0x1ff   :  { %v1226_v17 = vadd.f32 %v1225_v7, %v1147_v3  ;;  %v992_v18 = vadd.f32 %v991_v15, %v5113_v52  ;;  %1475 = vmatmul.bf16.gmra.mxu1 %v5282_v61  ;;  %3716 = vmatmul.msk.bf16.gmra.mxu3 %vm1389_vm12, %v5291_v22 }
 0x201   :  { %v1284_v21 = vmax.f32 %v1226_v17, 0.0  ;;  %v1071_v27 = vadd.f32 %v1070_v35, %v992_v18  ;;  %1706 = vmatmul.bf16.gmra.mxu0 %v5282_v61  ;;  %3784 = vmatmul.msk.bf16.gmra.mxu2 %vm1389_vm12, %v5291_v22 }
 0x202   :  { %v1228_v28 = vpop.f32.mrf.mxu3 }
 0x203   :  { %v5361_v53 = vpack.c.bf16 %v1284_v21, %v1282_v20  ;;  %v1285_v36 = vmax.f32 %v1071_v27, 0.0 }
 0x204   :  { %v1149_v62 = vpop.f32.mrf.mxu2  ;;  %v1072_v8 = vpop.f32.mrf.mxu1 }
 0x205   :  { %v1150_v16 = vadd.f32 %v1149_v62, %v5120_v57 }
 0x206   :  { %v993_v19 = vpop.f32.mrf.mxu0 }
 0x207   :  { %v1229_v24 = vadd.f32 %v1228_v28, %v1150_v16  ;;  %v994_v31 = vadd.f32 %v993_v19, %v5113_v52 }
 0x209   :  { %v1073_v4 = vadd.f32 %v1072_v8, %v994_v31  ;;  %v1286_v33 = vmax.f32 %v1229_v24, 0.0 }
 0x20a   :  { %v1230_v59 = vpop.f32.mrf.mxu3 }
 0x20b   :  { %v1287_v37 = vmax.f32 %v1073_v4, 0.0 }
 0x20c   :  { %v1151_v38 = vpop.f32.mrf.mxu2  ;;  %v1441_v61 = vpop.f32.mrf.mxu1 }
 0x20d   :  { %v1152_v39 = vadd.f32 %v1151_v38, %v5120_v57  ;;  %v5366_v22 = vpack.c.bf16 %v1287_v37, %v1285_v36 }
 0x20e   :  { %v1672_v34 = vpop.f32.mrf.mxu0 }
 0x20f   :  { %v1231_v25 = vadd.f32 %v1230_v59, %v1152_v39  ;;  %1480 = vmatmul.bf16.gmra.mxu1 %v5296_v50  ;;  %3717 = vmatmul.msk.bf16.gmra.mxu3 %vm1389_vm12, %v5305_v26 }
 0x211   :  { %v1288_v41 = vmax.f32 %v1231_v25, 0.0  ;;  %1711 = vmatmul.bf16.gmra.mxu0 %v5296_v50  ;;  %3785 = vmatmul.msk.bf16.gmra.mxu2 %vm1389_vm12, %v5305_v26 }
 0x212   :  { %v1520_v52 = vpop.f32.mrf.mxu3 }
 0x213   :  { %v5374_v42 = vpack.c.bf16 %v1288_v41, %v1286_v33  ;;  %v1521_v57 = vadd.f32 %v1520_v52, %v1441_v61 }
 0x214   :  { %v1751_v43 = vpop.f32.mrf.mxu2  ;;  %v1443_v44 = vpop.f32.mrf.mxu1 }
 0x215   :  { %v1752_v46 = vadd.f32 %v1751_v43, %v1672_v34 }
 0x216   :  { %v1674_v45 = vpop.f32.mrf.mxu0 }
 0x217   :  { %v5376_v47 = vmax.f32 %v1521_v57, %v1752_v46 }
 0x219   :  { %v1877_v26 = vrot.slane %v5376_v47, 1 }
 0x21a   :  { %v1522_v60 = vpop.f32.mrf.mxu3 }
 0x21b   :  { %v1523_v49 = vadd.f32 %v1522_v60, %v1443_v44 }
 0x21c   :  { %v1753_v51 = vpop.f32.mrf.mxu2  ;;  %v1446_v10 = vpop.f32.mrf.mxu1 }
 0x21d   :  { %v1754_v13 = vadd.f32 %v1753_v51, %v1674_v45 }
 0x21e   :  { %v1677_v54 = vpop.f32.mrf.mxu0 }
 0x21f   :  { %v1822_v50 = vmax.f32 %v1523_v49, %v1754_v13  ;;  %1485 = vmatmul.bf16.gmra.mxu1 %v5310_v30  ;;  %3718 = vmatmul.msk.bf16.gmra.mxu3 %vm1389_vm12, %v5319_v48 }
 0x221   :  { %v1878_v55 = vrot.slane %v1822_v50, 1  ;;  %1716 = vmatmul.bf16.gmra.mxu0 %v5310_v30  ;;  %3786 = vmatmul.msk.bf16.gmra.mxu2 %vm1389_vm12, %v5319_v48 }
 0x222   :  { %v1525_v9 = vpop.f32.mrf.mxu3 }
 0x223   :  { %v1526_v56 = vadd.f32 %v1525_v9, %v1446_v10  ;;  %v1879_v58 = vsel %vm393_vm2, %v1877_v26, %v1878_v55 }
 0x224   :  { %v1756_v63 = vpop.f32.mrf.mxu2  ;;  %v1448_v1 = vpop.f32.mrf.mxu1  ;;  %v1962_v5 = vmax.f32 %v5376_v47, %v1879_v58 }
 0x225   :  { %v1757_v7 = vadd.f32 %v1756_v63, %v1677_v54 }
 0x226   :  { %v1679_v11 = vpop.f32.mrf.mxu0 }
 0x227   :  { %v1823_v12 = vmax.f32 %v1526_v56, %v1757_v7 }
 0x229   :  { %v1880_v14 = vrot.slane %v1823_v12, 1 }
 0x22a   :  { %v1527_v35 = vpop.f32.mrf.mxu3 }
 0x22b   :  { %v1528_v3 = vadd.f32 %v1527_v35, %v1448_v1  ;;  %v1881_v30 = vsel %vm393_vm2, %v1878_v55, %v1880_v14 }
 0x22c   :  { %v1758_v15 = vpop.f32.mrf.mxu2  ;;  %v1451_v48 = vpop.f32.mrf.mxu1  ;;  %v1963_v17 = vmax.f32 %v1822_v50, %v1881_v30 }
 0x22d   :  { %v1759_v18 = vadd.f32 %v1758_v15, %v1679_v11 }
 0x22e   :  { %v1682_v20 = vpop.f32.mrf.mxu0  ;;  %v5390_v21 = vpack.c.bf16 %v1963_v17, %v1962_v5 }
 0x22f   :  { %v1824_v27 = vmax.f32 %v1528_v3, %v1759_v18  ;;  %1490 = vmatmul.bf16.gmra.mxu1 %v5324_v2  ;;  %3719 = vmatmul.msk.bf16.gmra.mxu3 %vm1389_vm12, %v5333_v40 }
 0x231   :  { %v1882_v28 = vrot.slane %v1824_v27, 1  ;;  %1721 = vmatmul.bf16.gmra.mxu0 %v5324_v2  ;;  %3787 = vmatmul.msk.bf16.gmra.mxu2 %vm1389_vm12, %v5333_v40 }
 0x232   :  { %v1530_v62 = vpop.f32.mrf.mxu3 }
 0x233   :  { %v1531_v8 = vadd.f32 %v1530_v62, %v1451_v48  ;;  %v1883_v16 = vsel %vm393_vm2, %v1880_v14, %v1882_v28 }
 0x234   :  { %v1761_v19 = vpop.f32.mrf.mxu2  ;;  %v1453_v24 = vpop.f32.mrf.mxu1  ;;  %v1964_v31 = vmax.f32 %v1823_v12, %v1883_v16 }
 0x235   :  { %v1762_v4 = vadd.f32 %v1761_v19, %v1682_v20 }
 0x236   :  { %v1684_v59 = vpop.f32.mrf.mxu0 }
 0x237   :  { %v1825_v36 = vmax.f32 %v1531_v8, %v1762_v4 }
 0x239   :  { %v1884_v37 = vrot.slane %v1825_v36, 1 }
 0x23a   :  { %v1532_v38 = vpop.f32.mrf.mxu3 }
 0x23b   :  { %v1885_v61 = vsel %vm393_vm2, %v1882_v28, %v1884_v37  ;;  %v1533_v41 = vadd.f32 %v1532_v38, %v1453_v24 }
 0x23c   :  { %v1763_v39 = vpop.f32.mrf.mxu2  ;;  %v1456_v34 = vpop.f32.mrf.mxu1  ;;  %v1965_v2 = vmax.f32 %v1824_v27, %v1885_v61 }
 0x23d   :  { %v1764_v25 = vadd.f32 %v1763_v39, %v1684_v59 }
 0x23e   :  { %v1687_v33 = vpop.f32.mrf.mxu0  ;;  %v5400_v40 = vpack.c.bf16 %v1965_v2, %v1964_v31 }
 0x23f   :  { %1495 = vmatmul.bf16.gmra.mxu1 %v5338_v29  ;;  %3720 = vmatmul.msk.bf16.gmra.mxu3 %vm1389_vm12, %v5347_v23  ;;  %v1826_v52 = vmax.f32 %v1533_v41, %v1764_v25 }
 0x241   :  { %1726 = vmatmul.bf16.gmra.mxu0 %v5338_v29  ;;  %3788 = vmatmul.msk.bf16.gmra.mxu2 %vm1389_vm12, %v5347_v23  ;;  %v1886_v45 = vrot.slane %v1826_v52, 1 }
 0x242   :  { %v1535_v57 = vpop.f32.mrf.mxu3 }
 0x243   :  { %v1536_v43 = vadd.f32 %v1535_v57, %v1456_v34  ;;  %v1887_v13 = vsel %vm393_vm2, %v1884_v37, %v1886_v45 }
 0x244   :  { %v1766_v44 = vpop.f32.mrf.mxu2  ;;  %v1458_v46 = vpop.f32.mrf.mxu1  ;;  %v1966_v29 = vmax.f32 %v1825_v36, %v1887_v13 }
 0x245   :  { %v1767_v60 = vadd.f32 %v1766_v44, %v1687_v33 }
 0x246   :  { %v1689_v49 = vpop.f32.mrf.mxu0 }
 0x247   :  { %v1827_v51 = vmax.f32 %v1536_v43, %v1767_v60 }
 0x249   :  { %v1888_v10 = vrot.slane %v1827_v51, 1 }
 0x24a   :  { %v1537_v54 = vpop.f32.mrf.mxu3 }
 0x24b   :  { %v1889_v50 = vsel %vm393_vm2, %v1886_v45, %v1888_v10  ;;  %v1538_v1 = vadd.f32 %v1537_v54, %v1458_v46 }
 0x24c   :  { %v1768_v55 = vpop.f32.mrf.mxu2  ;;  %v1461_v9 = vpop.f32.mrf.mxu1  ;;  %v1967_v56 = vmax.f32 %v1826_v52, %v1889_v50 }
 0x24d   :  { %v1769_v58 = vadd.f32 %v1768_v55, %v1689_v49 }
 0x24e   :  { %v1692_v23 = vpop.f32.mrf.mxu0  ;;  %v5410_v63 = vpack.c.bf16 %v1967_v56, %v1966_v29 }
 0x24f   :  { %1500 = vmatmul.bf16.gmra.mxu1 %v5352_v32  ;;  %3721 = vmatmul.msk.bf16.gmra.mxu3 %vm1389_vm12, %v5361_v53  ;;  %v1828_v5 = vmax.f32 %v1538_v1, %v1769_v58 }
 0x251   :  { %1731 = vmatmul.bf16.gmra.mxu0 %v5352_v32  ;;  %3789 = vmatmul.msk.bf16.gmra.mxu2 %vm1389_vm12, %v5361_v53  ;;  %v1890_v35 = vrot.slane %v1828_v5, 1 }
 0x252   :  { %v1540_v7 = vpop.f32.mrf.mxu3 }
 0x253   :  { %v1541_v11 = vadd.f32 %v1540_v7, %v1461_v9  ;;  %v1891_v17 = vsel %vm393_vm2, %v1888_v10, %v1890_v35 }
 0x254   :  { %v1771_v12 = vpop.f32.mrf.mxu2  ;;  %v5418_v14 = vpop.f32.mrf.mxu1  ;;  %v1968_v27 = vmax.f32 %v1827_v51, %v1891_v17 }
 0x255   :  { %v1772_v3 = vadd.f32 %v1771_v12, %v1692_v23 }
 0x256   :  { %v5420_v30 = vpop.f32.mrf.mxu0 }
 0x257   :  { %v5422_v15 = vmax.f32 %v1541_v11, %v1772_v3 }
 0x259   :  { %v1892_v48 = vrot.slane %v5422_v15, 1 }
 0x25a   :  { %v5426_v18 = vpop.f32.mrf.mxu3 }
 0x25b   :  { %v1893_v32 = vsel %vm393_vm2, %v1890_v35, %v1892_v48 }
 0x25c   :  { %v1773_v53 = vpop.f32.mrf.mxu2  ;;  %v1466_v20 = vpop.f32.mrf.mxu1  ;;  %v1969_v28 = vmax.f32 %v1828_v5, %v1893_v32 }
 0x25e   :  { %v1697_v62 = vpop.f32.mrf.mxu0  ;;  %v5431_v8 = vpack.c.bf16 %v1969_v28, %v1968_v27 }
 0x25f   :  { %1505 = vmatmul.bf16.gmra.mxu1 %v5366_v22  ;;  %3722 = vmatmul.msk.bf16.gmra.mxu3 %vm1389_vm12, %v5374_v42 }
 0x261   :  { %1736 = vmatmul.bf16.gmra.mxu0 %v5366_v22  ;;  %3790 = vmatmul.msk.bf16.gmra.mxu2 %vm1389_vm12, %v5374_v42 }
 0x262   :  { %v1545_v16 = vpop.f32.mrf.mxu3 }
 0x264   :  { %v1776_v19 = vpop.f32.mrf.mxu2  ;;  %v1468_v24 = vpop.f32.mrf.mxu1 }
 0x265   :  { %v1777_v35 = vadd.f32 %v1776_v19, %v1697_v62 }
 0x266   :  { %v1699_v31 = vpop.f32.mrf.mxu0 }
 0x26a   :  { %v1547_v4 = vpop.f32.mrf.mxu3 }
 0x26b   :  { %v1548_v17 = vadd.f32 %v1547_v4, %v1468_v24 }
 0x26c   :  { %v1778_v59 = vpop.f32.mrf.mxu2  ;;  %v1471_v36 = vpop.f32.mrf.mxu1 }
 0x26d   :  { %v1779_v56 = vadd.f32 %v1778_v59, %v1699_v31 }
 0x26e   :  { %v1702_v37 = vpop.f32.mrf.mxu0 }
 0x272   :  { %v1550_v38 = vpop.f32.mrf.mxu3 }
 0x273   :  { %v1551_v58 = vadd.f32 %v1550_v38, %v1471_v36  ;;  %v1543_v36 = vadd.f32 %v5426_v18, %v5418_v14 }
 0x274   :  { %v1781_v61 = vpop.f32.mrf.mxu2  ;;  %v1473_v39 = vpop.f32.mrf.mxu1 }
 0x275   :  { %v1782_v55 = vadd.f32 %v1781_v61, %v1702_v37  ;;  %v1546_v37 = vadd.f32 %v1545_v16, %v1466_v20  ;;  %v1832_v61 = vmax.f32 %v1548_v17, %v1779_v56 }
 0x276   :  { %v1704_v34 = vpop.f32.mrf.mxu0 }
 0x277   :  { %v1833_v32 = vmax.f32 %v1551_v58, %v1782_v55  ;;  %v1831_v62 = vmax.f32 %v1546_v37, %v1777_v35  ;;  %v1898_v16 = vrot.slane %v1832_v61, 1 }
 0x279   :  { %v1900_v19 = vrot.slane %v1833_v32, 1  ;;  %v1896_v18 = vrot.slane %v1831_v62, 1 }
 0x27a   :  { %v1552_v2 = vpop.f32.mrf.mxu3 }
 0x27b   :  { %v1553_v9 = vadd.f32 %v1552_v2, %v1473_v39 }
 0x27c   :  { %v1783_v25 = vpop.f32.mrf.mxu2  ;;  %v1476_v33 = vpop.f32.mrf.mxu1 }
 0x27d   :  { %v1784_v10 = vadd.f32 %v1783_v25, %v1704_v34  ;;  %v1774_v34 = vadd.f32 %v1773_v53, %v5420_v30 }
 0x27e   :  { %v1707_v41 = vpop.f32.mrf.mxu0 }
 0x27f   :  { %v1834_v5 = vmax.f32 %v1553_v9, %v1784_v10  ;;  %v1830_v2 = vmax.f32 %v1543_v36, %v1774_v34 }
 0x281   :  { %v1902_v39 = vrot.slane %v1834_v5, 1 }
 0x282   :  { %v1555_v22 = vpop.f32.mrf.mxu3 }
 0x283   :  { %v1556_v13 = vadd.f32 %v1555_v22, %v1476_v33  ;;  %v1903_v22 = vsel %vm393_vm2, %v1900_v19, %v1902_v39 }
 0x284   :  { %v1786_v52 = vpop.f32.mrf.mxu2  ;;  %v1478_v57 = vpop.f32.mrf.mxu1 }
 0x285   :  { %v1787_v49 = vadd.f32 %v1786_v52, %v1707_v41 }
 0x286   :  { %v1709_v42 = vpop.f32.mrf.mxu0 }
 0x287   :  { %v1835_v29 = vmax.f32 %v1556_v13, %v1787_v49 }
 0x289   :  { %v1904_v27 = vrot.slane %v1835_v29, 1 }
 0x28a   :  { %v1557_v43 = vpop.f32.mrf.mxu3 }
 0x28b   :  { %v1558_v51 = vadd.f32 %v1557_v43, %v1478_v57  ;;  %v1905_v4 = vsel %vm393_vm2, %v1902_v39, %v1904_v27  ;;  %v1901_v43 = vsel %vm393_vm2, %v1898_v16, %v1900_v19 }
 0x28c   :  { %v1788_v44 = vpop.f32.mrf.mxu2  ;;  %v1481_v46 = vpop.f32.mrf.mxu1  ;;  %v1975_v14 = vmax.f32 %v1834_v5, %v1905_v4  ;;  %v1973_v10 = vmax.f32 %v1832_v61, %v1901_v43 }
 0x28d   :  { %v1789_v45 = vadd.f32 %v1788_v44, %v1709_v42  ;;  %v1974_v44 = vmax.f32 %v1833_v32, %v1903_v22 }
 0x28e   :  { %v1712_v60 = vpop.f32.mrf.mxu0 }
 0x28f   :  { %v1836_v54 = vmax.f32 %v1558_v51, %v1789_v45  ;;  %v1996_v51 = vpack.c.bf16 %v1975_v14, %v1974_v44 }
 0x291   :  { %v1906_v7 = vrot.slane %v1836_v54, 1 }
 0x292   :  { %v1560_v50 = vpop.f32.mrf.mxu3 }
 0x293   :  { %v1561_v11 = vadd.f32 %v1560_v50, %v1481_v46  ;;  %v1907_v31 = vsel %vm393_vm2, %v1904_v27, %v1906_v7  ;;  %v1894_v46 = vrot.slane %v1830_v2, 1 }
 0x294   :  { %v1791_v23 = vpop.f32.mrf.mxu2  ;;  %v1483_v1 = vpop.f32.mrf.mxu1  ;;  %v1976_v53 = vmax.f32 %v1835_v29, %v1907_v31 }
 0x295   :  { %v1792_v12 = vadd.f32 %v1791_v23, %v1712_v60  ;;  %v1899_v60 = vsel %vm393_vm2, %v1896_v18, %v1898_v16  ;;  %v1895_v23 = vsel %vm393_vm2, %v1892_v48, %v1894_v46 }
 0x296   :  { %v1714_v3 = vpop.f32.mrf.mxu0  ;;  %v1972_v29 = vmax.f32 %v1831_v62, %v1899_v60 }
 0x297   :  { %v5439_v28 = vmax.f32 %v1561_v11, %v1792_v12  ;;  %v1970_v12 = vmax.f32 %v5422_v15, %v1895_v23 }
 0x298   :  { %v1995_v5 = vpack.c.bf16 %v1973_v10, %v1972_v29 }
 0x299   :  { %v1908_v59 = vrot.slane %v5439_v28, 1 }
 0x29a   :  { %v1562_v38 = vpop.f32.mrf.mxu3 }
 0x29b   :  { %v1909_v24 = vsel %vm393_vm2, %v1906_v7, %v1908_v59  ;;  %v1563_v33 = vadd.f32 %v1562_v38, %v1483_v1 }
 0x29c   :  { %v1793_v25 = vpop.f32.mrf.mxu2  ;;  %v1486_v30 = vpop.f32.mrf.mxu1  ;;  %v1977_v20 = vmax.f32 %v1836_v54, %v1909_v24  ;;  %v1897_v54 = vsel %vm393_vm2, %v1894_v46, %v1896_v18 }
 0x29d   :  { %v1794_v41 = vadd.f32 %v1793_v25, %v1714_v3  ;;  %v1971_v7 = vmax.f32 %v1830_v2, %v1897_v54 }
 0x29e   :  { %v1717_v52 = vpop.f32.mrf.mxu0  ;;  %v1997_v57 = vpack.c.bf16 %v1977_v20, %v1976_v53 }
 0x29f   :  { %v1838_v42 = vmax.f32 %v1563_v33, %v1794_v41  ;;  %v1994_v17 = vpack.c.bf16 %v1971_v7, %v1970_v12 }
 0x2a0   :  { %2089 = vmatpush.bf16.msra.mxu1 %v1997_v57 }
 0x2a1   :  { %v1910_v45 = vrot.slane %v1838_v42, 1 }
 0x2a2   :  { %v1565_v49 = vpop.f32.mrf.mxu3 }
 0x2a3   :  { %v1566_v13 = vadd.f32 %v1565_v49, %v1486_v30  ;;  %v1911_v50 = vsel %vm393_vm2, %v1908_v59, %v1910_v45 }
 0x2a4   :  { %v1796_v55 = vpop.f32.mrf.mxu2  ;;  %2090 = vmatpush.bf16.msra.mxu1 %v1996_v51  ;;  %v1488_v9 = vpop.f32.mrf.mxu1  ;;  %v1978_v56 = vmax.f32 %v5439_v28, %v1911_v50 }
 0x2a5   :  { %v1797_v58 = vadd.f32 %v1796_v55, %v1717_v52 }
 0x2a6   :  { %v1719_v1 = vpop.f32.mrf.mxu0 }
 0x2a7   :  { %v1839_v11 = vmax.f32 %v1566_v13, %v1797_v58  ;;  %v4195_v58 = vld [vmem:[#allocation2 + $0x4] sm:$0xf0] }
 0x2a8   :  { %2091 = vmatpush.bf16.msra.mxu1 %v1995_v5 }
 0x2a9   :  { %v1912_v35 = vrot.slane %v1839_v11, 1 }
 0x2aa   :  { %v1567_v3 = vpop.f32.mrf.mxu3 }
 0x2ab   :  { %v1913_v32 = vsel %vm393_vm2, %v1910_v45, %v1912_v35  ;;  %v1568_v48 = vadd.f32 %v1567_v3, %v1488_v9 }
 0x2ac   :  { %v1798_v27 = vpop.f32.mrf.mxu2  ;;  %2092 = vmatpush.bf16.msra.mxu1 %v1994_v17  ;;  %v1491_v28 = vpop.f32.mrf.mxu1  ;;  %v1979_v34 = vmax.f32 %v1838_v42, %v1913_v32 }
 0x2ad   :  { %v1799_v37 = vadd.f32 %v1798_v27, %v1719_v1 }
 0x2ae   :  { %v1722_v61 = vpop.f32.mrf.mxu0  ;;  %v5459_v39 = vpack.c.bf16 %v1979_v34, %v1978_v56  ;;  %v3793_v56 = vld [vmem:[#allocation2] sm:$0xf] }
 0x2af   :  { %v1840_v31 = vmax.f32 %v1568_v48, %v1799_v37 }
 0x2b0   :  { %2093 = vmatpush.bf16.msra.mxu1 %v5431_v8 }
 0x2b1   :  { %v1914_v62 = vrot.slane %v1840_v31, 1 }
 0x2b2   :  { %v1570_v59 = vpop.f32.mrf.mxu3 }
 0x2b3   :  { %v1571_v36 = vadd.f32 %v1570_v59, %v1491_v28  ;;  %v1915_v25 = vsel %vm393_vm2, %v1912_v35, %v1914_v62 }
 0x2b4   :  { %v1801_v15 = vpop.f32.mrf.mxu2  ;;  %2094 = vmatpush.bf16.msra.mxu1 %v5410_v63  ;;  %v5463_v38 = vpop.f32.mrf.mxu1  ;;  %v1980_v20 = vmax.f32 %v1839_v11, %v1915_v25  ;;  %v3794_v11 = vor.u32 %v4195_v58, %v3793_v56 }
 0x2b5   :  { %v1802_v19 = vadd.f32 %v1801_v15, %v1722_v61 }
 0x2b6   :  { %v1724_v24 = vpop.f32.mrf.mxu0 }
 0x2b7   :  { %v5465_v4 = vmax.f32 %v1571_v36, %v1802_v19 }
 0x2b8   :  { %2095 = vmatpush.bf16.msra.mxu1 %v5400_v40 }
 0x2b9   :  { %v1916_v2 = vrot.slane %v5465_v4, 1 }
 0x2ba   :  { %v1572_v8 = vpop.f32.mrf.mxu3 }
 0x2bb   :  { %v1917_v30 = vsel %vm393_vm2, %v1914_v62, %v1916_v2  ;;  %v1573_v25 = vadd.f32 %v1572_v8, %v5463_v38 }
 0x2bc   :  { %v1803_v53 = vpop.f32.mrf.mxu2  ;;  %2096 = vmatpush.bf16.msra.mxu1 %v5390_v21  ;;  %v1496_v63 = vpop.f32.mrf.mxu1  ;;  %v1981_v16 = vmax.f32 %v1840_v31, %v1917_v30 }
 0x2bd   :  { %v1804_v36 = vadd.f32 %v1803_v53, %v1724_v24 }
 0x2be   :  { %v1727_v33 = vpop.f32.mrf.mxu0  ;;  %v5474_v41 = vpack.c.bf16 %v1981_v16, %v1980_v20 }
 0x2bf   :  { %2097 = vmatmul.bf16.vlgmr.msra.gmra.mxu1 %v3794_v11  ;;  %v3811_v11 = vld [vmem:[#allocation2 + $0x28] sm:$0xf0] }
 0x2c2   :  { %v1575_v22 = vpop.f32.mrf.mxu3 }
 0x2c3   :  { %v1576_v59 = vadd.f32 %v1575_v22, %v1496_v63 }
 0x2c4   :  { %v1806_v40 = vpop.f32.mrf.mxu2  ;;  %v1498_v52 = vpop.f32.mrf.mxu1 }
 0x2c5   :  { %v1807_v34 = vadd.f32 %v1806_v40, %v1727_v33 }
 0x2c6   :  { %v1729_v57 = vpop.f32.mrf.mxu0 }
 0x2c7   :  { %v1843_v30 = vmax.f32 %v1576_v59, %v1807_v34  ;;  %v4205_v34 = vld [vmem:[#allocation2 + $0x54] sm:$0xf0]  ;;  %v4204_v59 = vld [vmem:[#allocation2 + $0x54] sm:$0xf] }
 0x2ca   :  { %v1577_v14 = vpop.f32.mrf.mxu3 }
 0x2cb   :  { %v1578_v37 = vadd.f32 %v1577_v14, %v1498_v52  ;;  %v1842_v14 = vmax.f32 %v1573_v25, %v1804_v36  ;;  %v3835_v36 = vld [vmem:[#allocation2 + $0x58] sm:$0xf0] }
 0x2cc   :  { %v1808_v18 = vpop.f32.mrf.mxu2  ;;  %v1501_v42 = vpop.f32.mrf.mxu1 }
 0x2cd   :  { %v1809_v12 = vadd.f32 %v1808_v18, %v1729_v57  ;;  %v1920_v18 = vrot.slane %v1843_v30, 1 }
 0x2ce   :  { %v1732_v43 = vpop.f32.mrf.mxu0 }
 0x2cf   :  { %v1844_v15 = vmax.f32 %v1578_v37, %v1809_v12  ;;  %v3825_v12 = vld [vmem:[#allocation2 + $0x40] sm:$0xf] }
 0x2d1   :  { %v1922_v63 = vrot.slane %v1844_v15, 1 }
 0x2d2   :  { %v1580_v44 = vpop.f32.mrf.mxu3 }
 0x2d3   :  { %v1581_v17 = vadd.f32 %v1580_v44, %v1501_v42  ;;  %v1918_v42 = vrot.slane %v1842_v14, 1  ;;  %v1923_v47 = vsel %vm393_vm2, %v1920_v18, %v1922_v63  ;;  %v3801_v44 = vld [vmem:[#allocation2 + $0x10] sm:$0xf] }
 0x2d4   :  { %v1811_v46 = vpop.f32.mrf.mxu2  ;;  %v1503_v45 = vpop.f32.mrf.mxu1 }
 0x2d5   :  { %v1812_v23 = vadd.f32 %v1811_v46, %v1732_v43  ;;  %v4197_v46 = vld [vmem:[#allocation2 + $0x14] sm:$0xf0] }
 0x2d6   :  { %v1734_v60 = vpop.f32.mrf.mxu0 }
 0x2d7   :  { %v1845_v61 = vmax.f32 %v1581_v17, %v1812_v23  ;;  %v3803_v23 = vld [vmem:[#allocation2 + $0x18] sm:$0xf0] }
 0x2d9   :  { %v1924_v20 = vrot.slane %v1845_v61, 1 }
 0x2da   :  { %v1582_v49 = vpop.f32.mrf.mxu3 }
 0x2db   :  { %v1583_v1 = vadd.f32 %v1582_v49, %v1503_v45  ;;  %v1925_v38 = vsel %vm393_vm2, %v1922_v63, %v1924_v20  ;;  %v1921_v45 = vsel %vm393_vm2, %v1918_v42, %v1920_v18  ;;  %v1984_v49 = vmax.f32 %v1843_v30, %v1923_v47 }
 0x2dc   :  { %v1813_v21 = vpop.f32.mrf.mxu2  ;;  %v1506_v51 = vpop.f32.mrf.mxu1 }
 0x2dd   :  { %v1814_v55 = vadd.f32 %v1813_v21, %v1734_v60  ;;  %v3802_v60 = vor.u32 %v4197_v46, %v3801_v44  ;;  %v1919_v21 = vsel %vm393_vm2, %v1916_v2, %v1918_v42  ;;  %v4196_v2 = vld [vmem:[#allocation2 + $0x14] sm:$0xf] }
 0x2de   :  { %v1737_v10 = vpop.f32.mrf.mxu0 }
 0x2df   :  { %v1846_v32 = vmax.f32 %v1583_v1, %v1814_v55  ;;  %2102 = vmatmul.bf16.gmra.mxu1 %v3802_v60  ;;  %v3795_v55 = vld [vmem:[#allocation2 + $0x8] sm:$0xf0]  ;;  %v3817_v1 = vld [vmem:[#allocation2 + $0x30] sm:$0xf] }
 0x2e1   :  { %v1926_v62 = vrot.slane %v1846_v32, 1 }
 0x2e2   :  { %v1585_v13 = vpop.f32.mrf.mxu3 }
 0x2e3   :  { %v1586_v9 = vadd.f32 %v1585_v13, %v1506_v51  ;;  %v1927_v24 = vsel %vm393_vm2, %v1924_v20, %v1926_v62  ;;  %v1982_v13 = vmax.f32 %v5465_v4, %v1919_v21  ;;  %v4201_v4 = vld [vmem:[#allocation2 + $0x34] sm:$0xf0] }
 0x2e4   :  { %v1816_v54 = vpop.f32.mrf.mxu2  ;;  %v1508_v7 = vpop.f32.mrf.mxu1  ;;  %v1986_v8 = vmax.f32 %v1845_v61, %v1927_v24  ;;  %v4202_v61 = vld [vmem:[#allocation2 + $0x44] sm:$0xf] }
 0x2e5   :  { %v1817_v50 = vadd.f32 %v1816_v54, %v1737_v10  ;;  %v1983_v10 = vmax.f32 %v1842_v14, %v1921_v45 }
 0x2e6   :  { %v1739_v35 = vpop.f32.mrf.mxu0 }
 0x2e7   :  { %v1847_v5 = vmax.f32 %v1586_v9, %v1817_v50  ;;  %v2000_v54 = vpack.c.bf16 %v1983_v10, %v1982_v13  ;;  %v4194_v50 = vld [vmem:[#allocation2 + $0x4] sm:$0xf]  ;;  %v3809_v9 = vld [vmem:[#allocation2 + $0x20] sm:$0xf] }
 0x2e8   :  { %v3798_v56 = vor.u32 %v4194_v50, %v3795_v55 }
 0x2e9   :  { %v1928_v48 = vrot.slane %v1847_v5, 1 }
 0x2ea   :  { %v1587_v29 = vpop.f32.mrf.mxu3 }
 0x2eb   :  { %v1588_v27 = vadd.f32 %v1587_v29, %v1508_v7  ;;  %v1929_v33 = vsel %vm393_vm2, %v1926_v62, %v1928_v48  ;;  %v4199_v29 = vld [vmem:[#allocation2 + $0x24] sm:$0xf0]  ;;  %v3818_v7 = vor.u32 %v4201_v4, %v3817_v1 }
 0x2ec   :  { %v1818_v3 = vpop.f32.mrf.mxu2  ;;  %v1987_v22 = vmax.f32 %v1846_v32, %v1929_v33  ;;  %v3810_v58 = vor.u32 %v4199_v29, %v3809_v9  ;;  %v3819_v32 = vld [vmem:[#allocation2 + $0x38] sm:$0xf0] }
 0x2ed   :  { %v1819_v28 = vadd.f32 %v1818_v3, %v1739_v35  ;;  %v4203_v35 = vld [vmem:[#allocation2 + $0x44] sm:$0xf0] }
 0x2ee   :  { %v2002_v43 = vpack.c.bf16 %v1987_v22, %v1986_v8  ;;  %v3826_v17 = vor.u32 %v4203_v35, %v3825_v12 }
 0x2ef   :  { %v1848_v31 = vmax.f32 %v1588_v27, %v1819_v28  ;;  %2107 = vmatmul.bf16.gmra.mxu1 %v3810_v58  ;;  %v3833_v28 = vld [vmem:[#allocation2 + $0x50] sm:$0xf] }
 0x2f0   :  { %v3834_v37 = vor.u32 %v4205_v34, %v3833_v28 }
 0x2f1   :  { %v1930_v19 = vrot.slane %v1848_v31, 1 }
 0x2f3   :  { %v1931_v16 = vsel %vm393_vm2, %v1928_v48, %v1930_v19  ;;  %v1961_v57 = vsel %vm393_vm2, %v1930_v19, %v1877_v26  ;;  %v1985_v26 = vmax.f32 %v1844_v15, %v1925_v38  ;;  %v3827_v48 = vld [vmem:[#allocation2 + $0x48] sm:$0xf0]  ;;  %v3838_v15 = vor.u32 %v4204_v59, %v3835_v36 }
 0x2f4   :  { %v1989_v40 = vmax.f32 %v1848_v31, %v1961_v57  ;;  %v1988_v52 = vmax.f32 %v1847_v5, %v1931_v16  ;;  %v3806_v5 = vor.u32 %v4196_v2, %v3803_v23  ;;  %v3830_v31 = vor.u32 %v4202_v61, %v3827_v48 }
 0x2f5   :  { %v2001_v51 = vpack.c.bf16 %v1985_v26, %v1984_v49 }
 0x2f6   :  { %v2003_v53 = vpack.c.bf16 %v1989_v40, %v1988_v52 }
 0x2f8   :  { %2130 = vmatpush.bf16.msra.mxu3 %v2003_v53 }
 0x2fc   :  { %2131 = vmatpush.bf16.msra.mxu3 %v2002_v43 }
 0x2ff   :  { %2112 = vmatmul.bf16.gmra.mxu1 %v3818_v7 }
 0x300   :  { %2132 = vmatpush.bf16.msra.mxu3 %v2001_v51 }
 0x304   :  { %2133 = vmatpush.bf16.msra.mxu3 %v2000_v54 }
 0x308   :  { %2134 = vmatpush.bf16.msra.mxu3 %v5474_v41  ;;  %v4198_v41 = vld [vmem:[#allocation2 + $0x24] sm:$0xf] }
 0x309   :  { %v3814_v3 = vor.u32 %v4198_v41, %v3811_v11 }
 0x30c   :  { %2135 = vmatpush.bf16.msra.mxu3 %v5459_v39  ;;  %v4200_v39 = vld [vmem:[#allocation2 + $0x34] sm:$0xf] }
 0x30d   :  { %v3822_v27 = vor.u32 %v4200_v39, %v3819_v32 }
 0x30f   :  { %3839 = vmatmul.msk.bf16.vlgmr.msra.gmra.mxu3 %vm2070_vm13, %v3798_v56  ;;  %2117 = vmatmul.bf16.gmra.mxu1 %v3826_v17 }
 0x31f   :  { %3840 = vmatmul.msk.bf16.gmra.mxu3 %vm2070_vm13, %v3806_v5  ;;  %2122 = vmatmul.bf16.gmra.mxu1 %v3834_v37 }
 0x32f   :  { %3841 = vmatmul.msk.bf16.gmra.mxu3 %vm2070_vm13, %v3814_v3 }
 0x33c   :  { %v2098_v62 = vpop.f32.mrf.mxu1 }
 0x33f   :  { %3842 = vmatmul.msk.bf16.gmra.mxu3 %vm2070_vm13, %v3822_v27 }
 0x344   :  { %v2100_v19 = vpop.f32.mrf.mxu1 }
 0x34f   :  { %3843 = vmatmul.msk.bf16.gmra.mxu3 %vm2070_vm13, %v3830_v31 }
 0x35c   :  { %v2103_v25 = vpop.f32.mrf.mxu1 }
 0x35f   :  { %3844 = vmatmul.msk.bf16.gmra.mxu3 %vm2070_vm13, %v3838_v15 }
 0x364   :  { %v2105_v16 = vpop.f32.mrf.mxu1 }
 0x36c   :  { %v2108_v63 = vpop.f32.mrf.mxu1 }
 0x374   :  { %v2110_v26 = vpop.f32.mrf.mxu1 }
 0x37c   :  { %v2113_v7 = vpop.f32.mrf.mxu1 }
 0x384   :  { %v2115_v61 = vpop.f32.mrf.mxu1 }
 0x392   :  { %v2137_v30 = vpop.f32.mrf.mxu3 }
 0x393   :  { %v2138_v33 = vadd.f32 %v2137_v30, %v2098_v62 }
 0x395   :  { %v2167_v14 = vpack.c.bf16 %v2138_v33, %v2138_v33 }
 0x397   :  { %v5498_v53 = vunpack.c.l.b16 %v2167_v14 }
 0x39a   :  { %v2139_v20 = vpop.f32.mrf.mxu3 }
 0x39b   :  { %v2140_v57 = vadd.f32 %v2139_v20, %v2100_v19 }
 0x39d   :  { %v2168_v40 = vpack.c.bf16 %v2140_v57, %v2140_v57 }
 0x39f   :  { %v2192_v24 = vunpack.c.l.b16 %v2168_v40 }
 0x3a1   :  { %v5501_v18 = vpack.c.b16 %v2192_v24, %v5498_v53 }
 0x3a2   :  { %v2142_v52 = vpop.f32.mrf.mxu3 }
 0x3a3   :  { %v2143_v22 = vadd.f32 %v2142_v52, %v2103_v25  ;;  %v2212_v43 = vshll.u32 %v5501_v18, 16  ;;  %v2210_v45 = vshrl.u32 %v5501_v18, 16  ;;  %v2264_v10 = vrot.slane %v5501_v18, 1 }
 0x3a4   :  { %v2310_v39 = vrot.slane %v5501_v18, 2 }
 0x3a5   :  { %v2169_v8 = vpack.c.bf16 %v2143_v22, %v2143_v22  ;;  %v2214_v49 = vrot.slane %v2212_v43, 1  ;;  %v2279_v50 = vrot.slane %v2210_v45, 1  ;;  %v2280_v55 = vrot.slane %v2212_v43, 2 }
 0x3a7   :  { %v2193_v44 = vunpack.c.l.b16 %v2169_v8  ;;  %v2215_v9 = vor.u32 %v2214_v49, %v2210_v45  ;;  %v2281_v4 = vor.u32 %v2280_v55, %v2279_v50 }
 0x3aa   :  { %v2144_v38 = vpop.f32.mrf.mxu3 }
 0x3ab   :  { %v2145_v42 = vadd.f32 %v2144_v38, %v2105_v16 }
 0x3ad   :  { %v2170_v47 = vpack.c.bf16 %v2145_v42, %v2145_v42 }
 0x3af   :  { %v2194_v46 = vunpack.c.l.b16 %v2170_v47  ;;  %v4213_v47 = vld [vmem:[%s5814_s5 + $0x38] sm:$0xff] }
 0x3b0   :  { %2641 = vmatpush.bf16.msra.mxu0 %v4213_v47 }
 0x3b1   :  { %v5505_v60 = vpack.c.b16 %v2194_v46, %v2193_v44 }
 0x3b2   :  { %v2147_v21 = vpop.f32.mrf.mxu3 }
 0x3b3   :  { %v2217_v51 = vshll.u32 %v5505_v60, 16  ;;  %v2265_v13 = vrot.slane %v5505_v60, 1  ;;  %v2221_v54 = vshrl.u32 %v5505_v60, 16  ;;  %v2148_v23 = vadd.f32 %v2147_v21, %v2108_v63  ;;  %v2118_v63 = vpop.f32.mrf.mxu1 }
 0x3b4   :  { %v2311_v3 = vrot.slane %v5505_v60, 2 }
 0x3b5   :  { %v2219_v29 = vrot.slane %v2217_v51, 1  ;;  %v2266_v56 = vsel %vm393_vm2, %v2264_v10, %v2265_v13  ;;  %v2282_v58 = vrot.slane %v2221_v54, 1  ;;  %v2283_v2 = vrot.slane %v2217_v51, 2 }
 0x3b6   :  { %2339 = vrot.lane.b32.xlu0 %v2266_v56, %s4524_s3  ;;  %v2171_v12 = vpack.c.bf16 %v2148_v23, %v2148_v23  ;;  %v2312_v28 = vsel %vm491_vm3, %v2310_v39, %v2311_v3 }
 0x3b7   :  { %v2220_v1 = vsel %vm271_vm0, %v2215_v9, %v2219_v29  ;;  %v2284_v5 = vor.u32 %v2283_v2, %v2282_v58  ;;  %v2223_v36 = vor.u32 %v2221_v54, %v2219_v29  ;;  %v4212_v9 = vld [vmem:[%s5814_s5 + $0x30] sm:$0xff]  ;;  %v4211_v58 = vld [vmem:[%s5814_s5 + $0x28] sm:$0xff] }
 0x3b8   :  { %2326 = vrot.lane.b32.xlu2 %v2220_v1, %s4525_s30  ;;  %v2195_v32 = vunpack.c.l.b16 %v2171_v12  ;;  %2642 = vmatpush.bf16.msra.mxu0 %v4212_v9  ;;  %v4210_v12 = vld [vmem:[%s5814_s5 + $0x20] sm:$0xff] }
 0x3b9   :  { %v2285_v11 = vsel %vm426_vm1, %v2281_v4, %v2284_v5 }
 0x3ba   :  { %v2149_v41 = vpop.f32.mrf.mxu3  ;;  %2352 = vrot.lane.b32.xlu1 %v2285_v11, %s4526_s20 }
 0x3bb   :  { %v2150_v35 = vadd.f32 %v2149_v41, %v2110_v26  ;;  %v2120_v10 = vpop.f32.mrf.mxu1 }
 0x3bc   :  { %2643 = vmatpush.bf16.msra.mxu0 %v4211_v58  ;;  %v4218_v58 = vld [vmem:[%s5814_s5 + $0x60] sm:$0xff] }
 0x3bd   :  { %v2172_v17 = vpack.c.bf16 %v2150_v35, %v2150_v35 }
 0x3bf   :  { %v2196_v27 = vunpack.c.l.b16 %v2172_v17  ;;  %v4209_v17 = vld [vmem:[%s5814_s5 + $0x18] sm:$0xff] }
 0x3c0   :  { %2365 = vrot.lane.b32.xlu2 %v2312_v28, %s4527_s1  ;;  %2644 = vmatpush.bf16.msra.mxu0 %v4210_v12  ;;  %v4225_v12 = vld [vmem:[%s5814_s5 + $0x98] sm:$0xff] }
 0x3c1   :  { %v5521_v34 = vpack.c.b16 %v2196_v27, %v2195_v32 }
 0x3c2   :  { %v2152_v37 = vpop.f32.mrf.mxu3 }
 0x3c3   :  { %v2225_v48 = vshll.u32 %v5521_v34, 16  ;;  %v2267_v31 = vrot.slane %v5521_v34, 1  ;;  %v2229_v59 = vshrl.u32 %v5521_v34, 16  ;;  %v2153_v30 = vadd.f32 %v2152_v37, %v2113_v7  ;;  %v2123_v11 = vpop.f32.mrf.mxu1 }
 0x3c4   :  { %v2313_v14 = vrot.slane %v5521_v34, 2  ;;  %2645 = vmatpush.bf16.msra.mxu0 %v4209_v17 }
 0x3c5   :  { %v2227_v15 = vrot.slane %v2225_v48, 1  ;;  %v2268_v62 = vsel %vm393_vm2, %v2265_v13, %v2267_v31  ;;  %v2286_v19 = vrot.slane %v2229_v59, 1  ;;  %v2287_v25 = vrot.slane %v2225_v48, 2 }
 0x3c6   :  { %2341 = vrot.lane.b32.xlu1 %v2268_v62, %s4524_s3  ;;  %v2173_v40 = vpack.c.bf16 %v2153_v30, %v2153_v30  ;;  %v2314_v8 = vsel %vm491_vm3, %v2311_v3, %v2313_v14  ;;  %v4208_v62 = vld [vmem:[%s5814_s5 + $0x10] sm:$0xff] }
 0x3c7   :  { %v2228_v20 = vsel %vm271_vm0, %v2223_v36, %v2227_v15  ;;  %v2288_v16 = vor.u32 %v2287_v25, %v2286_v19  ;;  %v2231_v45 = vor.u32 %v2229_v59, %v2227_v15  ;;  %v4221_v19 = vld [vmem:[%s5814_s5 + $0x78] sm:$0xff] }
 0x3c8   :  { %2328 = vrot.lane.b32.xlu0 %v2228_v20, %s4525_s30  ;;  %v2197_v22 = vunpack.c.l.b16 %v2173_v40  ;;  %2646 = vmatpush.bf16.msra.mxu0 %v4208_v62  ;;  %v4222_v62 = vld [vmem:[%s5814_s5 + $0x80] sm:$0xff] }
 0x3c9   :  { %v2289_v33 = vsel %vm426_vm1, %v2284_v5, %v2288_v16  ;;  %2680 = vmatpush.bf16.msra.mxu2 %v4221_v19 }
 0x3ca   :  { %v2154_v57 = vpop.f32.mrf.mxu3  ;;  %2354 = vrot.lane.b32.xlu2 %v2289_v33, %s4526_s20 }
 0x3cb   :  { %v2155_v52 = vadd.f32 %v2154_v57, %v2115_v61  ;;  %v2125_v25 = vpop.f32.mrf.mxu1 }
 0x3cd   :  { %v2174_v24 = vpack.c.bf16 %v2155_v52, %v2155_v52 }
 0x3cf   :  { %v2198_v38 = vunpack.c.l.b16 %v2174_v24 }
 0x3d0   :  { %2367 = vrot.lane.b32.xlu0 %v2314_v8, %s4527_s1 }
 0x3d1   :  { %v5535_v42 = vpack.c.b16 %v2198_v38, %v2197_v22 }
 0x3d2   :  { %v2157_v43 = vpop.f32.mrf.mxu3 }
 0x3d3   :  { %v2233_v26 = vshll.u32 %v5535_v42, 16  ;;  %v2237_v44 = vshrl.u32 %v5535_v42, 16  ;;  %v2269_v46 = vrot.slane %v5535_v42, 1  ;;  %v2158_v54 = vadd.f32 %v2157_v43, %v2118_v63  ;;  %v2484_v63 = vld [vmem:[%s5814_s5 + $0xb0] sm:$0xf] }
 0x3d4   :  { %v2315_v1 = vrot.slane %v5535_v42, 2  ;;  %v2578_v8 = vunpack.c.l.b16 %v2484_v63 }
 0x3d5   :  { %v2235_v49 = vrot.slane %v2233_v26, 1  ;;  %v2290_v21 = vrot.slane %v2237_v44, 1  ;;  %v2291_v51 = vrot.slane %v2233_v26, 2  ;;  %v2270_v13 = vsel %vm393_vm2, %v2267_v31, %v2269_v46  ;;  %v4220_v26 = vld [vmem:[%s5814_s5 + $0x70] sm:$0xff] }
 0x3d6   :  { %2343 = vrot.lane.b32.xlu2 %v2270_v13, %s4524_s3  ;;  %v2175_v2 = vpack.c.bf16 %v2158_v54, %v2158_v54  ;;  %v2316_v41 = vsel %vm491_vm3, %v2313_v14, %v2315_v1  ;;  %v4206_v14 = vld [vmem:[%s5814_s5] sm:$0xff]  ;;  %v2601_v43 = vpack.c.b16 %v2578_v8, %v2578_v8  ;;  %2681 = vmatpush.bf16.msra.mxu2 %v4220_v26 }
 0x3d7   :  { %v2236_v50 = vsel %vm271_vm0, %v2231_v45, %v2235_v49  ;;  %v2292_v55 = vor.u32 %v2291_v51, %v2290_v21  ;;  %v2239_v28 = vor.u32 %v2237_v44, %v2235_v49  ;;  %v2257_v44 = vpack.c.b16 %v5498_v53, %v5498_v53  ;;  %v4219_v21 = vld [vmem:[%s5814_s5 + $0x68] sm:$0xff] }
 0x3d8   :  { %2330 = vrot.lane.b32.xlu1 %v2236_v50, %s4525_s30  ;;  %v2199_v5 = vunpack.c.l.b16 %v2175_v2  ;;  %v2639_v51 = vsel %vm2637_vm14, %v2601_v43, 0  ;;  %v4227_v53 = vld [vmem:[%s5814_s5 + $0xa8] sm:$0xff] }
 0x3d9   :  { %v2293_v29 = vsel %vm426_vm1, %v2288_v16, %v2292_v55  ;;  %v4207_v16 = vld [vmem:[%s5814_s5 + $0x8] sm:$0xff]  ;;  %2720 = vmatpush.bf16.msrb.mxu1 %v2639_v51  ;;  %v2275_v17 = vrot.slane %v2257_v44, 1 }
 0x3da   :  { %v2159_v56 = vpop.f32.mrf.mxu3  ;;  %2356 = vrot.lane.b32.xlu0 %v2293_v29, %s4526_s20  ;;  %2647 = vmatpush.bf16.msra.mxu0 %v4207_v16  ;;  %v2259_v29 = vshll.u32 %v2257_v44, 16 }
 0x3db   :  { %v2160_v23 = vadd.f32 %v2159_v56, %v2120_v10  ;;  %2682 = vmatpush.bf16.msra.mxu2 %v4219_v21 }
 0x3dd   :  { %v2176_v4 = vpack.c.bf16 %v2160_v23, %v2160_v23  ;;  %2721 = vmatpush.bf16.msrb.mxu1 %v4227_v53  ;;  %v4226_v23 = vld [vmem:[%s5814_s5 + $0xa0] sm:$0xff] }
 0x3de   :  { %2648 = vmatpush.bf16.msra.mxu0 %v4206_v14 }
 0x3df   :  { %v2200_v7 = vunpack.c.l.b16 %v2176_v4  ;;  %v2261_v4 = vrot.slane %v2259_v29, 1  ;;  %2683 = vmatpush.bf16.msra.mxu2 %v4218_v58 }
 0x3e0   :  { %2369 = vrot.lane.b32.xlu1 %v2316_v41, %s4527_s1 }
 0x3e1   :  { %v5561_v35 = vpack.c.b16 %v2200_v7, %v2199_v5  ;;  %v4217_v7 = vld [vmem:[%s5814_s5 + $0x58] sm:$0xff]  ;;  %2722 = vmatpush.bf16.msrb.mxu1 %v4226_v23 }
 0x3e2   :  { %v2162_v3 = vpop.f32.mrf.mxu3 }
 0x3e3   :  { %v2241_v39 = vshll.u32 %v5561_v35, 16  ;;  %v2271_v32 = vrot.slane %v5561_v35, 1  ;;  %v2245_v27 = vshrl.u32 %v5561_v35, 16  ;;  %v2163_v59 = vadd.f32 %v2162_v3, %v2123_v11  ;;  %2684 = vmatpush.bf16.msra.mxu2 %v4217_v7 }
 0x3e4   :  { %v2317_v40 = vrot.slane %v5561_v35, 2  ;;  %v2303_v11 = vshrl.u32 %v2257_v44, 16 }
 0x3e5   :  { %v2243_v37 = vrot.slane %v2241_v39, 1  ;;  %v2272_v61 = vsel %vm393_vm2, %v2269_v46, %v2271_v32  ;;  %v2294_v48 = vrot.slane %v2245_v27, 1  ;;  %v2295_v31 = vrot.slane %v2241_v39, 2  ;;  %v4216_v39 = vld [vmem:[%s5814_s5 + $0x50] sm:$0xff]  ;;  %2723 = vmatpush.bf16.msrb.mxu1 %v4225_v12 }
 0x3e6   :  { %2345 = vrot.lane.b32.xlu0 %v2272_v61, %s4524_s3  ;;  %v2177_v57 = vpack.c.bf16 %v2163_v59, %v2163_v59  ;;  %v2318_v38 = vsel %vm491_vm3, %v2315_v1, %v2317_v40  ;;  %v2305_v0 = vrot.slane %v2303_v11, 1  ;;  %v4215_v61 = vld [vmem:[%s5814_s5 + $0x48] sm:$0xff] }
 0x3e7   :  { %v2244_v36 = vsel %vm271_vm0, %v2239_v28, %v2243_v37  ;;  %v2296_v15 = vor.u32 %v2295_v31, %v2294_v48  ;;  %v2247_v13 = vor.u32 %v2245_v27, %v2243_v37  ;;  %v4224_v27 = vld [vmem:[%s5814_s5 + $0x90] sm:$0xff]  ;;  %v2321_v37 = vrot.slane %v2257_v44, 2  ;;  %2685 = vmatpush.bf16.msra.mxu2 %v4216_v39  ;;  %v4223_v59 = vld [vmem:[%s5814_s5 + $0x88] sm:$0xff] }
 0x3e8   :  { %2332 = vrot.lane.b32.xlu2 %v2244_v36, %s4525_s30  ;;  %v2201_v24 = vunpack.c.l.b16 %v2177_v57  ;;  %v4233_v39 = vld [vmem:[#allocation6 + $0x28] sm:$0xff] }
 0x3e9   :  { %v2297_v20 = vsel %vm426_vm1, %v2292_v55, %v2296_v15  ;;  %2724 = vmatpush.bf16.msrb.mxu1 %v4224_v27 }
 0x3ea   :  { %v2164_v30 = vpop.f32.mrf.mxu3  ;;  %2358 = vrot.lane.b32.xlu1 %v2297_v20, %s4526_s20 }
 0x3eb   :  { %v2165_v33 = vadd.f32 %v2164_v30, %v2125_v25  ;;  %2686 = vmatpush.bf16.msra.mxu2 %v4215_v61  ;;  %v4239_v61 = vld [vmem:[#allocation6 + $0x58] sm:$0xff] }
 0x3ed   :  { %v2178_v52 = vpack.c.bf16 %v2165_v33, %v2165_v33  ;;  %2725 = vmatpush.bf16.msrb.mxu1 %v4223_v59  ;;  %v4229_v59 = vld [vmem:[#allocation6 + $0x8] sm:$0xff] }
 0x3ef   :  { %v2202_v22 = vunpack.c.l.b16 %v2178_v52 }
 0x3f0   :  { %2371 = vrot.lane.b32.xlu2 %v2318_v38, %s4527_s1 }
 0x3f1   :  { %v5593_v47 = vpack.c.b16 %v2202_v22, %v2201_v24  ;;  %2726 = vmatpush.bf16.msrb.mxu1 %v4222_v62  ;;  %v4236_v62 = vld [vmem:[#allocation6 + $0x40] sm:$0xff] }
 0x3f3   :  { %v2273_v46 = vrot.slane %v5593_v47, 1  ;;  %v2249_v45 = vshll.u32 %v5593_v47, 16  ;;  %v2253_v49 = vshrl.u32 %v5593_v47, 16  ;;  %v2319_v5 = vrot.slane %v5593_v47, 2 }
 0x3f5   :  { %v2274_v10 = vsel %vm393_vm2, %v2271_v32, %v2273_v46  ;;  %v2251_v54 = vrot.slane %v2249_v45, 1  ;;  %v2298_v50 = vrot.slane %v2253_v49, 1  ;;  %v2299_v55 = vrot.slane %v2249_v45, 2 }
 0x3f6   :  { %2347 = vrot.lane.b32.xlu1 %v2274_v10, %s4524_s3  ;;  %v2320_v3 = vsel %vm491_vm3, %v2317_v40, %v2319_v5  ;;  %v2306_v32 = vrot.slane %v2259_v29, 2  ;;  %v2278_v28 = vsel %vm393_vm2, %v2273_v46, %v2275_v17  ;;  %v2324_v31 = vsel %vm491_vm3, %v2319_v5, %v2321_v37  ;;  %v4243_v5 = vld [vmem:[#allocation6 + $0x78] sm:$0xff] }
 0x3f7   :  { %v2252_v9 = vsel %vm271_vm0, %v2247_v13, %v2251_v54  ;;  %v2300_v56 = vor.u32 %v2299_v55, %v2298_v50  ;;  %v2255_v2 = vor.u32 %v2253_v49, %v2251_v54  ;;  %vm2408_vm0 = vcmask 719872   ;;  %2944 = vmatpush.bf16.msrb.mxu0 %v4243_v5  ;;  %v4231_v37 = vld [vmem:[#allocation6 + $0x18] sm:$0xff] }
 0x3f8   :  { %2334 = vrot.lane.b32.xlu0 %v2252_v9, %s4525_s30  ;;  %v2307_v48 = vor.u32 %v2306_v32, %v2305_v0  ;;  %vm2624_vm3 = vcmask 850944   ;;  %v4241_v0 = vld [vmem:[#allocation6 + $0x68] sm:$0xff] }
 0x3f9   :  { %v2301_v1 = vsel %vm426_vm1, %v2296_v15, %v2300_v56  ;;  %v2263_v41 = vsel %vm5051_vm10, %v2255_v2, %v2261_v4  ;;  %v4214_v15 = vld [vmem:[%s5814_s5 + $0x40] sm:$0xff]  ;;  %vm2427_vm1 = vcmask 261120  }
 0x3fa   :  { %2360 = vrot.lane.b32.xlu2 %v2301_v1, %s4526_s20  ;;  %v2309_v36 = vsel %vm5063_vm11, %v2300_v56, %v2307_v48  ;;  %2687 = vmatpush.bf16.msra.mxu2 %v4214_v15  ;;  %v4235_v4 = vld [vmem:[#allocation6 + $0x38] sm:$0xff]  ;;  %v4230_v48 = vld [vmem:[#allocation6 + $0x10] sm:$0xff]  ;;  %v4228_v15 = vld [vmem:[#allocation6] sm:$0xff] }
 0x3fb   :  { %2840 = vmatpush.bf16.msrb.mxu3 %v4235_v4 }
 0x3fe   :  { %2336 = vrot.lane.b32.xlu1 %v2263_v41, %s4525_s30 }
 0x400   :  { %2373 = vrot.lane.b32.xlu0 %v2320_v3, %s4527_s1  ;;  %v4242_v3 = vld [vmem:[#allocation6 + $0x70] sm:$0xff] }
 0x401   :  { %2945 = vmatpush.bf16.msrb.mxu0 %v4242_v3 }
 0x402   :  { %2349 = vrot.lane.b32.xlu2 %v2278_v28, %s4524_s3  ;;  %v4240_v28 = vld [vmem:[#allocation6 + $0x60] sm:$0xff] }
 0x405   :  { %2946 = vmatpush.bf16.msrb.mxu0 %v4241_v0 }
 0x406   :  { %2375 = vrot.lane.b32.xlu1 %v2324_v31, %s4527_s1  ;;  %v4238_v31 = vld [vmem:[#allocation6 + $0x50] sm:$0xff] }
 0x408   :  { %2362 = vrot.lane.b32.xlu0 %v2309_v36, %s4526_s20  ;;  %v4237_v36 = vld [vmem:[#allocation6 + $0x48] sm:$0xff] }
 0x409   :  { %2947 = vmatpush.bf16.msrb.mxu0 %v4240_v28 }
 0x40d   :  { %2948 = vmatpush.bf16.msrb.mxu0 %v4239_v61 }
 0x411   :  { %2949 = vmatpush.bf16.msrb.mxu0 %v4238_v31 }
 0x412   :  { %v2327_v19 = vpop.permute.xlu2 %2326 }
 0x413   :  { %v2379_v6 = vsel %vm2377_vm15, %v5501_v18, %v2327_v19 }
 0x414   :  { %2649 = vmatmul.bf16.vlgmr.msra.gmra.mxu0 %v2379_v6 }
 0x415   :  { %2950 = vmatpush.bf16.msrb.mxu0 %v4237_v36 }
 0x419   :  { %2951 = vmatpush.bf16.msrb.mxu0 %v4236_v62 }
 0x41a   :  { %v2366_v30 = vpop.permute.xlu2 %2365 }
 0x424   :  { %v2355_v14 = vpop.permute.xlu2 %2354 }
 0x428   :  { %v2340_v25 = vpop.permute.xlu0 %2339 }
 0x429   :  { %v2397_v20 = vsel %vm1389_vm12, %v2327_v19, %v2340_v25  ;;  %v5694_v25 = vld [vmem:[#allocation4] ss:$0 sm:$0xff] }
 0x42c   :  { %v2353_v16 = vpop.permute.xlu1 %2352 }
 0x42d   :  { %v2410_v57 = vsel %vm2408_vm0, %v2397_v20, %v2353_v16  ;;  %v2429_v33 = vsel %vm2427_vm1, %v2353_v16, %v2366_v30 }
 0x42e   :  { %2688 = vmatmul.bf16.vlgmr.msra.gmra.mxu2 %v2410_v57  ;;  %3933 = vmatmul.msk.bf16.vlgmr.msrb.gmra.mxu1 %vm2624_vm3, %v2429_v33 }
 0x430   :  { %v2344_v8 = vpop.permute.xlu2 %2343 }
 0x438   :  { %v2342_v52 = vpop.permute.xlu1 %2341 }
 0x43a   :  { %v2329_v40 = vpop.permute.xlu0 %2328 }
 0x43b   :  { %v2399_v18 = vsel %vm1389_vm12, %v2329_v40, %v2342_v52  ;;  %v2382_v63 = vsel %vm2377_vm15, %v5505_v60, %v2329_v40 }
 0x43c   :  { %2654 = vmatmul.bf16.gmra.mxu0 %v2382_v63  ;;  %v2413_v24 = vsel %vm2408_vm0, %v2399_v18, %v2355_v14 }
 0x43e   :  { %2693 = vmatmul.bf16.gmra.mxu2 %v2413_v24 }
 0x442   :  { %v2368_v22 = vpop.permute.xlu0 %2367  ;;  %v2333_v21 = vpop.permute.xlu2 %2332 }
 0x443   :  { %v2431_v38 = vsel %vm2427_vm1, %v2355_v14, %v2368_v22  ;;  %v2388_v10 = vsel %vm2377_vm15, %v5535_v42, %v2333_v21 }
 0x444   :  { %3934 = vmatmul.msk.bf16.gmra.mxu1 %vm2624_vm3, %v2431_v38 }
 0x44a   :  { %v2331_v43 = vpop.permute.xlu1 %2330  ;;  %v2372_v50 = vpop.permute.xlu2 %2371 }
 0x44b   :  { %v2401_v26 = vsel %vm1389_vm12, %v2331_v43, %v2344_v8  ;;  %v2385_v44 = vsel %vm2377_vm15, %v5521_v34, %v2331_v43 }
 0x44c   :  { %v2357_v46 = vpop.permute.xlu0 %2356  ;;  %2659 = vmatmul.bf16.gmra.mxu0 %v2385_v44 }
 0x44d   :  { %v2416_v60 = vsel %vm2408_vm0, %v2401_v26, %v2357_v46 }
 0x44e   :  { %2698 = vmatmul.bf16.gmra.mxu2 %v2416_v60 }
 0x452   :  { %v2370_v45 = vpop.permute.xlu1 %2369 }
 0x453   :  { %v2433_v49 = vsel %vm2427_vm1, %v2357_v46, %v2370_v45 }
 0x454   :  { %3935 = vmatmul.msk.bf16.gmra.mxu1 %vm2624_vm3, %v2433_v49  ;;  %v2361_v29 = vpop.permute.xlu2 %2360 }
 0x458   :  { %v2346_v51 = vpop.permute.xlu0 %2345 }
 0x459   :  { %v2403_v13 = vsel %vm1389_vm12, %v2333_v21, %v2346_v51 }
 0x45c   :  { %2664 = vmatmul.bf16.gmra.mxu0 %v2388_v10  ;;  %v2359_v54 = vpop.permute.xlu1 %2358  ;;  %v2350_v11 = vpop.permute.xlu2 %2349 }
 0x45d   :  { %v2419_v34 = vsel %vm2408_vm0, %v2403_v13, %v2359_v54  ;;  %v2435_v53 = vsel %vm2427_vm1, %v2359_v54, %v2372_v50 }
 0x45e   :  { %2703 = vmatmul.bf16.gmra.mxu2 %v2419_v34 }
 0x464   :  { %3936 = vmatmul.msk.bf16.gmra.mxu1 %vm2624_vm3, %v2435_v53 }
 0x468   :  { %v2348_v55 = vpop.permute.xlu1 %2347 }
 0x46a   :  { %v2335_v9 = vpop.permute.xlu0 %2334 }
 0x46b   :  { %v2405_v56 = vsel %vm1389_vm12, %v2335_v9, %v2348_v55  ;;  %v2391_v42 = vsel %vm2377_vm15, %v5561_v35, %v2335_v9  ;;  %v4234_v35 = vld [vmem:[#allocation6 + $0x30] sm:$0xff] }
 0x46c   :  { %2669 = vmatmul.bf16.gmra.mxu0 %v2391_v42  ;;  %v2422_v58 = vsel %vm2408_vm0, %v2405_v56, %v2361_v29  ;;  %2841 = vmatpush.bf16.msrb.mxu3 %v4234_v35 }
 0x46e   :  { %2708 = vmatmul.bf16.gmra.mxu2 %v2422_v58 }
 0x470   :  { %v2337_v1 = vpop.permute.xlu1 %2336  ;;  %2842 = vmatpush.bf16.msrb.mxu3 %v4233_v39 }
 0x471   :  { %v2394_v41 = vsel %vm2377_vm15, %v5593_v47, %v2337_v1  ;;  %v2407_v12 = vsel %vm1389_vm12, %v2337_v1, %v2350_v11  ;;  %v4232_v47 = vld [vmem:[#allocation6 + $0x20] sm:$0xff] }
 0x472   :  { %v2374_v2 = vpop.permute.xlu0 %2373 }
 0x473   :  { %v2437_v23 = vsel %vm2427_vm1, %v2361_v29, %v2374_v2 }
 0x474   :  { %3937 = vmatmul.msk.bf16.gmra.mxu1 %vm2624_vm3, %v2437_v23  ;;  %2843 = vmatpush.bf16.msrb.mxu3 %v4232_v47 }
 0x478   :  { %v2376_v32 = vpop.permute.xlu1 %2375  ;;  %2844 = vmatpush.bf16.msrb.mxu3 %v4231_v37 }
 0x47a   :  { %v2363_v7 = vpop.permute.xlu0 %2362 }
 0x47b   :  { %v2425_v17 = vsel %vm2408_vm0, %v2407_v12, %v2363_v7  ;;  %v2439_v27 = vsel %vm2427_vm1, %v2363_v7, %v2376_v32 }
 0x47c   :  { %2674 = vmatmul.bf16.gmra.mxu0 %v2394_v41  ;;  %2845 = vmatpush.bf16.msrb.mxu3 %v4230_v48 }
 0x47e   :  { %2713 = vmatmul.bf16.gmra.mxu2 %v2425_v17 }
 0x480   :  { %2846 = vmatpush.bf16.msrb.mxu3 %v4229_v59 }
 0x484   :  { %3938 = vmatmul.msk.bf16.gmra.mxu1 %vm2624_vm3, %v2439_v27  ;;  %2847 = vmatpush.bf16.msrb.mxu3 %v4228_v15 }
 0x491   :  { %v2650_v19 = vpop.f32.mrf.mxu0 }
 0x492   :  { %v2651_v16 = vadd.f32 %v5694_v25, %v2650_v19 }
 0x499   :  { %v2652_v30 = vpop.f32.mrf.mxu0 }
 0x49a   :  { %v2653_v33 = vadd.f32 %v5694_v25, %v2652_v30 }
 0x4ab   :  { %v2728_v6 = vpop.f32.mrf.mxu1 }
 0x4b1   :  { %v2689_v20 = vpop.f32.mrf.mxu2 }
 0x4b2   :  { %v2690_v57 = vadd.f32 %v2689_v20, %v2651_v16 }
 0x4b3   :  { %v2730_v52 = vpop.f32.mrf.mxu1 }
 0x4b4   :  { %v2729_v18 = vadd.f32 %v2728_v6, %v2690_v57 }
 0x4b6   :  { %v2758_v22 = vmax.f32 %v2729_v18, 0.0 }
 0x4b9   :  { %v2655_v40 = vpop.f32.mrf.mxu0  ;;  %v2691_v14 = vpop.f32.mrf.mxu2 }
 0x4ba   :  { %v2692_v63 = vadd.f32 %v2691_v14, %v2653_v33  ;;  %v2656_v46 = vadd.f32 %v5694_v25, %v2655_v40 }
 0x4bc   :  { %v2731_v24 = vadd.f32 %v2730_v52, %v2692_v63 }
 0x4be   :  { %v2759_v38 = vmax.f32 %v2731_v24, 0.0 }
 0x4c0   :  { %v2770_v8 = vpack.c.bf16 %v2759_v38, %v2758_v22 }
 0x4c1   :  { %v2657_v43 = vpop.f32.mrf.mxu0  ;;  %v2733_v26 = vpop.f32.mrf.mxu1 }
 0x4c2   :  { %v2694_v44 = vpop.f32.mrf.mxu2  ;;  %2848 = vmatmul.bf16.vlgmr.msrb.gmra.mxu3 %v2770_v8  ;;  %2952 = vmatmul.bf16.vlgmr.msrb.gmra.mxu0 %v2770_v8  ;;  %v2658_v45 = vadd.f32 %v5694_v25, %v2657_v43 }
 0x4c3   :  { %v2695_v60 = vadd.f32 %v2694_v44, %v2656_v46 }
 0x4c5   :  { %v2734_v10 = vadd.f32 %v2733_v26, %v2695_v60 }
 0x4c7   :  { %v2760_v34 = vmax.f32 %v2734_v10, 0.0 }
 0x4c9   :  { %v2660_v49 = vpop.f32.mrf.mxu0  ;;  %v2735_v21 = vpop.f32.mrf.mxu1 }
 0x4ca   :  { %v2696_v51 = vpop.f32.mrf.mxu2  ;;  %v2661_v56 = vadd.f32 %v5694_v25, %v2660_v49 }
 0x4cb   :  { %v2697_v13 = vadd.f32 %v2696_v51, %v2658_v45 }
 0x4cd   :  { %v2736_v54 = vadd.f32 %v2735_v21, %v2697_v13 }
 0x4cf   :  { %v2761_v50 = vmax.f32 %v2736_v54, 0.0 }
 0x4d1   :  { %v2771_v53 = vpack.c.bf16 %v2761_v50, %v2760_v34  ;;  %v2662_v55 = vpop.f32.mrf.mxu0  ;;  %v2738_v9 = vpop.f32.mrf.mxu1 }
 0x4d2   :  { %v2699_v29 = vpop.f32.mrf.mxu2  ;;  %v2663_v58 = vadd.f32 %v5694_v25, %v2662_v55 }
 0x4d3   :  { %2853 = vmatmul.bf16.gmra.mxu3 %v2771_v53  ;;  %2957 = vmatmul.bf16.gmra.mxu0 %v2771_v53  ;;  %v2700_v42 = vadd.f32 %v2699_v29, %v2661_v56 }
 0x4d5   :  { %v2739_v4 = vadd.f32 %v2738_v9, %v2700_v42 }
 0x4d7   :  { %v2762_v41 = vmax.f32 %v2739_v4, 0.0 }
 0x4d9   :  { %v2665_v2 = vpop.f32.mrf.mxu0  ;;  %v2740_v23 = vpop.f32.mrf.mxu1 }
 0x4da   :  { %v2701_v1 = vpop.f32.mrf.mxu2  ;;  %v2666_v39 = vadd.f32 %v5694_v25, %v2665_v2 }
 0x4db   :  { %v2702_v5 = vadd.f32 %v2701_v1, %v2663_v58 }
 0x4dd   :  { %v2741_v7 = vadd.f32 %v2740_v23, %v2702_v5 }
 0x4df   :  { %v2763_v11 = vmax.f32 %v2741_v7, 0.0 }
 0x4e1   :  { %v2772_v35 = vpack.c.bf16 %v2763_v11, %v2762_v41  ;;  %v2667_v12 = vpop.f32.mrf.mxu0  ;;  %v2743_v3 = vpop.f32.mrf.mxu1 }
 0x4e2   :  { %v2704_v17 = vpop.f32.mrf.mxu2  ;;  %v2668_v32 = vadd.f32 %v5694_v25, %v2667_v12 }
 0x4e3   :  { %2858 = vmatmul.bf16.gmra.mxu3 %v2772_v35  ;;  %2962 = vmatmul.bf16.gmra.mxu0 %v2772_v35  ;;  %v2705_v0 = vadd.f32 %v2704_v17, %v2666_v39 }
 0x4e5   :  { %v2744_v37 = vadd.f32 %v2743_v3, %v2705_v0 }
 0x4e7   :  { %v2764_v31 = vmax.f32 %v2744_v37, 0.0 }
 0x4e9   :  { %v2670_v27 = vpop.f32.mrf.mxu0  ;;  %v2745_v47 = vpop.f32.mrf.mxu1 }
 0x4ea   :  { %v2706_v28 = vpop.f32.mrf.mxu2  ;;  %v2671_v6 = vadd.f32 %v5694_v25, %v2670_v27 }
 0x4eb   :  { %v2707_v61 = vadd.f32 %v2706_v28, %v2668_v32 }
 0x4ed   :  { %v2746_v48 = vadd.f32 %v2745_v47, %v2707_v61 }
 0x4ef   :  { %v2765_v59 = vmax.f32 %v2746_v48, 0.0 }
 0x4f1   :  { %v2773_v36 = vpack.c.bf16 %v2765_v59, %v2764_v31  ;;  %v2748_v15 = vpop.f32.mrf.mxu1  ;;  %v2672_v62 = vpop.f32.mrf.mxu0 }
 0x4f2   :  { %v2709_v19 = vpop.f32.mrf.mxu2  ;;  %v2673_v20 = vadd.f32 %v5694_v25, %v2672_v62 }
 0x4f3   :  { %2863 = vmatmul.bf16.gmra.mxu3 %v2773_v36  ;;  %2967 = vmatmul.bf16.gmra.mxu0 %v2773_v36  ;;  %v2710_v30 = vadd.f32 %v2709_v19, %v2671_v6 }
 0x4f5   :  { %v2749_v33 = vadd.f32 %v2748_v15, %v2710_v30 }
 0x4f7   :  { %v2766_v18 = vmax.f32 %v2749_v33, 0.0 }
 0x4f9   :  { %v2750_v16 = vpop.f32.mrf.mxu1  ;;  %v2675_v52 = vpop.f32.mrf.mxu0 }
 0x4fa   :  { %v2711_v57 = vpop.f32.mrf.mxu2  ;;  %v2676_v8 = vadd.f32 %v5694_v25, %v2675_v52 }
 0x4fb   :  { %v2712_v40 = vadd.f32 %v2711_v57, %v2673_v20 }
 0x4fd   :  { %v2751_v14 = vadd.f32 %v2750_v16, %v2712_v40 }
 0x4ff   :  { %v2767_v63 = vmax.f32 %v2751_v14, 0.0 }
 0x501   :  { %v2774_v24 = vpack.c.bf16 %v2767_v63, %v2766_v18  ;;  %v2753_v38 = vpop.f32.mrf.mxu1  ;;  %v2677_v43 = vpop.f32.mrf.mxu0 }
 0x502   :  { %v2714_v22 = vpop.f32.mrf.mxu2  ;;  %v2678_v44 = vadd.f32 %v5694_v25, %v2677_v43 }
 0x503   :  { %2868 = vmatmul.bf16.gmra.mxu3 %v2774_v24  ;;  %2972 = vmatmul.bf16.gmra.mxu0 %v2774_v24  ;;  %v2715_v26 = vadd.f32 %v2714_v22, %v2676_v8 }
 0x505   :  { %v2754_v60 = vadd.f32 %v2753_v38, %v2715_v26 }
 0x507   :  { %v2768_v51 = vmax.f32 %v2754_v60, 0.0 }
 0x509   :  { %v2755_v49 = vpop.f32.mrf.mxu1 }
 0x50a   :  { %v2716_v46 = vpop.f32.mrf.mxu2 }
 0x50b   :  { %v2717_v45 = vadd.f32 %v2716_v46, %v2678_v44 }
 0x50d   :  { %v2756_v21 = vadd.f32 %v2755_v49, %v2717_v45 }
 0x50f   :  { %v2769_v10 = vmax.f32 %v2756_v21, 0.0 }
 0x511   :  { %v2775_v13 = vpack.c.bf16 %v2769_v10, %v2768_v51 }
 0x513   :  { %2873 = vmatmul.bf16.gmra.mxu3 %v2775_v13  ;;  %2977 = vmatmul.bf16.gmra.mxu0 %v2775_v13 }
 0x53f   :  { %v2953_v54 = vpop.f32.mrf.mxu0 }
 0x545   :  { %v2849_v34 = vpop.f32.mrf.mxu3 }
 0x546   :  { %v2983_v50 = vmax.f32 %v2849_v34, %v2953_v54 }
 0x547   :  { %v2955_v53 = vpop.f32.mrf.mxu0 }
 0x548   :  { %v3007_v56 = vrot.slane %v2983_v50, 1 }
 0x54d   :  { %v2851_v55 = vpop.f32.mrf.mxu3 }
 0x54e   :  { %v2984_v9 = vmax.f32 %v2851_v55, %v2955_v53 }
 0x550   :  { %v2958_v29 = vpop.f32.mrf.mxu0  ;;  %v3008_v42 = vrot.slane %v2984_v9, 1 }
 0x552   :  { %v3009_v25 = vsel %vm393_vm2, %v3007_v56, %v3008_v42 }
 0x553   :  { %v3044_v58 = vmax.f32 %v2983_v50, %v3009_v25 }
 0x556   :  { %v2854_v2 = vpop.f32.mrf.mxu3 }
 0x557   :  { %v2985_v23 = vmax.f32 %v2854_v2, %v2958_v29 }
 0x558   :  { %v2960_v1 = vpop.f32.mrf.mxu0 }
 0x559   :  { %v3010_v4 = vrot.slane %v2985_v23, 1 }
 0x55b   :  { %v3011_v5 = vsel %vm393_vm2, %v3008_v42, %v3010_v4 }
 0x55c   :  { %v3045_v7 = vmax.f32 %v2984_v9, %v3011_v5  ;;  %v4245_v5 = vld [vmem:[#allocation7 + $0x8] sm:$0xff] }
 0x55e   :  { %v2856_v41 = vpop.f32.mrf.mxu3  ;;  %v5710_v11 = vpack.c.bf16 %v3045_v7, %v3044_v58 }
 0x55f   :  { %v2986_v35 = vmax.f32 %v2856_v41, %v2960_v1 }
 0x560   :  { %v2963_v12 = vpop.f32.mrf.mxu0 }
 0x561   :  { %v3012_v3 = vrot.slane %v2986_v35, 1 }
 0x563   :  { %v3013_v17 = vsel %vm393_vm2, %v3010_v4, %v3012_v3  ;;  %v4244_v4 = vld [vmem:[#allocation7] sm:$0xff] }
 0x564   :  { %v3046_v39 = vmax.f32 %v2985_v23, %v3013_v17 }
 0x566   :  { %v2859_v0 = vpop.f32.mrf.mxu3 }
 0x567   :  { %v2987_v32 = vmax.f32 %v2859_v0, %v2963_v12  ;;  %v3157_v0 = vld [vmem:[#allocation9 + $0xc] sm:$0xf] }
 0x568   :  { %v2965_v27 = vpop.f32.mrf.mxu0 }
 0x569   :  { %v3014_v47 = vrot.slane %v2987_v32, 1 }
 0x56b   :  { %v3015_v28 = vsel %vm393_vm2, %v3012_v3, %v3014_v47 }
 0x56c   :  { %v3047_v37 = vmax.f32 %v2986_v35, %v3015_v28  ;;  %v4252_v28 = vld [vmem:[%s5819_s10 + $0x30] sm:$0xff] }
 0x56e   :  { %v2861_v61 = vpop.f32.mrf.mxu3  ;;  %v3057_v48 = vpack.c.bf16 %v3047_v37, %v3046_v39  ;;  %v3103_v39 = vld [vmem:[#allocation9] sm:$0xf] }
 0x56f   :  { %v2988_v49 = vmax.f32 %v2861_v61, %v2965_v27  ;;  %v4253_v27 = vld [vmem:[%s5819_s10 + $0x38] sm:$0xff]  ;;  %v4260_v37 = vld [vmem:[%s5819_s10 + $0x70] sm:$0xff]  ;;  %v4251_v61 = vld [vmem:[%s5819_s10 + $0x28] sm:$0xff] }
 0x570   :  { %v2968_v31 = vpop.f32.mrf.mxu0  ;;  %3319 = vmatpush.bf16.msra.mxu3 %v4253_v27 }
 0x571   :  { %v3016_v53 = vrot.slane %v2988_v49, 1 }
 0x573   :  { %v3017_v25 = vsel %vm393_vm2, %v3014_v47, %v3016_v53  ;;  %v4261_v47 = vld [vmem:[%s5819_s10 + $0x78] sm:$0xff] }
 0x574   :  { %v3048_v23 = vmax.f32 %v2987_v32, %v3017_v25  ;;  %v3139_v32 = vld [vmem:[#allocation9 + $0x8] sm:$0xf]  ;;  %3332 = vmatpush.bf16.msra.mxu0 %v4261_v47  ;;  %3320 = vmatpush.bf16.msra.mxu3 %v4252_v28 }
 0x576   :  { %v2864_v59 = vpop.f32.mrf.mxu3 }
 0x577   :  { %v2989_v8 = vmax.f32 %v2864_v59, %v2968_v31  ;;  %v4250_v59 = vld [vmem:[%s5819_s10 + $0x20] sm:$0xff] }
 0x578   :  { %v2970_v36 = vpop.f32.mrf.mxu0  ;;  %3333 = vmatpush.bf16.msra.mxu0 %v4260_v37  ;;  %3321 = vmatpush.bf16.msra.mxu3 %v4251_v61 }
 0x579   :  { %v3018_v54 = vrot.slane %v2989_v8, 1 }
 0x57c   :  { %3322 = vmatpush.bf16.msra.mxu3 %v4250_v59 }
 0x57e   :  { %v2866_v15 = vpop.f32.mrf.mxu3 }
 0x57f   :  { %v2990_v24 = vmax.f32 %v2866_v15, %v2970_v36  ;;  %v4258_v36 = vld [vmem:[%s5819_s10 + $0x60] sm:$0xff]  ;;  %v4249_v15 = vld [vmem:[%s5819_s10 + $0x18] sm:$0xff] }
 0x580   :  { %v2973_v62 = vpop.f32.mrf.mxu0  ;;  %3323 = vmatpush.bf16.msra.mxu3 %v4249_v15 }
 0x581   :  { %v3020_v21 = vrot.slane %v2990_v24, 1 }
 0x583   :  { %v3021_v55 = vsel %vm393_vm2, %v3018_v54, %v3020_v21 }
 0x584   :  { %v3050_v42 = vmax.f32 %v2989_v8, %v3021_v55  ;;  %v4267_v8 = vld [vmem:[#allocation12 + $0x28] sm:$0xff]  ;;  %v4273_v55 = vld [vmem:[%s5823_s14 + $0x18] sm:$0xff] }
 0x586   :  { %v2869_v19 = vpop.f32.mrf.mxu3 }
 0x587   :  { %v2991_v14 = vmax.f32 %v2869_v19, %v2973_v62  ;;  %v4257_v19 = vld [vmem:[%s5819_s10 + $0x58] sm:$0xff] }
 0x588   :  { %v2975_v6 = vpop.f32.mrf.mxu0 }
 0x589   :  { %v3022_v43 = vrot.slane %v2991_v14, 1 }
 0x58b   :  { %v3023_v34 = vsel %vm393_vm2, %v3020_v21, %v3022_v43 }
 0x58c   :  { %v3051_v29 = vmax.f32 %v2990_v24, %v3023_v34  ;;  %v4269_v24 = vld [vmem:[#allocation12 + $0x38] sm:$0xff]  ;;  %v4276_v34 = vld [vmem:[%s5823_s14 + $0x30] sm:$0xff] }
 0x58e   :  { %v2871_v30 = vpop.f32.mrf.mxu3  ;;  %v3059_v58 = vpack.c.bf16 %v3051_v29, %v3050_v42 }
 0x58f   :  { %v2992_v33 = vmax.f32 %v2871_v30, %v2975_v6  ;;  %v4248_v30 = vld [vmem:[%s5819_s10 + $0x10] sm:$0xff] }
 0x590   :  { %v2978_v20 = vpop.f32.mrf.mxu0  ;;  %3324 = vmatpush.bf16.msra.mxu3 %v4248_v30 }
 0x591   :  { %v3024_v22 = vrot.slane %v2992_v33, 1 }
 0x593   :  { %v3025_v51 = vsel %vm393_vm2, %v3022_v43, %v3024_v22  ;;  %v4266_v43 = vld [vmem:[#allocation12 + $0x20] sm:$0xff] }
 0x594   :  { %v3052_v50 = vmax.f32 %v2991_v14, %v3025_v51  ;;  %v4246_v14 = vld [vmem:[%s5819_s10] sm:$0xff] }
 0x596   :  { %v2874_v16 = vpop.f32.mrf.mxu3 }
 0x597   :  { %v2993_v57 = vmax.f32 %v2874_v16, %v2978_v20  ;;  %v4247_v20 = vld [vmem:[%s5819_s10 + $0x8] sm:$0xff] }
 0x598   :  { %v2980_v40 = vpop.f32.mrf.mxu0  ;;  %3325 = vmatpush.bf16.msra.mxu3 %v4247_v20 }
 0x599   :  { %v3026_v18 = vrot.slane %v2993_v57, 1 }
 0x59b   :  { %v3027_v46 = vsel %vm393_vm2, %v3024_v22, %v3026_v18  ;;  %v4268_v22 = vld [vmem:[#allocation12 + $0x30] sm:$0xff] }
 0x59c   :  { %v3053_v13 = vmax.f32 %v2992_v33, %v3027_v46  ;;  %3326 = vmatpush.bf16.msra.mxu3 %v4246_v14 }
 0x59e   :  { %v2876_v52 = vpop.f32.mrf.mxu3  ;;  %v3060_v9 = vpack.c.bf16 %v3053_v13, %v3052_v50  ;;  %v4262_v13 = vld [vmem:[#allocation12] sm:$0xff] }
 0x59f   :  { %v2994_v63 = vmax.f32 %v2876_v52, %v2980_v40  ;;  %v4256_v40 = vld [vmem:[%s5819_s10 + $0x50] sm:$0xff]  ;;  %v4255_v52 = vld [vmem:[%s5819_s10 + $0x48] sm:$0xff] }
 0x5a0   :  { %v4275_v50 = vld [vmem:[%s5823_s14 + $0x28] sm:$0xff] }
 0x5a1   :  { %v3028_v38 = vrot.slane %v2994_v63, 1 }
 0x5a3   :  { %v3029_v26 = vsel %vm393_vm2, %v3026_v18, %v3028_v38  ;;  %v3043_v44 = vsel %vm393_vm2, %v3028_v38, %v3007_v56  ;;  %v3019_v56 = vsel %vm393_vm2, %v3016_v53, %v3018_v54  ;;  %vm3182_vm2 = vcmask 523264   ;;  %v4277_v54 = vld [vmem:[%s5823_s14 + $0x38] sm:$0xff]  ;;  %v4274_v53 = vld [vmem:[%s5823_s14 + $0x20] sm:$0xff] }
 0x5a4   :  { %v3054_v60 = vmax.f32 %v2993_v57, %v3029_v26  ;;  %v3055_v45 = vmax.f32 %v2994_v63, %v3043_v44  ;;  %v3049_v2 = vmax.f32 %v2988_v49, %v3019_v56  ;;  %v4254_v63 = vld [vmem:[%s5819_s10 + $0x40] sm:$0xff]  ;;  %v4264_v44 = vld [vmem:[#allocation12 + $0x10] sm:$0xff] }
 0x5a5   :  { %v4265_v26 = vld [vmem:[#allocation12 + $0x18] sm:$0xff] }
 0x5a6   :  { %v3061_v10 = vpack.c.bf16 %v3055_v45, %v3054_v60  ;;  %v3058_v1 = vpack.c.bf16 %v3049_v2, %v3048_v23  ;;  %v4303_v56 = vld [vmem:[#allocation10] ss:$0 sm:$0xff] }
 0x5a8   :  { %3084 = vmatpush.bf16.msrb.mxu2 %v3061_v10  ;;  %v4263_v10 = vld [vmem:[#allocation12 + $0x8] sm:$0xff] }
 0x5ac   :  { %3085 = vmatpush.bf16.msrb.mxu2 %v3060_v9  ;;  %v4272_v9 = vld [vmem:[%s5823_s14 + $0x10] sm:$0xff] }
 0x5b0   :  { %3086 = vmatpush.bf16.msrb.mxu2 %v3059_v58 }
 0x5b4   :  { %3087 = vmatpush.bf16.msrb.mxu2 %v3058_v1 }
 0x5b8   :  { %3088 = vmatpush.bf16.msrb.mxu2 %v3057_v48  ;;  %v4259_v48 = vld [vmem:[%s5819_s10 + $0x68] sm:$0xff] }
 0x5b9   :  { %3334 = vmatpush.bf16.msra.mxu0 %v4259_v48 }
 0x5bc   :  { %3089 = vmatpush.bf16.msrb.mxu2 %v5710_v11  ;;  %v3121_v11 = vld [vmem:[#allocation9 + $0x4] sm:$0xf] }
 0x5bd   :  { %3335 = vmatpush.bf16.msra.mxu0 %v4258_v36 }
 0x5bf   :  { %4011 = vmatmul.msk.bf16.vlgmr.msrb.gmra.mxu2 %vm2070_vm13, %v4244_v4 }
 0x5c1   :  { %3336 = vmatpush.bf16.msra.mxu0 %v4257_v19 }
 0x5c5   :  { %3337 = vmatpush.bf16.msra.mxu0 %v4256_v40 }
 0x5c9   :  { %3338 = vmatpush.bf16.msra.mxu0 %v4255_v52 }
 0x5cd   :  { %3339 = vmatpush.bf16.msra.mxu0 %v4254_v63 }
 0x5cf   :  { %4012 = vmatmul.msk.bf16.gmra.mxu2 %vm2070_vm13, %v4245_v5  ;;  %v4271_v5 = vld [vmem:[%s5823_s14 + $0x8] sm:$0xff] }
 0x642   :  { %v3091_v7 = vpop.f32.mrf.mxu2 }
 0x64a   :  { %v3093_v41 = vpop.f32.mrf.mxu2 }
 0x64b   :  { %v3101_v17 = vpack.c.bf16 %v3093_v41, %v3091_v7  ;;  %v4270_v7 = vld [vmem:[%s5823_s14] sm:$0xff] }
 0x64c   :  { %v4304_v41 = vld [vmem:[#allocation13] ss:$0 sm:$0xff] }
 0x652   :  { %v3096_v35 = vpop.f32.mrf.mxu2 }
 0x65a   :  { %v3098_v12 = vpop.f32.mrf.mxu2 }
 0x65b   :  { %v3102_v3 = vpack.c.bf16 %v3098_v12, %v3096_v35 }
 0x65d   :  { %3113 = vmatpush.bf16.msra.mxu2 %v3102_v3  ;;  %3167 = vmatpush.bf16.msra.mxu1 %v3102_v3 }
 0x661   :  { %3114 = vmatpush.bf16.msra.mxu2 %v3101_v17  ;;  %3168 = vmatpush.bf16.msra.mxu1 %v3101_v17 }
 0x664   :  { %4013 = vmatmul.msk.bf16.vlgmr.msra.gmra.mxu2 %vm2427_vm1, %v3103_v39  ;;  %4016 = vmatmul.msk.bf16.vlgmr.msra.gmra.mxu1 %vm2427_vm1, %v3157_v0  ;;  %v4305_v0 = vld [vmem:[%s5824_s15] ss:$0 sm:$0xff] }
 0x665   :  { %3131 = vmatpush.bf16.msrb.mxu2 %v3102_v3  ;;  %3498 = vmatpush.bf16.msrb.mxu1 %v4277_v54 }
 0x669   :  { %3132 = vmatpush.bf16.msrb.mxu2 %v3101_v17  ;;  %3499 = vmatpush.bf16.msrb.mxu1 %v4276_v34 }
 0x66d   :  { %3149 = vmatpush.bf16.msra.mxu2 %v3102_v3  ;;  %3500 = vmatpush.bf16.msrb.mxu1 %v4275_v50 }
 0x671   :  { %3150 = vmatpush.bf16.msra.mxu2 %v3101_v17  ;;  %3501 = vmatpush.bf16.msrb.mxu1 %v4274_v53 }
 0x674   :  { %4014 = vmatmul.msk.bf16.vlgmr.msrb.gmra.mxu2 %vm2427_vm1, %v3121_v11 }
 0x675   :  { %3415 = vmatpush.bf16.msrb.mxu2 %v4269_v24  ;;  %3502 = vmatpush.bf16.msrb.mxu1 %v4273_v55 }
 0x679   :  { %3416 = vmatpush.bf16.msrb.mxu2 %v4268_v22  ;;  %3503 = vmatpush.bf16.msrb.mxu1 %v4272_v9 }
 0x67d   :  { %3417 = vmatpush.bf16.msrb.mxu2 %v4267_v8  ;;  %3504 = vmatpush.bf16.msrb.mxu1 %v4271_v5 }
 0x681   :  { %3418 = vmatpush.bf16.msrb.mxu2 %v4266_v43  ;;  %3505 = vmatpush.bf16.msrb.mxu1 %v4270_v7 }
 0x684   :  { %4015 = vmatmul.msk.bf16.vlgmr.msra.gmra.mxu2 %vm2427_vm1, %v3139_v32 }
 0x685   :  { %3419 = vmatpush.bf16.msrb.mxu2 %v4265_v26 }
 0x689   :  { %3420 = vmatpush.bf16.msrb.mxu2 %v4264_v44 }
 0x68d   :  { %3421 = vmatpush.bf16.msrb.mxu2 %v4263_v10 }
 0x691   :  { %3422 = vmatpush.bf16.msrb.mxu2 %v4262_v13 }
 0x6e1   :  { %v3170_v31 = vpop.f32.mrf.mxu1 }
 0x6e2   :  { %3179 = vrot.lane.b32.xlu0 %v3170_v31, %s4510_s6 }
 0x6e7   :  { %v3116_v62 = vpop.f32.mrf.mxu2 }
 0x6e9   :  { %v3172_v6 = vpop.f32.mrf.mxu1 }
 0x6ef   :  { %v3118_v16 = vpop.f32.mrf.mxu2 }
 0x6f7   :  { %v3134_v57 = vpop.f32.mrf.mxu2 }
 0x6f8   :  { %3175 = vrot.lane.b32.xlu2 %v3134_v57, %s4510_s6 }
 0x6ff   :  { %v3136_v33 = vpop.f32.mrf.mxu2 }
 0x707   :  { %v3152_v18 = vpop.f32.mrf.mxu2 }
 0x70f   :  { %v3154_v38 = vpop.f32.mrf.mxu2 }
 0x752   :  { %v3176_v46 = vpop.permute.xlu2 %3175 }
 0x753   :  { %v3183_v60 = vsel %vm3182_vm2, %v3116_v62, %v3176_v46 }
 0x754   :  { %v3185_v45 = vpack.c.bf16 %v3183_v60, %v3183_v60  ;;  %v3180_v49 = vpop.permute.xlu0 %3179 }
 0x755   :  { %v3184_v21 = vsel %vm3182_vm2, %v3152_v18, %v3180_v49 }
 0x756   :  { %3327 = vmatmul.bf16.vlgmr.msra.gmra.mxu3 %v3185_v45  ;;  %v3186_v51 = vpack.c.bf16 %v3184_v21, %v3184_v21 }
 0x758   :  { %3340 = vmatmul.bf16.vlgmr.msra.gmra.mxu0 %v3186_v51 }
 0x7d5   :  { %v3341_v29 = vpop.f32.mrf.mxu0 }
 0x7d9   :  { %v3328_v42 = vpop.f32.mrf.mxu3 }
 0x7da   :  { %v3329_v25 = vadd.f32 %v4303_v56, %v3328_v42 }
 0x7dc   :  { %v3342_v58 = vadd.f32 %v3341_v29, %v3329_v25 }
 0x7dd   :  { %v3343_v2 = vpop.f32.mrf.mxu0 }
 0x7de   :  { %v3345_v23 = vmax.f32 %v3342_v58, 0.0 }
 0x7e0   :  { %v3346_v1 = vpack.c.bf16 %v3345_v23, %v3345_v23 }
 0x7e1   :  { %v3330_v4 = vpop.f32.mrf.mxu3 }
 0x7e2   :  { %3423 = vmatmul.bf16.vlgmr.msrb.gmra.mxu2 %v3346_v1 }
 0x865   :  { %v3424_v35 = vpop.f32.mrf.mxu2 }
 0x866   :  { %v3425_v12 = vadd.f32 %v4304_v41, %v3424_v35 }
 0x868   :  { %v3428_v3 = vmax.f32 %v3425_v12, 0.0 }
 0x86a   :  { %v3429_v17 = vpack.c.bf16 %v3428_v3, %v3428_v3 }
 0x86c   :  { %3506 = vmatmul.bf16.vlgmr.msrb.gmra.mxu1 %v3429_v17 }
 0x86d   :  { %v3426_v39 = vpop.f32.mrf.mxu2 }
 0x8e9   :  { %v3507_v11 = vpop.f32.mrf.mxu1 }
 0x8ea   :  { %v3508_v32 = vadd.f32 %v4305_v0, %v3507_v11 }
 0x8ec   :  { %3511 = vst [vmem:[%s5825_s16] sm:$0xff] %v3508_v32 }
 0x8f1   :  { %v3509_v27 = vpop.f32.mrf.mxu1 }
 0x8f2   :  { %3516 = vsyncpa [#allocation3], 1 }
 0x8f3   :  { %3517 = vsyncpa [#allocation5], 1 }
 0x8f4   :  { %3518 = vsyncpa [#allocation8], 1 }
 0x8f5   :  { %3519 = vsyncpa [#allocation11], 1 }
 0x8f6   :  { %3520 = vsyncpa [#allocation14], 1 }

</bundles_post_ra>
